<compile_context>
chip_gen: v6e
topology: v6e:2x2x1
jax: 0.10.0
libtpu: 0.0.40
codegen_flags: <defaults>
</compile_context>

<pallas_src>
import functools
import math

import jax
import jax.numpy as jnp
from jax.experimental import pallas as pl
from jax.experimental.pallas import tpu as pltpu

# ----------------------------------------------------------------------------
# Configuration (the relevant slice of the "options_file")
# ----------------------------------------------------------------------------
OPTIONS = dict(
    model_dim=32,
    num_of_central_attention_heads=4,
    num_of_central_encoder_layers=1,
    central_dropout=0.0,                 # p=0.0 -> dropout is the identity
    central_activation_function="gelu",  # exact-erf GELU (PyTorch default)
    num_of_jets=8,                       # sequence length fed to the encoder
)
FFN_DIM = 2048  # nn.TransformerEncoderLayer default dim_feedforward


def _vmem_spec():
    return pl.BlockSpec(memory_space=pltpu.MemorySpace.VMEM)


# ----------------------------------------------------------------------------
# In-kernel math helpers (all lower to plain VPU/EUP/XLU ops)
# ----------------------------------------------------------------------------
def _erf(x):
    # Abramowitz & Stegun 7.1.26 rational approximation, |err| < 1.5e-7
    # (i.e. f32-machine-precision), built only from exp / mul / add / where.
    # TODO(synk): switch to lax.erf if/when its Mosaic lowering is guaranteed.
    a1, a2, a3, a4, a5 = (0.254829592, -0.284496736, 1.421413741,
                          -1.453152027, 1.061405429)
    p = 0.3275911
    sign = jnp.where(x < 0.0, -1.0, 1.0)
    z = jnp.where(x < 0.0, -x, x)
    t = 1.0 / (1.0 + p * z)
    poly = ((((a5 * t + a4) * t + a3) * t + a2) * t + a1) * t
    return sign * (1.0 - poly * jnp.exp(-z * z))


def _gelu_exact(x):
    # PyTorch activation='gelu' -> F.gelu exact erf formulation.
    return 0.5 * x * (1.0 + _erf(x * 0.7071067811865476))


def _layernorm(x, g, b, eps=1e-5):
    mu = jnp.mean(x, axis=-1, keepdims=True)
    var = jnp.mean(jnp.square(x - mu), axis=-1, keepdims=True)
    return (x - mu) * jax.lax.rsqrt(var + eps) * g + b


# ----------------------------------------------------------------------------
# Fused TransformerEncoderLayer kernel (post-norm, dropout=0)
# ----------------------------------------------------------------------------
def _encoder_layer_kernel(x_ref, wqkv_ref, bqkv_ref, wo_ref, bo_ref,
                          g1_ref, be1_ref, w1_ref, b1_ref, w2_ref, b2_ref,
                          g2_ref, be2_ref, o_ref, *, batch, seq, num_heads):
    x = x_ref[...]                                   # (B*S, D) f32, in VMEM
    d_model = x.shape[-1]
    dh = d_model // num_heads

    # --- multi-head self-attention (scale already folded into W_q at init) --
    attn = None
    for h in range(num_heads):
        q = jnp.dot(x, wqkv_ref[0, h], preferred_element_type=jnp.float32) + bqkv_ref[0, h]
        k = jnp.dot(x, wqkv_ref[1, h], preferred_element_type=jnp.float32) + bqkv_ref[1, h]
        v = jnp.dot(x, wqkv_ref[2, h], preferred_element_type=jnp.float32) + bqkv_ref[2, h]
        q3 = q.reshape(batch, seq, dh)
        k3 = k.reshape(batch, seq, dh)
        v3 = v.reshape(batch, seq, dh)
        s = jnp.einsum("bqd,bkd->bqk", q3, k3,
                       preferred_element_type=jnp.float32)          # (B,S,S)
        m = jnp.max(s, axis=-1, keepdims=True)
        e = jnp.exp(s - m)
        p = e / jnp.sum(e, axis=-1, keepdims=True)
        o_h = jnp.einsum("bqk,bkd->bqd", p, v3,
                         preferred_element_type=jnp.float32)        # (B,S,dh)
        # per-head slice of the output projection: (dh, D)
        contrib = jnp.dot(o_h.reshape(batch * seq, dh), wo_ref[h],
                          preferred_element_type=jnp.float32)       # (B*S, D)
        attn = contrib if attn is None else attn + contrib
    attn = attn + bo_ref[...]

    # --- residual + LayerNorm 1 (norm_first=False => post-norm) -------------
    h1 = _layernorm(x + attn, g1_ref[...], be1_ref[...])

    # --- feed-forward: linear -> exact GELU -> linear (weights in VMEM) -----
    ff = jnp.dot(h1, w1_ref[...], preferred_element_type=jnp.float32) + b1_ref[...]
    ff = _gelu_exact(ff)
    ff = jnp.dot(ff, w2_ref[...], preferred_element_type=jnp.float32) + b2_ref[...]

    # --- residual + LayerNorm 2 ----------------------------------------------
    o_ref[...] = _layernorm(h1 + ff, g2_ref[...], be2_ref[...])


def fused_encoder_layer(p, x2d, *, batch, seq, num_heads):
    bs, d_model = x2d.shape
    kernel = functools.partial(_encoder_layer_kernel,
                               batch=batch, seq=seq, num_heads=num_heads)
    return pl.pallas_call(
        kernel,
        out_shape=jax.ShapeDtypeStruct((bs, d_model), jnp.float32),
        in_specs=[_vmem_spec()] * 13,
        out_specs=_vmem_spec(),
    )(x2d, p["wqkv"], p["bqkv"], p["wo"], p["bo"],
      p["ln1_g"], p["ln1_b"], p["w1"], p["b1"], p["w2"], p["b2"],
      p["ln2_g"], p["ln2_b"])


# ----------------------------------------------------------------------------
# CentralEncoderModule.forward : stack of fused encoder layers
# ----------------------------------------------------------------------------
def central_encoder_forward(params, x):
    # x: (batch, seq, model_dim), batch_first=True
    B, S, D = x.shape
    h = x.reshape(B * S, D)
    for lp in params["layers"]:
        h = fused_encoder_layer(
            lp, h, batch=B, seq=S,
            num_heads=OPTIONS["num_of_central_attention_heads"])
    return h.reshape(B, S, D)


# ----------------------------------------------------------------------------
# Deterministic parameter init (shapes match nn.TransformerEncoderLayer);
# weights are packed per-head and the attention scale is folded into W_q here.
# ----------------------------------------------------------------------------
def init_params(key):
    D = OPTIONS["model_dim"]
    H = OPTIONS["num_of_central_attention_heads"]
    dh = D // H
    n_layers = OPTIONS["num_of_central_encoder_layers"]
    q_scale = 1.0 / math.sqrt(dh)

    layer_keys = jax.random.split(key, max(n_layers, 1))

    def w(k, shape, s=0.1):
        return s * jax.random.normal(k, shape, dtype=jnp.float32)

    def split_cols(mat):    # (D, D) -> (H, D, dh)
        return jnp.stack([mat[:, h * dh:(h + 1) * dh] for h in range(H)], 0)

    def split_bias(vec):    # (D,) -> (H, 1, dh)
        return jnp.stack([vec[h * dh:(h + 1) * dh].reshape(1, dh)
                          for h in range(H)], 0)

    layers = []
    for lk in layer_keys[:n_layers]:
        ks = jax.random.split(lk, 6)
        wq = w(ks[0], (D, D)) * q_scale          # fold 1/sqrt(dh) into W_q
        wk = w(ks[1], (D, D))
        wv = w(ks[2], (D, D))
        wo = w(ks[3], (D, D))
        w1 = w(ks[4], (D, FFN_DIM))
        w2 = w(ks[5], (FFN_DIM, D), s=0.02)
        bq = jnp.zeros((D,), jnp.float32) * q_scale
        bk = jnp.zeros((D,), jnp.float32)
        bv = jnp.zeros((D,), jnp.float32)

        layers.append(dict(
            wqkv=jnp.stack([split_cols(wq), split_cols(wk), split_cols(wv)], 0),
            bqkv=jnp.stack([split_bias(bq), split_bias(bk), split_bias(bv)], 0),
            wo=jnp.stack([wo[h * dh:(h + 1) * dh, :] for h in range(H)], 0),
            bo=jnp.zeros((1, D), jnp.float32),
            ln1_g=jnp.ones((1, D), jnp.float32),
            ln1_b=jnp.zeros((1, D), jnp.float32),
            w1=w1, b1=jnp.zeros((1, FFN_DIM), jnp.float32),
            w2=w2, b2=jnp.zeros((1, D), jnp.float32),
            ln2_g=jnp.ones((1, D), jnp.float32),
            ln2_b=jnp.zeros((1, D), jnp.float32),
        ))
    return dict(layers=layers)


# ----------------------------------------------------------------------------
if __name__ == "__main__":
    key = jax.random.PRNGKey(0)
    pkey, xkey = jax.random.split(key)
    params = init_params(pkey)

    B = 2
    S = OPTIONS["num_of_jets"]       # seq = 8
    D = OPTIONS["model_dim"]         # hidden = 32
    x = jax.random.normal(xkey, (B, S, D), dtype=jnp.float32)

    out = jax.jit(central_encoder_forward)(params, x)
    jax.block_until_ready(out)

    assert out.shape == (B, S, D), out.shape
    assert out.dtype == jnp.float32, out.dtype
    assert bool(jnp.all(jnp.isfinite(out)))

    print("KERNEL_OK")
</pallas_src>

<mosaic_0001>
module attributes {stable_mosaic.version = 11 : i64} {
  func.func @_encoder_layer_kernel(%arg0: memref<16x32xf32, #tpu.memory_space<vmem>>, %arg1: memref<3x4x32x8xf32, #tpu.memory_space<vmem>>, %arg2: memref<3x4x1x8xf32, #tpu.memory_space<vmem>>, %arg3: memref<4x8x32xf32, #tpu.memory_space<vmem>>, %arg4: memref<1x32xf32, #tpu.memory_space<vmem>>, %arg5: memref<1x32xf32, #tpu.memory_space<vmem>>, %arg6: memref<1x32xf32, #tpu.memory_space<vmem>>, %arg7: memref<32x2048xf32, #tpu.memory_space<vmem>>, %arg8: memref<1x2048xf32, #tpu.memory_space<vmem>>, %arg9: memref<2048x32xf32, #tpu.memory_space<vmem>>, %arg10: memref<1x32xf32, #tpu.memory_space<vmem>>, %arg11: memref<1x32xf32, #tpu.memory_space<vmem>>, %arg12: memref<1x32xf32, #tpu.memory_space<vmem>>, %arg13: memref<16x32xf32, #tpu.memory_space<vmem>>) attributes {dimension_semantics = [], scalar_prefetch = 0 : i64, scratch_operands = 0 : i64, tpu.core_type = #tpu.core_type<tc>} {
    %c0 = arith.constant 0 : index
    %c0_0 = arith.constant 0 : index
    %0 = vector.load %arg0[%c0, %c0_0] : memref<16x32xf32, #tpu.memory_space<vmem>>, vector<16x32xf32>
    %c0_1 = arith.constant 0 : index
    %c0_2 = arith.constant 0 : index
    %c0_3 = arith.constant 0 : index
    %c0_4 = arith.constant 0 : index
    %1 = vector.load %arg1[%c0_1, %c0_2, %c0_3, %c0_4] : memref<3x4x32x8xf32, #tpu.memory_space<vmem>>, vector<1x1x32x8xf32>
    %2 = vector.shape_cast %1 : vector<1x1x32x8xf32> to vector<32x8xf32>
    %cst = arith.constant dense<0.000000e+00> : vector<16x8xf32>
    %3 = tpu.matmul %0, %2, %cst {dimension_numbers = #tpu.dot_dimension_numbers<[1], [0], [0], [1], [0, 0, 1, 1], [], []>} : vector<16x32xf32>, vector<32x8xf32>, vector<16x8xf32> -> vector<16x8xf32>
    %c0_5 = arith.constant 0 : index
    %c0_6 = arith.constant 0 : index
    %c0_7 = arith.constant 0 : index
    %c0_8 = arith.constant 0 : index
    %4 = vector.load %arg2[%c0_5, %c0_6, %c0_7, %c0_8] : memref<3x4x1x8xf32, #tpu.memory_space<vmem>>, vector<1x1x1x8xf32>
    %5 = vector.shape_cast %4 : vector<1x1x1x8xf32> to vector<1x8xf32>
    %6 = vector.broadcast %5 : vector<1x8xf32> to vector<16x8xf32>
    %7 = arith.addf %3, %6 : vector<16x8xf32>
    %c1 = arith.constant 1 : index
    %c0_9 = arith.constant 0 : index
    %c0_10 = arith.constant 0 : index
    %c0_11 = arith.constant 0 : index
    %8 = vector.load %arg1[%c1, %c0_9, %c0_10, %c0_11] : memref<3x4x32x8xf32, #tpu.memory_space<vmem>>, vector<1x1x32x8xf32>
    %9 = vector.shape_cast %8 : vector<1x1x32x8xf32> to vector<32x8xf32>
    %cst_12 = arith.constant dense<0.000000e+00> : vector<16x8xf32>
    %10 = tpu.matmul %0, %9, %cst_12 {dimension_numbers = #tpu.dot_dimension_numbers<[1], [0], [0], [1], [0, 0, 1, 1], [], []>} : vector<16x32xf32>, vector<32x8xf32>, vector<16x8xf32> -> vector<16x8xf32>
    %c1_13 = arith.constant 1 : index
    %c0_14 = arith.constant 0 : index
    %c0_15 = arith.constant 0 : index
    %c0_16 = arith.constant 0 : index
    %11 = vector.load %arg2[%c1_13, %c0_14, %c0_15, %c0_16] : memref<3x4x1x8xf32, #tpu.memory_space<vmem>>, vector<1x1x1x8xf32>
    %12 = vector.shape_cast %11 : vector<1x1x1x8xf32> to vector<1x8xf32>
    %13 = vector.broadcast %12 : vector<1x8xf32> to vector<16x8xf32>
    %14 = arith.addf %10, %13 : vector<16x8xf32>
    %c2 = arith.constant 2 : index
    %c0_17 = arith.constant 0 : index
    %c0_18 = arith.constant 0 : index
    %c0_19 = arith.constant 0 : index
    %15 = vector.load %arg1[%c2, %c0_17, %c0_18, %c0_19] : memref<3x4x32x8xf32, #tpu.memory_space<vmem>>, vector<1x1x32x8xf32>
    %16 = vector.shape_cast %15 : vector<1x1x32x8xf32> to vector<32x8xf32>
    %cst_20 = arith.constant dense<0.000000e+00> : vector<16x8xf32>
    %17 = tpu.matmul %0, %16, %cst_20 {dimension_numbers = #tpu.dot_dimension_numbers<[1], [0], [0], [1], [0, 0, 1, 1], [], []>} : vector<16x32xf32>, vector<32x8xf32>, vector<16x8xf32> -> vector<16x8xf32>
    %c2_21 = arith.constant 2 : index
    %c0_22 = arith.constant 0 : index
    %c0_23 = arith.constant 0 : index
    %c0_24 = arith.constant 0 : index
    %18 = vector.load %arg2[%c2_21, %c0_22, %c0_23, %c0_24] : memref<3x4x1x8xf32, #tpu.memory_space<vmem>>, vector<1x1x1x8xf32>
    %19 = vector.shape_cast %18 : vector<1x1x1x8xf32> to vector<1x8xf32>
    %20 = vector.broadcast %19 : vector<1x8xf32> to vector<16x8xf32>
    %21 = arith.addf %17, %20 : vector<16x8xf32>
    %22 = vector.shape_cast %7 : vector<16x8xf32> to vector<2x8x8xf32>
    %23 = vector.shape_cast %14 : vector<16x8xf32> to vector<2x8x8xf32>
    %24 = vector.shape_cast %21 : vector<16x8xf32> to vector<2x8x8xf32>
    "tpu.trace_start"() <{level = 10 : i32, message = "bqd,bkd->bqk"}> : () -> ()
    %cst_25 = arith.constant dense<0.000000e+00> : vector<2x8x8xf32>
    %25 = tpu.matmul %22, %23, %cst_25 {dimension_numbers = #tpu.dot_dimension_numbers<[2], [2], [1], [1], [0, 0, 0, 1, 1, 1], [0], [0]>} : vector<2x8x8xf32>, vector<2x8x8xf32>, vector<2x8x8xf32> -> vector<2x8x8xf32>
    "tpu.trace_stop"() : () -> ()
    %cst_26 = arith.constant dense<0xFF800000> : vector<2x8xf32>
    %26 = vector.multi_reduction <maximumf>, %25, %cst_26 [2] : vector<2x8x8xf32> to vector<2x8xf32>
    %27 = vector.shape_cast %26 : vector<2x8xf32> to vector<2x8x1xf32>
    %28 = vector.broadcast %27 : vector<2x8x1xf32> to vector<2x8x8xf32>
    %29 = arith.subf %25, %28 : vector<2x8x8xf32>
    %30 = math.exp %29 : vector<2x8x8xf32>
    %cst_27 = arith.constant dense<0.000000e+00> : vector<2x8xf32>
    %31 = vector.multi_reduction <add>, %30, %cst_27 [2] : vector<2x8x8xf32> to vector<2x8xf32>
    %32 = vector.shape_cast %31 : vector<2x8xf32> to vector<2x8x1xf32>
    %33 = vector.broadcast %32 : vector<2x8x1xf32> to vector<2x8x8xf32>
    %34 = arith.divf %30, %33 : vector<2x8x8xf32>
    "tpu.trace_start"() <{level = 10 : i32, message = "bqk,bkd->bqd"}> : () -> ()
    %cst_28 = arith.constant dense<0.000000e+00> : vector<2x8x8xf32>
    %35 = tpu.matmul %34, %24, %cst_28 {dimension_numbers = #tpu.dot_dimension_numbers<[2], [1], [1], [2], [0, 0, 0, 1, 1, 2], [0], [0]>} : vector<2x8x8xf32>, vector<2x8x8xf32>, vector<2x8x8xf32> -> vector<2x8x8xf32>
    "tpu.trace_stop"() : () -> ()
    %36 = vector.shape_cast %35 : vector<2x8x8xf32> to vector<16x8xf32>
    %c0_29 = arith.constant 0 : index
    %c0_30 = arith.constant 0 : index
    %c0_31 = arith.constant 0 : index
    %37 = vector.load %arg3[%c0_29, %c0_30, %c0_31] : memref<4x8x32xf32, #tpu.memory_space<vmem>>, vector<1x8x32xf32>
    %38 = vector.shape_cast %37 : vector<1x8x32xf32> to vector<8x32xf32>
    %cst_32 = arith.constant dense<0.000000e+00> : vector<16x32xf32>
    %39 = tpu.matmul %36, %38, %cst_32 {dimension_numbers = #tpu.dot_dimension_numbers<[1], [0], [0], [1], [0, 0, 1, 1], [], []>} : vector<16x8xf32>, vector<8x32xf32>, vector<16x32xf32> -> vector<16x32xf32>
    %c0_33 = arith.constant 0 : index
    %c1_34 = arith.constant 1 : index
    %c0_35 = arith.constant 0 : index
    %c0_36 = arith.constant 0 : index
    %40 = vector.load %arg1[%c0_33, %c1_34, %c0_35, %c0_36] : memref<3x4x32x8xf32, #tpu.memory_space<vmem>>, vector<1x1x32x8xf32>
    %41 = vector.shape_cast %40 : vector<1x1x32x8xf32> to vector<32x8xf32>
    %cst_37 = arith.constant dense<0.000000e+00> : vector<16x8xf32>
    %42 = tpu.matmul %0, %41, %cst_37 {dimension_numbers = #tpu.dot_dimension_numbers<[1], [0], [0], [1], [0, 0, 1, 1], [], []>} : vector<16x32xf32>, vector<32x8xf32>, vector<16x8xf32> -> vector<16x8xf32>
    %c0_38 = arith.constant 0 : index
    %c1_39 = arith.constant 1 : index
    %c0_40 = arith.constant 0 : index
    %c0_41 = arith.constant 0 : index
    %43 = vector.load %arg2[%c0_38, %c1_39, %c0_40, %c0_41] : memref<3x4x1x8xf32, #tpu.memory_space<vmem>>, vector<1x1x1x8xf32>
    %44 = vector.shape_cast %43 : vector<1x1x1x8xf32> to vector<1x8xf32>
    %45 = vector.broadcast %44 : vector<1x8xf32> to vector<16x8xf32>
    %46 = arith.addf %42, %45 : vector<16x8xf32>
    %c1_42 = arith.constant 1 : index
    %c1_43 = arith.constant 1 : index
    %c0_44 = arith.constant 0 : index
    %c0_45 = arith.constant 0 : index
    %47 = vector.load %arg1[%c1_42, %c1_43, %c0_44, %c0_45] : memref<3x4x32x8xf32, #tpu.memory_space<vmem>>, vector<1x1x32x8xf32>
    %48 = vector.shape_cast %47 : vector<1x1x32x8xf32> to vector<32x8xf32>
    %cst_46 = arith.constant dense<0.000000e+00> : vector<16x8xf32>
    %49 = tpu.matmul %0, %48, %cst_46 {dimension_numbers = #tpu.dot_dimension_numbers<[1], [0], [0], [1], [0, 0, 1, 1], [], []>} : vector<16x32xf32>, vector<32x8xf32>, vector<16x8xf32> -> vector<16x8xf32>
    %c1_47 = arith.constant 1 : index
    %c1_48 = arith.constant 1 : index
    %c0_49 = arith.constant 0 : index
    %c0_50 = arith.constant 0 : index
    %50 = vector.load %arg2[%c1_47, %c1_48, %c0_49, %c0_50] : memref<3x4x1x8xf32, #tpu.memory_space<vmem>>, vector<1x1x1x8xf32>
    %51 = vector.shape_cast %50 : vector<1x1x1x8xf32> to vector<1x8xf32>
    %52 = vector.broadcast %51 : vector<1x8xf32> to vector<16x8xf32>
    %53 = arith.addf %49, %52 : vector<16x8xf32>
    %c2_51 = arith.constant 2 : index
    %c1_52 = arith.constant 1 : index
    %c0_53 = arith.constant 0 : index
    %c0_54 = arith.constant 0 : index
    %54 = vector.load %arg1[%c2_51, %c1_52, %c0_53, %c0_54] : memref<3x4x32x8xf32, #tpu.memory_space<vmem>>, vector<1x1x32x8xf32>
    %55 = vector.shape_cast %54 : vector<1x1x32x8xf32> to vector<32x8xf32>
    %cst_55 = arith.constant dense<0.000000e+00> : vector<16x8xf32>
    %56 = tpu.matmul %0, %55, %cst_55 {dimension_numbers = #tpu.dot_dimension_numbers<[1], [0], [0], [1], [0, 0, 1, 1], [], []>} : vector<16x32xf32>, vector<32x8xf32>, vector<16x8xf32> -> vector<16x8xf32>
    %c2_56 = arith.constant 2 : index
    %c1_57 = arith.constant 1 : index
    %c0_58 = arith.constant 0 : index
    %c0_59 = arith.constant 0 : index
    %57 = vector.load %arg2[%c2_56, %c1_57, %c0_58, %c0_59] : memref<3x4x1x8xf32, #tpu.memory_space<vmem>>, vector<1x1x1x8xf32>
    %58 = vector.shape_cast %57 : vector<1x1x1x8xf32> to vector<1x8xf32>
    %59 = vector.broadcast %58 : vector<1x8xf32> to vector<16x8xf32>
    %60 = arith.addf %56, %59 : vector<16x8xf32>
    %61 = vector.shape_cast %46 : vector<16x8xf32> to vector<2x8x8xf32>
    %62 = vector.shape_cast %53 : vector<16x8xf32> to vector<2x8x8xf32>
    %63 = vector.shape_cast %60 : vector<16x8xf32> to vector<2x8x8xf32>
    "tpu.trace_start"() <{level = 10 : i32, message = "bqd,bkd->bqk"}> : () -> ()
    %cst_60 = arith.constant dense<0.000000e+00> : vector<2x8x8xf32>
    %64 = tpu.matmul %61, %62, %cst_60 {dimension_numbers = #tpu.dot_dimension_numbers<[2], [2], [1], [1], [0, 0, 0, 1, 1, 1], [0], [0]>} : vector<2x8x8xf32>, vector<2x8x8xf32>, vector<2x8x8xf32> -> vector<2x8x8xf32>
    "tpu.trace_stop"() : () -> ()
    %cst_61 = arith.constant dense<0xFF800000> : vector<2x8xf32>
    %65 = vector.multi_reduction <maximumf>, %64, %cst_61 [2] : vector<2x8x8xf32> to vector<2x8xf32>
    %66 = vector.shape_cast %65 : vector<2x8xf32> to vector<2x8x1xf32>
    %67 = vector.broadcast %66 : vector<2x8x1xf32> to vector<2x8x8xf32>
    %68 = arith.subf %64, %67 : vector<2x8x8xf32>
    %69 = math.exp %68 : vector<2x8x8xf32>
    %cst_62 = arith.constant dense<0.000000e+00> : vector<2x8xf32>
    %70 = vector.multi_reduction <add>, %69, %cst_62 [2] : vector<2x8x8xf32> to vector<2x8xf32>
    %71 = vector.shape_cast %70 : vector<2x8xf32> to vector<2x8x1xf32>
    %72 = vector.broadcast %71 : vector<2x8x1xf32> to vector<2x8x8xf32>
    %73 = arith.divf %69, %72 : vector<2x8x8xf32>
    "tpu.trace_start"() <{level = 10 : i32, message = "bqk,bkd->bqd"}> : () -> ()
    %cst_63 = arith.constant dense<0.000000e+00> : vector<2x8x8xf32>
    %74 = tpu.matmul %73, %63, %cst_63 {dimension_numbers = #tpu.dot_dimension_numbers<[2], [1], [1], [2], [0, 0, 0, 1, 1, 2], [0], [0]>} : vector<2x8x8xf32>, vector<2x8x8xf32>, vector<2x8x8xf32> -> vector<2x8x8xf32>
    "tpu.trace_stop"() : () -> ()
    %75 = vector.shape_cast %74 : vector<2x8x8xf32> to vector<16x8xf32>
    %c1_64 = arith.constant 1 : index
    %c0_65 = arith.constant 0 : index
    %c0_66 = arith.constant 0 : index
    %76 = vector.load %arg3[%c1_64, %c0_65, %c0_66] : memref<4x8x32xf32, #tpu.memory_space<vmem>>, vector<1x8x32xf32>
    %77 = vector.shape_cast %76 : vector<1x8x32xf32> to vector<8x32xf32>
    %cst_67 = arith.constant dense<0.000000e+00> : vector<16x32xf32>
    %78 = tpu.matmul %75, %77, %cst_67 {dimension_numbers = #tpu.dot_dimension_numbers<[1], [0], [0], [1], [0, 0, 1, 1], [], []>} : vector<16x8xf32>, vector<8x32xf32>, vector<16x32xf32> -> vector<16x32xf32>
    %79 = arith.addf %39, %78 : vector<16x32xf32>
    %c0_68 = arith.constant 0 : index
    %c2_69 = arith.constant 2 : index
    %c0_70 = arith.constant 0 : index
    %c0_71 = arith.constant 0 : index
    %80 = vector.load %arg1[%c0_68, %c2_69, %c0_70, %c0_71] : memref<3x4x32x8xf32, #tpu.memory_space<vmem>>, vector<1x1x32x8xf32>
    %81 = vector.shape_cast %80 : vector<1x1x32x8xf32> to vector<32x8xf32>
    %cst_72 = arith.constant dense<0.000000e+00> : vector<16x8xf32>
    %82 = tpu.matmul %0, %81, %cst_72 {dimension_numbers = #tpu.dot_dimension_numbers<[1], [0], [0], [1], [0, 0, 1, 1], [], []>} : vector<16x32xf32>, vector<32x8xf32>, vector<16x8xf32> -> vector<16x8xf32>
    %c0_73 = arith.constant 0 : index
    %c2_74 = arith.constant 2 : index
    %c0_75 = arith.constant 0 : index
    %c0_76 = arith.constant 0 : index
    %83 = vector.load %arg2[%c0_73, %c2_74, %c0_75, %c0_76] : memref<3x4x1x8xf32, #tpu.memory_space<vmem>>, vector<1x1x1x8xf32>
    %84 = vector.shape_cast %83 : vector<1x1x1x8xf32> to vector<1x8xf32>
    %85 = vector.broadcast %84 : vector<1x8xf32> to vector<16x8xf32>
    %86 = arith.addf %82, %85 : vector<16x8xf32>
    %c1_77 = arith.constant 1 : index
    %c2_78 = arith.constant 2 : index
    %c0_79 = arith.constant 0 : index
    %c0_80 = arith.constant 0 : index
    %87 = vector.load %arg1[%c1_77, %c2_78, %c0_79, %c0_80] : memref<3x4x32x8xf32, #tpu.memory_space<vmem>>, vector<1x1x32x8xf32>
    %88 = vector.shape_cast %87 : vector<1x1x32x8xf32> to vector<32x8xf32>
    %cst_81 = arith.constant dense<0.000000e+00> : vector<16x8xf32>
    %89 = tpu.matmul %0, %88, %cst_81 {dimension_numbers = #tpu.dot_dimension_numbers<[1], [0], [0], [1], [0, 0, 1, 1], [], []>} : vector<16x32xf32>, vector<32x8xf32>, vector<16x8xf32> -> vector<16x8xf32>
    %c1_82 = arith.constant 1 : index
    %c2_83 = arith.constant 2 : index
    %c0_84 = arith.constant 0 : index
    %c0_85 = arith.constant 0 : index
    %90 = vector.load %arg2[%c1_82, %c2_83, %c0_84, %c0_85] : memref<3x4x1x8xf32, #tpu.memory_space<vmem>>, vector<1x1x1x8xf32>
    %91 = vector.shape_cast %90 : vector<1x1x1x8xf32> to vector<1x8xf32>
    %92 = vector.broadcast %91 : vector<1x8xf32> to vector<16x8xf32>
    %93 = arith.addf %89, %92 : vector<16x8xf32>
    %c2_86 = arith.constant 2 : index
    %c2_87 = arith.constant 2 : index
    %c0_88 = arith.constant 0 : index
    %c0_89 = arith.constant 0 : index
    %94 = vector.load %arg1[%c2_86, %c2_87, %c0_88, %c0_89] : memref<3x4x32x8xf32, #tpu.memory_space<vmem>>, vector<1x1x32x8xf32>
    %95 = vector.shape_cast %94 : vector<1x1x32x8xf32> to vector<32x8xf32>
    %cst_90 = arith.constant dense<0.000000e+00> : vector<16x8xf32>
    %96 = tpu.matmul %0, %95, %cst_90 {dimension_numbers = #tpu.dot_dimension_numbers<[1], [0], [0], [1], [0, 0, 1, 1], [], []>} : vector<16x32xf32>, vector<32x8xf32>, vector<16x8xf32> -> vector<16x8xf32>
    %c2_91 = arith.constant 2 : index
    %c2_92 = arith.constant 2 : index
    %c0_93 = arith.constant 0 : index
    %c0_94 = arith.constant 0 : index
    %97 = vector.load %arg2[%c2_91, %c2_92, %c0_93, %c0_94] : memref<3x4x1x8xf32, #tpu.memory_space<vmem>>, vector<1x1x1x8xf32>
    %98 = vector.shape_cast %97 : vector<1x1x1x8xf32> to vector<1x8xf32>
    %99 = vector.broadcast %98 : vector<1x8xf32> to vector<16x8xf32>
    %100 = arith.addf %96, %99 : vector<16x8xf32>
    %101 = vector.shape_cast %86 : vector<16x8xf32> to vector<2x8x8xf32>
    %102 = vector.shape_cast %93 : vector<16x8xf32> to vector<2x8x8xf32>
    %103 = vector.shape_cast %100 : vector<16x8xf32> to vector<2x8x8xf32>
    "tpu.trace_start"() <{level = 10 : i32, message = "bqd,bkd->bqk"}> : () -> ()
    %cst_95 = arith.constant dense<0.000000e+00> : vector<2x8x8xf32>
    %104 = tpu.matmul %101, %102, %cst_95 {dimension_numbers = #tpu.dot_dimension_numbers<[2], [2], [1], [1], [0, 0, 0, 1, 1, 1], [0], [0]>} : vector<2x8x8xf32>, vector<2x8x8xf32>, vector<2x8x8xf32> -> vector<2x8x8xf32>
    "tpu.trace_stop"() : () -> ()
    %cst_96 = arith.constant dense<0xFF800000> : vector<2x8xf32>
    %105 = vector.multi_reduction <maximumf>, %104, %cst_96 [2] : vector<2x8x8xf32> to vector<2x8xf32>
    %106 = vector.shape_cast %105 : vector<2x8xf32> to vector<2x8x1xf32>
    %107 = vector.broadcast %106 : vector<2x8x1xf32> to vector<2x8x8xf32>
    %108 = arith.subf %104, %107 : vector<2x8x8xf32>
    %109 = math.exp %108 : vector<2x8x8xf32>
    %cst_97 = arith.constant dense<0.000000e+00> : vector<2x8xf32>
    %110 = vector.multi_reduction <add>, %109, %cst_97 [2] : vector<2x8x8xf32> to vector<2x8xf32>
    %111 = vector.shape_cast %110 : vector<2x8xf32> to vector<2x8x1xf32>
    %112 = vector.broadcast %111 : vector<2x8x1xf32> to vector<2x8x8xf32>
    %113 = arith.divf %109, %112 : vector<2x8x8xf32>
    "tpu.trace_start"() <{level = 10 : i32, message = "bqk,bkd->bqd"}> : () -> ()
    %cst_98 = arith.constant dense<0.000000e+00> : vector<2x8x8xf32>
    %114 = tpu.matmul %113, %103, %cst_98 {dimension_numbers = #tpu.dot_dimension_numbers<[2], [1], [1], [2], [0, 0, 0, 1, 1, 2], [0], [0]>} : vector<2x8x8xf32>, vector<2x8x8xf32>, vector<2x8x8xf32> -> vector<2x8x8xf32>
    "tpu.trace_stop"() : () -> ()
    %115 = vector.shape_cast %114 : vector<2x8x8xf32> to vector<16x8xf32>
    %c2_99 = arith.constant 2 : index
    %c0_100 = arith.constant 0 : index
    %c0_101 = arith.constant 0 : index
    %116 = vector.load %arg3[%c2_99, %c0_100, %c0_101] : memref<4x8x32xf32, #tpu.memory_space<vmem>>, vector<1x8x32xf32>
    %117 = vector.shape_cast %116 : vector<1x8x32xf32> to vector<8x32xf32>
    %cst_102 = arith.constant dense<0.000000e+00> : vector<16x32xf32>
    %118 = tpu.matmul %115, %117, %cst_102 {dimension_numbers = #tpu.dot_dimension_numbers<[1], [0], [0], [1], [0, 0, 1, 1], [], []>} : vector<16x8xf32>, vector<8x32xf32>, vector<16x32xf32> -> vector<16x32xf32>
    %119 = arith.addf %79, %118 : vector<16x32xf32>
    %c0_103 = arith.constant 0 : index
    %c3 = arith.constant 3 : index
    %c0_104 = arith.constant 0 : index
    %c0_105 = arith.constant 0 : index
    %120 = vector.load %arg1[%c0_103, %c3, %c0_104, %c0_105] : memref<3x4x32x8xf32, #tpu.memory_space<vmem>>, vector<1x1x32x8xf32>
    %121 = vector.shape_cast %120 : vector<1x1x32x8xf32> to vector<32x8xf32>
    %cst_106 = arith.constant dense<0.000000e+00> : vector<16x8xf32>
    %122 = tpu.matmul %0, %121, %cst_106 {dimension_numbers = #tpu.dot_dimension_numbers<[1], [0], [0], [1], [0, 0, 1, 1], [], []>} : vector<16x32xf32>, vector<32x8xf32>, vector<16x8xf32> -> vector<16x8xf32>
    %c0_107 = arith.constant 0 : index
    %c3_108 = arith.constant 3 : index
    %c0_109 = arith.constant 0 : index
    %c0_110 = arith.constant 0 : index
    %123 = vector.load %arg2[%c0_107, %c3_108, %c0_109, %c0_110] : memref<3x4x1x8xf32, #tpu.memory_space<vmem>>, vector<1x1x1x8xf32>
    %124 = vector.shape_cast %123 : vector<1x1x1x8xf32> to vector<1x8xf32>
    %125 = vector.broadcast %124 : vector<1x8xf32> to vector<16x8xf32>
    %126 = arith.addf %122, %125 : vector<16x8xf32>
    %c1_111 = arith.constant 1 : index
    %c3_112 = arith.constant 3 : index
    %c0_113 = arith.constant 0 : index
    %c0_114 = arith.constant 0 : index
    %127 = vector.load %arg1[%c1_111, %c3_112, %c0_113, %c0_114] : memref<3x4x32x8xf32, #tpu.memory_space<vmem>>, vector<1x1x32x8xf32>
    %128 = vector.shape_cast %127 : vector<1x1x32x8xf32> to vector<32x8xf32>
    %cst_115 = arith.constant dense<0.000000e+00> : vector<16x8xf32>
    %129 = tpu.matmul %0, %128, %cst_115 {dimension_numbers = #tpu.dot_dimension_numbers<[1], [0], [0], [1], [0, 0, 1, 1], [], []>} : vector<16x32xf32>, vector<32x8xf32>, vector<16x8xf32> -> vector<16x8xf32>
    %c1_116 = arith.constant 1 : index
    %c3_117 = arith.constant 3 : index
    %c0_118 = arith.constant 0 : index
    %c0_119 = arith.constant 0 : index
    %130 = vector.load %arg2[%c1_116, %c3_117, %c0_118, %c0_119] : memref<3x4x1x8xf32, #tpu.memory_space<vmem>>, vector<1x1x1x8xf32>
    %131 = vector.shape_cast %130 : vector<1x1x1x8xf32> to vector<1x8xf32>
    %132 = vector.broadcast %131 : vector<1x8xf32> to vector<16x8xf32>
    %133 = arith.addf %129, %132 : vector<16x8xf32>
    %c2_120 = arith.constant 2 : index
    %c3_121 = arith.constant 3 : index
    %c0_122 = arith.constant 0 : index
    %c0_123 = arith.constant 0 : index
    %134 = vector.load %arg1[%c2_120, %c3_121, %c0_122, %c0_123] : memref<3x4x32x8xf32, #tpu.memory_space<vmem>>, vector<1x1x32x8xf32>
    %135 = vector.shape_cast %134 : vector<1x1x32x8xf32> to vector<32x8xf32>
    %cst_124 = arith.constant dense<0.000000e+00> : vector<16x8xf32>
    %136 = tpu.matmul %0, %135, %cst_124 {dimension_numbers = #tpu.dot_dimension_numbers<[1], [0], [0], [1], [0, 0, 1, 1], [], []>} : vector<16x32xf32>, vector<32x8xf32>, vector<16x8xf32> -> vector<16x8xf32>
    %c2_125 = arith.constant 2 : index
    %c3_126 = arith.constant 3 : index
    %c0_127 = arith.constant 0 : index
    %c0_128 = arith.constant 0 : index
    %137 = vector.load %arg2[%c2_125, %c3_126, %c0_127, %c0_128] : memref<3x4x1x8xf32, #tpu.memory_space<vmem>>, vector<1x1x1x8xf32>
    %138 = vector.shape_cast %137 : vector<1x1x1x8xf32> to vector<1x8xf32>
    %139 = vector.broadcast %138 : vector<1x8xf32> to vector<16x8xf32>
    %140 = arith.addf %136, %139 : vector<16x8xf32>
    %141 = vector.shape_cast %126 : vector<16x8xf32> to vector<2x8x8xf32>
    %142 = vector.shape_cast %133 : vector<16x8xf32> to vector<2x8x8xf32>
    %143 = vector.shape_cast %140 : vector<16x8xf32> to vector<2x8x8xf32>
    "tpu.trace_start"() <{level = 10 : i32, message = "bqd,bkd->bqk"}> : () -> ()
    %cst_129 = arith.constant dense<0.000000e+00> : vector<2x8x8xf32>
    %144 = tpu.matmul %141, %142, %cst_129 {dimension_numbers = #tpu.dot_dimension_numbers<[2], [2], [1], [1], [0, 0, 0, 1, 1, 1], [0], [0]>} : vector<2x8x8xf32>, vector<2x8x8xf32>, vector<2x8x8xf32> -> vector<2x8x8xf32>
    "tpu.trace_stop"() : () -> ()
    %cst_130 = arith.constant dense<0xFF800000> : vector<2x8xf32>
    %145 = vector.multi_reduction <maximumf>, %144, %cst_130 [2] : vector<2x8x8xf32> to vector<2x8xf32>
    %146 = vector.shape_cast %145 : vector<2x8xf32> to vector<2x8x1xf32>
    %147 = vector.broadcast %146 : vector<2x8x1xf32> to vector<2x8x8xf32>
    %148 = arith.subf %144, %147 : vector<2x8x8xf32>
    %149 = math.exp %148 : vector<2x8x8xf32>
    %cst_131 = arith.constant dense<0.000000e+00> : vector<2x8xf32>
    %150 = vector.multi_reduction <add>, %149, %cst_131 [2] : vector<2x8x8xf32> to vector<2x8xf32>
    %151 = vector.shape_cast %150 : vector<2x8xf32> to vector<2x8x1xf32>
    %152 = vector.broadcast %151 : vector<2x8x1xf32> to vector<2x8x8xf32>
    %153 = arith.divf %149, %152 : vector<2x8x8xf32>
    "tpu.trace_start"() <{level = 10 : i32, message = "bqk,bkd->bqd"}> : () -> ()
    %cst_132 = arith.constant dense<0.000000e+00> : vector<2x8x8xf32>
    %154 = tpu.matmul %153, %143, %cst_132 {dimension_numbers = #tpu.dot_dimension_numbers<[2], [1], [1], [2], [0, 0, 0, 1, 1, 2], [0], [0]>} : vector<2x8x8xf32>, vector<2x8x8xf32>, vector<2x8x8xf32> -> vector<2x8x8xf32>
    "tpu.trace_stop"() : () -> ()
    %155 = vector.shape_cast %154 : vector<2x8x8xf32> to vector<16x8xf32>
    %c3_133 = arith.constant 3 : index
    %c0_134 = arith.constant 0 : index
    %c0_135 = arith.constant 0 : index
    %156 = vector.load %arg3[%c3_133, %c0_134, %c0_135] : memref<4x8x32xf32, #tpu.memory_space<vmem>>, vector<1x8x32xf32>
    %157 = vector.shape_cast %156 : vector<1x8x32xf32> to vector<8x32xf32>
    %cst_136 = arith.constant dense<0.000000e+00> : vector<16x32xf32>
    %158 = tpu.matmul %155, %157, %cst_136 {dimension_numbers = #tpu.dot_dimension_numbers<[1], [0], [0], [1], [0, 0, 1, 1], [], []>} : vector<16x8xf32>, vector<8x32xf32>, vector<16x32xf32> -> vector<16x32xf32>
    %159 = arith.addf %119, %158 : vector<16x32xf32>
    %c0_137 = arith.constant 0 : index
    %c0_138 = arith.constant 0 : index
    %160 = vector.load %arg4[%c0_137, %c0_138] : memref<1x32xf32, #tpu.memory_space<vmem>>, vector<1x32xf32>
    %161 = vector.broadcast %160 : vector<1x32xf32> to vector<16x32xf32>
    %162 = arith.addf %159, %161 : vector<16x32xf32>
    %163 = arith.addf %0, %162 : vector<16x32xf32>
    %c0_139 = arith.constant 0 : index
    %c0_140 = arith.constant 0 : index
    %164 = vector.load %arg5[%c0_139, %c0_140] : memref<1x32xf32, #tpu.memory_space<vmem>>, vector<1x32xf32>
    %c0_141 = arith.constant 0 : index
    %c0_142 = arith.constant 0 : index
    %165 = vector.load %arg6[%c0_141, %c0_142] : memref<1x32xf32, #tpu.memory_space<vmem>>, vector<1x32xf32>
    %cst_143 = arith.constant dense<0.000000e+00> : vector<16xf32>
    %166 = vector.multi_reduction <add>, %163, %cst_143 [1] : vector<16x32xf32> to vector<16xf32>
    %167 = vector.shape_cast %166 : vector<16xf32> to vector<16x1xf32>
    %cst_144 = arith.constant 3.200000e+01 : f32
    %168 = vector.broadcast %cst_144 : f32 to vector<16x1xf32>
    %169 = arith.divf %167, %168 : vector<16x1xf32>
    %170 = vector.broadcast %169 : vector<16x1xf32> to vector<16x32xf32>
    %171 = arith.subf %163, %170 : vector<16x32xf32>
    %172 = arith.mulf %171, %171 : vector<16x32xf32>
    %cst_145 = arith.constant dense<0.000000e+00> : vector<16xf32>
    %173 = vector.multi_reduction <add>, %172, %cst_145 [1] : vector<16x32xf32> to vector<16xf32>
    %174 = vector.shape_cast %173 : vector<16xf32> to vector<16x1xf32>
    %cst_146 = arith.constant 3.200000e+01 : f32
    %175 = vector.broadcast %cst_146 : f32 to vector<16x1xf32>
    %176 = arith.divf %174, %175 : vector<16x1xf32>
    %177 = vector.broadcast %169 : vector<16x1xf32> to vector<16x32xf32>
    %178 = arith.subf %163, %177 : vector<16x32xf32>
    %cst_147 = arith.constant 9.99999974E-6 : f32
    %179 = vector.broadcast %cst_147 : f32 to vector<16x1xf32>
    %180 = arith.addf %176, %179 : vector<16x1xf32>
    %181 = math.rsqrt %180 : vector<16x1xf32>
    %182 = vector.broadcast %181 : vector<16x1xf32> to vector<16x32xf32>
    %183 = arith.mulf %178, %182 : vector<16x32xf32>
    %184 = vector.broadcast %164 : vector<1x32xf32> to vector<16x32xf32>
    %185 = arith.mulf %183, %184 : vector<16x32xf32>
    %186 = vector.broadcast %165 : vector<1x32xf32> to vector<16x32xf32>
    %187 = arith.addf %185, %186 : vector<16x32xf32>
    %c0_148 = arith.constant 0 : index
    %c0_149 = arith.constant 0 : index
    %188 = vector.load %arg7[%c0_148, %c0_149] : memref<32x2048xf32, #tpu.memory_space<vmem>>, vector<32x2048xf32>
    %cst_150 = arith.constant dense<0.000000e+00> : vector<16x2048xf32>
    %189 = tpu.matmul %187, %188, %cst_150 {dimension_numbers = #tpu.dot_dimension_numbers<[1], [0], [0], [1], [0, 0, 1, 1], [], []>} : vector<16x32xf32>, vector<32x2048xf32>, vector<16x2048xf32> -> vector<16x2048xf32>
    %c0_151 = arith.constant 0 : index
    %c0_152 = arith.constant 0 : index
    %190 = vector.load %arg8[%c0_151, %c0_152] : memref<1x2048xf32, #tpu.memory_space<vmem>>, vector<1x2048xf32>
    %191 = vector.broadcast %190 : vector<1x2048xf32> to vector<16x2048xf32>
    %192 = arith.addf %189, %191 : vector<16x2048xf32>
    %cst_153 = arith.constant 5.000000e-01 : f32
    %193 = vector.broadcast %cst_153 : f32 to vector<16x2048xf32>
    %194 = arith.mulf %193, %192 : vector<16x2048xf32>
    %cst_154 = arith.constant 0.707106769 : f32
    %195 = vector.broadcast %cst_154 : f32 to vector<16x2048xf32>
    %196 = arith.mulf %192, %195 : vector<16x2048xf32>
    %cst_155 = arith.constant 0.000000e+00 : f32
    %197 = vector.broadcast %cst_155 : f32 to vector<16x2048xf32>
    %198 = arith.cmpf olt, %196, %197 : vector<16x2048xf32>
    %cst_156 = arith.constant -1.000000e+00 : f32
    %cst_157 = arith.constant 1.000000e+00 : f32
    %199 = vector.broadcast %cst_156 : f32 to vector<16x2048xf32>
    %200 = vector.broadcast %cst_157 : f32 to vector<16x2048xf32>
    %201 = arith.select %198, %199, %200 : vector<16x2048xi1>, vector<16x2048xf32>
    %cst_158 = arith.constant 0.000000e+00 : f32
    %202 = vector.broadcast %cst_158 : f32 to vector<16x2048xf32>
    %203 = arith.cmpf olt, %196, %202 : vector<16x2048xf32>
    %cst_159 = arith.constant 0.000000e+00 : f32
    %204 = vector.broadcast %cst_159 : f32 to vector<16x2048xf32>
    %205 = arith.subf %204, %196 : vector<16x2048xf32>
    %206 = arith.select %203, %205, %196 : vector<16x2048xi1>, vector<16x2048xf32>
    %cst_160 = arith.constant 0.327591091 : f32
    %207 = vector.broadcast %cst_160 : f32 to vector<16x2048xf32>
    %208 = arith.mulf %207, %206 : vector<16x2048xf32>
    %cst_161 = arith.constant 1.000000e+00 : f32
    %209 = vector.broadcast %cst_161 : f32 to vector<16x2048xf32>
    %210 = arith.addf %209, %208 : vector<16x2048xf32>
    %cst_162 = arith.constant 1.000000e+00 : f32
    %211 = vector.broadcast %cst_162 : f32 to vector<16x2048xf32>
    %212 = arith.divf %211, %210 : vector<16x2048xf32>
    %cst_163 = arith.constant 1.06140542 : f32
    %213 = vector.broadcast %cst_163 : f32 to vector<16x2048xf32>
    %214 = arith.mulf %213, %212 : vector<16x2048xf32>
    %cst_164 = arith.constant -1.45315206 : f32
    %215 = vector.broadcast %cst_164 : f32 to vector<16x2048xf32>
    %216 = arith.addf %214, %215 : vector<16x2048xf32>
    %217 = arith.mulf %216, %212 : vector<16x2048xf32>
    %cst_165 = arith.constant 1.42141378 : f32
    %218 = vector.broadcast %cst_165 : f32 to vector<16x2048xf32>
    %219 = arith.addf %217, %218 : vector<16x2048xf32>
    %220 = arith.mulf %219, %212 : vector<16x2048xf32>
    %cst_166 = arith.constant -0.284496725 : f32
    %221 = vector.broadcast %cst_166 : f32 to vector<16x2048xf32>
    %222 = arith.addf %220, %221 : vector<16x2048xf32>
    %223 = arith.mulf %222, %212 : vector<16x2048xf32>
    %cst_167 = arith.constant 0.254829586 : f32
    %224 = vector.broadcast %cst_167 : f32 to vector<16x2048xf32>
    %225 = arith.addf %223, %224 : vector<16x2048xf32>
    %226 = arith.mulf %225, %212 : vector<16x2048xf32>
    %cst_168 = arith.constant 0.000000e+00 : f32
    %227 = vector.broadcast %cst_168 : f32 to vector<16x2048xf32>
    %228 = arith.subf %227, %206 : vector<16x2048xf32>
    %229 = arith.mulf %228, %206 : vector<16x2048xf32>
    %230 = math.exp %229 : vector<16x2048xf32>
    %231 = arith.mulf %226, %230 : vector<16x2048xf32>
    %cst_169 = arith.constant 1.000000e+00 : f32
    %232 = vector.broadcast %cst_169 : f32 to vector<16x2048xf32>
    %233 = arith.subf %232, %231 : vector<16x2048xf32>
    %234 = arith.mulf %201, %233 : vector<16x2048xf32>
    %cst_170 = arith.constant 1.000000e+00 : f32
    %235 = vector.broadcast %cst_170 : f32 to vector<16x2048xf32>
    %236 = arith.addf %235, %234 : vector<16x2048xf32>
    %237 = arith.mulf %194, %236 : vector<16x2048xf32>
    %c0_171 = arith.constant 0 : index
    %c0_172 = arith.constant 0 : index
    %238 = vector.load %arg9[%c0_171, %c0_172] : memref<2048x32xf32, #tpu.memory_space<vmem>>, vector<2048x32xf32>
    %cst_173 = arith.constant dense<0.000000e+00> : vector<16x32xf32>
    %239 = tpu.matmul %237, %238, %cst_173 {dimension_numbers = #tpu.dot_dimension_numbers<[1], [0], [0], [1], [0, 0, 1, 1], [], []>} : vector<16x2048xf32>, vector<2048x32xf32>, vector<16x32xf32> -> vector<16x32xf32>
    %c0_174 = arith.constant 0 : index
    %c0_175 = arith.constant 0 : index
    %240 = vector.load %arg10[%c0_174, %c0_175] : memref<1x32xf32, #tpu.memory_space<vmem>>, vector<1x32xf32>
    %241 = vector.broadcast %240 : vector<1x32xf32> to vector<16x32xf32>
    %242 = arith.addf %239, %241 : vector<16x32xf32>
    %243 = arith.addf %187, %242 : vector<16x32xf32>
    %c0_176 = arith.constant 0 : index
    %c0_177 = arith.constant 0 : index
    %244 = vector.load %arg11[%c0_176, %c0_177] : memref<1x32xf32, #tpu.memory_space<vmem>>, vector<1x32xf32>
    %c0_178 = arith.constant 0 : index
    %c0_179 = arith.constant 0 : index
    %245 = vector.load %arg12[%c0_178, %c0_179] : memref<1x32xf32, #tpu.memory_space<vmem>>, vector<1x32xf32>
    %cst_180 = arith.constant dense<0.000000e+00> : vector<16xf32>
    %246 = vector.multi_reduction <add>, %243, %cst_180 [1] : vector<16x32xf32> to vector<16xf32>
    %247 = vector.shape_cast %246 : vector<16xf32> to vector<16x1xf32>
    %cst_181 = arith.constant 3.200000e+01 : f32
    %248 = vector.broadcast %cst_181 : f32 to vector<16x1xf32>
    %249 = arith.divf %247, %248 : vector<16x1xf32>
    %250 = vector.broadcast %249 : vector<16x1xf32> to vector<16x32xf32>
    %251 = arith.subf %243, %250 : vector<16x32xf32>
    %252 = arith.mulf %251, %251 : vector<16x32xf32>
    %cst_182 = arith.constant dense<0.000000e+00> : vector<16xf32>
    %253 = vector.multi_reduction <add>, %252, %cst_182 [1] : vector<16x32xf32> to vector<16xf32>
    %254 = vector.shape_cast %253 : vector<16xf32> to vector<16x1xf32>
    %cst_183 = arith.constant 3.200000e+01 : f32
    %255 = vector.broadcast %cst_183 : f32 to vector<16x1xf32>
    %256 = arith.divf %254, %255 : vector<16x1xf32>
    %257 = vector.broadcast %249 : vector<16x1xf32> to vector<16x32xf32>
    %258 = arith.subf %243, %257 : vector<16x32xf32>
    %cst_184 = arith.constant 9.99999974E-6 : f32
    %259 = vector.broadcast %cst_184 : f32 to vector<16x1xf32>
    %260 = arith.addf %256, %259 : vector<16x1xf32>
    %261 = math.rsqrt %260 : vector<16x1xf32>
    %262 = vector.broadcast %261 : vector<16x1xf32> to vector<16x32xf32>
    %263 = arith.mulf %258, %262 : vector<16x32xf32>
    %264 = vector.broadcast %244 : vector<1x32xf32> to vector<16x32xf32>
    %265 = arith.mulf %263, %264 : vector<16x32xf32>
    %266 = vector.broadcast %245 : vector<1x32xf32> to vector<16x32xf32>
    %267 = arith.addf %265, %266 : vector<16x32xf32>
    %c0_185 = arith.constant 0 : index
    %c0_186 = arith.constant 0 : index
    %268 = vector.load %arg13[%c0_185, %c0_186] : memref<16x32xf32, #tpu.memory_space<vmem>>, vector<16x32xf32>
    tpu.vector_store %arg13[%c0_185, %c0_186], %267 {strides = array<i32>} : memref<16x32xf32, #tpu.memory_space<vmem>>, vector<16x32xf32>,
    return
  }
}

</mosaic_0001>

<bundles_post_ra>
// kernel: central_encoder_forward.1
= control target key start
LH: loop header
LB: loop body
LE: loop exit
PB: predicated region body
PF: predicated region fallthrough
CT: control target
= control target key end

     0   :  { %s8946_s0 = inlined_call_operand.vmem [shape: f32[16,32], index: 0, kind: input, shape index: {}]   ;;  %s8947_s1 = inlined_call_operand.vmem [shape: f32[3,4,32,8], index: 1, kind: input, shape index: {}]   ;;  %s8948_s2 = inlined_call_operand.vmem [shape: f32[3,4,1,8], index: 2, kind: input, shape index: {}]   ;;  %s8949_s3 = inlined_call_operand.vmem [shape: f32[4,8,32], index: 3, kind: input, shape index: {}]   ;;  %s8950_s4 = inlined_call_operand.vmem [shape: f32[1,32], index: 4, kind: input, shape index: {}]   ;;  %s8951_s5 = inlined_call_operand.vmem [shape: f32[1,32], index: 5, kind: input, shape index: {}]   ;;  %s8952_s6 = inlined_call_operand.vmem [shape: f32[1,32], index: 6, kind: input, shape index: {}]   ;;  %s8953_s7 = inlined_call_operand.vmem [shape: f32[32,2048], index: 7, kind: input, shape index: {}]   ;;  %s8954_s8 = inlined_call_operand.vmem [shape: f32[1,2048], index: 8, kind: input, shape index: {}]   ;;  %s8955_s9 = inlined_call_operand.vmem [shape: f32[2048,32], index: 9, kind: input, shape index: {}]   ;;  %s8956_s10 = inlined_call_operand.vmem [shape: f32[1,32], index: 10, kind: input, shape index: {}]   ;;  %s8957_s11 = inlined_call_operand.vmem [shape: f32[1,32], index: 11, kind: input, shape index: {}]   ;;  %s8958_s12 = inlined_call_operand.vmem [shape: f32[1,32], index: 12, kind: input, shape index: {}]   ;;  %s8959_s13 = inlined_call_operand.hbm [shape: f32[16,32], index: 13, kind: output, shape index: {}]  }
   0x1   :  { %v5379_v0 = vld [vmem:[%s8947_s1 + $0x98] sm:$0xff]  ;;  %v5378_v2 = vld [vmem:[%s8947_s1 + $0x90] sm:$0xff]  ;;  %v5377_v4 = vld [vmem:[%s8947_s1 + $0x88] sm:$0xff] }
   0x2   :  { %v50_v1 = vld [vmem:[%s8947_s1 + $0x18] sm:$0xff]  ;;  %5952 = vmatprep.subr.mxu1 %v5379_v0  ;;  %v49_v3 = vld [vmem:[%s8947_s1 + $0x10] sm:$0xff]  ;;  %v48_v5 = vld [vmem:[%s8947_s1 + $0x8] sm:$0xff] }
   0x3   :  { %5941 = vmatprep.subr.mxu0 %v50_v1  ;;  %5953 = vmatpush3.msra.mxu1 %v5379_v0 }
   0x4   :  { %5942 = vmatpush3.msra.mxu0 %v50_v1  ;;  %5954 = vmatprep.subr.mxu1 %v5378_v2 }
   0x5   :  { %5943 = vmatprep.subr.mxu0 %v49_v3 }
   0x6   :  { %18 = vsyncpa [#allocation3], 0  ;;  %5955 = vmatpush3.msra.mxu1 %v5378_v2  ;;  %5944 = vmatpush3.msra.mxu0 %v49_v3  ;;  %v5376_v6 = vld [vmem:[%s8947_s1 + $0x80] sm:$0xff]  ;;  %vm8974_vm0 = vcmask 261120   ;;  %v6477_v9 = vld [vmem:[%s8946_s0 + $0x8] sm:$0xff]  ;;  %v6369_v10 = vmov 0.0  }
   0x7   :  { %v47_v7 = vld [vmem:[%s8947_s1] sm:$0xff]  ;;  %5956 = vmatprep.subr.mxu1 %v5377_v4  ;;  %5945 = vmatprep.subr.mxu0 %v48_v5  ;;  %vm6370_vm1 = vmmov 0   ;;  %vm316_vm2 = vcmask 64512   ;;  %v5387_v21 = vld [vmem:[%s8947_s1 + $0x118] sm:$0xff]  ;;  %v5386_v22 = vld [vmem:[%s8947_s1 + $0x110] sm:$0xff] }
   0x8   :  { %v6472_v8 = vld [vmem:[%s8946_s0] sm:$0xff]  ;;  %5957 = vmatpush3.msra.mxu1 %v5377_v4  ;;  %5946 = vmatpush3.msra.mxu0 %v48_v5  ;;  %v5385_v23 = vld [vmem:[%s8947_s1 + $0x108] sm:$0xff]  ;;  %v5409_v44 = vld [vmem:[%s8947_s1 + $0xb8] sm:$0xff] }
   0x9   :  { %5958 = vmatprep.subr.mxu1 %v5376_v6  ;;  %5947 = vmatprep.subr.mxu0 %v47_v7  ;;  %v5381_v13 = vld [vmem:[%s8948_s2 + $0x4] ss:$0 sm:$0xff]  ;;  %v5373_v15 = vld [vmem:[%s8948_s2] ss:$0 sm:$0xff]  ;;  %v5389_v42 = vld [vmem:[%s8948_s2 + $0x8] ss:$0 sm:$0xff] }
   0xa   :  { %5959 = vmatpush3.msra.mxu1 %v5376_v6  ;;  %5960 = vmatprep.mubr.msk.f32.mxu1 %vm8974_vm0, %v6472_v8  ;;  %v5384_v24 = vld [vmem:[%s8947_s1 + $0x100] sm:$0xff]  ;;  %v5401_v47 = vld [vmem:[%s8947_s1 + $0x38] sm:$0xff]  ;;  %v5408_v52 = vld [vmem:[%s8947_s1 + $0xb0] sm:$0xff] }
   0xb   :  { %5948 = vmatpush3.msra.mxu0 %v47_v7  ;;  %5949 = vmatprep.mubr.msk.f32.mxu0 %vm8974_vm0, %v6472_v8  ;;  %v5407_v54 = vld [vmem:[%s8947_s1 + $0xa8] sm:$0xff]  ;;  %v5400_v56 = vld [vmem:[%s8947_s1 + $0x30] sm:$0xff]  ;;  %v5406_v57 = vld [vmem:[%s8947_s1 + $0xa0] sm:$0xff] }
   0xc   :  { %5961 = vmatmul.mubr.msk.f32.vlgmr.msra.gmra.mxu1 %vm8974_vm0, %v6477_v9  ;;  %5950 = vmatmul.mubr.msk.f32.vlgmr.msra.gmra.mxu0 %vm8974_vm0, %v6477_v9  ;;  %v5399_v58 = vld [vmem:[%s8947_s1 + $0x28] sm:$0xff]  ;;  %v5398_v59 = vld [vmem:[%s8947_s1 + $0x20] sm:$0xff] }
   0xd   :  { %5971 = vmatprep.mubr.msk.f32.mxu0 %vm8974_vm0, %v6472_v8  ;;  %5974 = vmatprep.subr.mxu1 %v6369_v10  ;;  %v5411_v1 = vld [vmem:[%s8948_s2 + $0x5] ss:$0 sm:$0xff]  ;;  %v5403_v5 = vld [vmem:[%s8948_s2 + $0x1] ss:$0 sm:$0xff] }
   0xe   :  { %5976 = vmatprep.mubr.msk.f32.mxu1 %vm6370_vm1, %v6369_v10  ;;  %5963 = vmatprep.subr.mxu0 %v5387_v21 }
   0xf   :  { %5964 = vmatpush3.msra.mxu0 %v5387_v21 }
  0x10   :  { %5965 = vmatprep.subr.mxu0 %v5386_v22 }
  0x11   :  { %5966 = vmatpush3.msra.mxu0 %v5386_v22 }
  0x12   :  { %5967 = vmatprep.subr.mxu0 %v5385_v23 }
  0x13   :  { %5968 = vmatpush3.msra.mxu0 %v5385_v23 }
  0x14   :  { %5969 = vmatprep.subr.mxu0 %v5384_v24 }
  0x15   :  { %5970 = vmatpush3.msra.mxu0 %v5384_v24 }
  0x16   :  { %5972 = vmatmul.mubr.msk.f32.vlgmr.msra.gmra.mxu0 %vm8974_vm0, %v6477_v9  ;;  %5984 = vmatprep.subr.mxu0 %v6369_v10 }
  0x17   :  { %5986 = vmatprep.mubr.msk.f32.mxu0 %vm6370_vm1, %v6369_v10 }
  0xcc   :  { %v5962_v11 = vpop.f32.mrf.mxu1  ;;  %v5951_v12 = vpop.f32.mrf.mxu0 }
  0xcd   :  { %v225_v19 = vadd.f32 %v5962_v11, %v5381_v13  ;;  %v137_v20 = vadd.f32 %v5951_v12, %v5373_v15 }
  0xce   :  { %v219_v14 = vpop.f32.mrf.mxu1  ;;  %v131_v17 = vpop.f32.mrf.mxu0 }
  0xcf   :  { %v220_v16 = vadd.f32 %v5381_v13, %v219_v14  ;;  %v132_v18 = vadd.f32 %v5373_v15, %v131_v17  ;;  %v5417_v13 = vld [vmem:[%s8947_s1 + $0x138] sm:$0xff]  ;;  %v5416_v14 = vld [vmem:[%s8947_s1 + $0x130] sm:$0xff]  ;;  %v5415_v15 = vld [vmem:[%s8947_s1 + $0x128] sm:$0xff] }
  0xd1   :  { %5975 = vmatpush3.xpose.msk.msra.mxu1 %vm316_vm2, %v220_v16  ;;  %v5414_v16 = vld [vmem:[%s8947_s1 + $0x120] sm:$0xff] }
  0xd2   :  { %5979 = vmatprep.subr.mxu1 %v6369_v10 }
  0xd4   :  { %5977 = vmatmul.mubr.msk.f32.vlgmr.msra.gmra.mxu1 %vm316_vm2, %v132_v18 }
  0xd5   :  { %5980 = vmatpush3.xpose.msk.msra.mxu1 %vm316_vm2, %v225_v19  ;;  %5981 = vmatprep.mubr.msk.f32.mxu1 %vm6370_vm1, %v6369_v10 }
  0xd6   :  { %5989 = vmatprep.subr.mxu1 %v6369_v10  ;;  %v5973_v41 = vpop.f32.mrf.mxu0 }
  0xd7   :  { %v313_v43 = vadd.f32 %v5973_v41, %v5389_v42 }
  0xd8   :  { %5982 = vmatmul.mubr.msk.f32.vlgmr.msra.gmra.mxu1 %vm316_vm2, %v137_v20  ;;  %v307_v45 = vpop.f32.mrf.mxu0 }
  0xd9   :  { %5991 = vmatprep.mubr.msk.f32.mxu1 %vm6370_vm1, %v6369_v10  ;;  %v308_v46 = vadd.f32 %v5389_v42, %v307_v45  ;;  %5990 = vmatpush3.msra.mxu1 %v313_v43  ;;  %v5444_v45 = vld [vmem:[%s8947_s1 + $0xd8] sm:$0xff] }
  0xda   :  { %6005 = vmatprep.subr.mxu1 %v5409_v44 }
  0xdb   :  { %5985 = vmatpush3.msra.mxu0 %v308_v46  ;;  %v5428_v46 = vld [vmem:[%s8949_s3 + $0x8] sm:$0xff] }
  0xdc   :  { %5994 = vmatprep.subr.mxu0 %v5401_v47 }
 0x194   :  { %v389_v25 = vpop.f32.mrf.mxu1 }
 0x195   :  { %v469_v30 = vsel %vm316_vm2, %v389_v25, -inf }
 0x196   :  { %v5978_v26 = vpop.f32.mrf.mxu1 }
 0x198   :  { %v465_v27 = vpop.f32.mrf.mxu1 }
 0x199   :  { %v472_v28 = vsel %vm316_vm2, %v465_v27, -inf }
 0x19a   :  { %473 = vmax.xlane.f32.xlu0 %v472_v28  ;;  %v5983_v29 = vpop.f32.mrf.mxu1 }
 0x19e   :  { %470 = vmax.xlane.f32.xlu0 %v469_v30 }
 0x223   :  { %v474_v31 = vpop.xlane.xlu0 %473 }
 0x224   :  { %v476_v32 = vsub.f32 %v465_v27, %v474_v31 }
 0x226   :  { %v479_v33 = vmul.f32 1.442695, %v476_v32 }
 0x227   :  { %v471_v34 = vpop.xlane.xlu0 %470 }
 0x228   :  { %6179 = vpow2.f32 %v479_v33  ;;  %v475_v35 = vsub.f32 %v389_v25, %v471_v34  ;;  %v5419_v34 = vld [vmem:[%s8948_s2 + $0x9] ss:$0 sm:$0xff] }
 0x22a   :  { %v477_v36 = vmul.f32 1.442695, %v475_v35 }
 0x22c   :  { %6181 = vpow2.f32 %v477_v36 }
 0x235   :  { %v6180_v37 = vpop.eup %6179 }
 0x236   :  { %v484_v38 = vsel %vm316_vm2, %v6180_v37, 0.0 }
 0x237   :  { %485 = vadd.xlane.f32.xlu1 %v484_v38  ;;  %v637_v38 = vld [vmem:[%s8949_s3] sm:$0xff] }
 0x239   :  { %v6182_v39 = vpop.eup %6181 }
 0x23a   :  { %v481_v40 = vsel %vm316_vm2, %v6182_v39, 0.0 }
 0x23b   :  { %482 = vadd.xlane.f32.xlu1 %v481_v40 }
 0x2c0   :  { %v486_v48 = vpop.xlane.xlu1 %485 }
 0x2c1   :  { %6183 = vrcp.f32 %v486_v48  ;;  %v5442_v48 = vld [vmem:[%s8947_s1 + $0xc8] sm:$0xff] }
 0x2c4   :  { %v483_v49 = vpop.xlane.xlu1 %482 }
 0x2c5   :  { %6185 = vrcp.f32 %v483_v49  ;;  %v5436_v49 = vld [vmem:[%s8947_s1 + $0x58] sm:$0xff] }
 0x2ce   :  { %v6184_v50 = vpop.eup %6183 }
 0x2cf   :  { %v490_v51 = vmul.f32 %v6184_v50, %v6180_v37  ;;  %v5441_v50 = vld [vmem:[%s8947_s1 + $0xc0] sm:$0xff] }
 0x2d1   :  { %5992 = vmatmul.mubr.msk.f32.vlgmr.msra.gmra.mxu1 %vm316_vm2, %v490_v51 }
 0x2d2   :  { %v6186_v53 = vpop.eup %6185  ;;  %6006 = vmatpush3.msra.mxu1 %v5409_v44  ;;  %6013 = vmatprep.mubr.msk.f32.mxu1 %vm8974_vm0, %v6472_v8 }
 0x2d3   :  { %6007 = vmatprep.subr.mxu1 %v5408_v52  ;;  %v488_v55 = vmul.f32 %v6186_v53, %v6182_v39 }
 0x2d4   :  { %6008 = vmatpush3.msra.mxu1 %v5408_v52 }
 0x2d5   :  { %6009 = vmatprep.subr.mxu1 %v5407_v54  ;;  %5987 = vmatmul.mubr.msk.f32.vlgmr.msra.gmra.mxu0 %vm316_vm2, %v488_v55 }
 0x2d6   :  { %5995 = vmatpush3.msra.mxu0 %v5401_v47  ;;  %6010 = vmatpush3.msra.mxu1 %v5407_v54  ;;  %v5443_v47 = vld [vmem:[%s8947_s1 + $0xd0] sm:$0xff] }
 0x2d7   :  { %5996 = vmatprep.subr.mxu0 %v5400_v56  ;;  %6011 = vmatprep.subr.mxu1 %v5406_v57  ;;  %v5435_v54 = vld [vmem:[%s8947_s1 + $0x50] sm:$0xff] }
 0x2d8   :  { %5997 = vmatpush3.msra.mxu0 %v5400_v56  ;;  %6012 = vmatpush3.msra.mxu1 %v5406_v57  ;;  %v5434_v56 = vld [vmem:[%s8947_s1 + $0x48] sm:$0xff]  ;;  %v5433_v57 = vld [vmem:[%s8947_s1 + $0x40] sm:$0xff] }
 0x2d9   :  { %5998 = vmatprep.subr.mxu0 %v5399_v58  ;;  %6014 = vmatmul.mubr.msk.f32.vlgmr.msra.gmra.mxu1 %vm8974_vm0, %v6477_v9 }
 0x2da   :  { %5999 = vmatpush3.msra.mxu0 %v5399_v58  ;;  %6002 = vmatprep.mubr.msk.f32.mxu0 %vm8974_vm0, %v6472_v8 }
 0x2db   :  { %6000 = vmatprep.subr.mxu0 %v5398_v59  ;;  %6027 = vmatprep.subr.mxu1 %v6369_v10 }
 0x2dc   :  { %6001 = vmatpush3.msra.mxu0 %v5398_v59  ;;  %6029 = vmatprep.mubr.msk.f32.mxu1 %vm6370_vm1, %v6369_v10 }
 0x2dd   :  { %6003 = vmatmul.mubr.msk.f32.vlgmr.msra.gmra.mxu0 %vm8974_vm0, %v6477_v9  ;;  %6016 = vmatprep.subr.mxu0 %v5417_v13 }
 0x2de   :  { %6024 = vmatprep.mubr.msk.f32.mxu0 %vm8974_vm0, %v6472_v8  ;;  %6017 = vmatpush3.msra.mxu0 %v5417_v13  ;;  %v5450_v13 = vld [vmem:[%s8947_s1 + $0x148] sm:$0xff] }
 0x2df   :  { %6018 = vmatprep.subr.mxu0 %v5416_v14 }
 0x2e0   :  { %6019 = vmatpush3.msra.mxu0 %v5416_v14  ;;  %v5449_v14 = vld [vmem:[%s8947_s1 + $0x140] sm:$0xff] }
 0x2e1   :  { %6020 = vmatprep.subr.mxu0 %v5415_v15 }
 0x2e2   :  { %6021 = vmatpush3.msra.mxu0 %v5415_v15 }
 0x2e3   :  { %6022 = vmatprep.subr.mxu0 %v5414_v16 }
 0x2e4   :  { %6023 = vmatpush3.msra.mxu0 %v5414_v16 }
 0x2e5   :  { %6025 = vmatmul.mubr.msk.f32.vlgmr.msra.gmra.mxu0 %vm8974_vm0, %v6477_v9  ;;  %6037 = vmatprep.subr.mxu0 %v6369_v10 }
 0x2e6   :  { %6039 = vmatprep.mubr.msk.f32.mxu0 %vm6370_vm1, %v6369_v10 }
 0x391   :  { %v6571_v60 = vpop.f32.mrf.mxu1 }
 0x393   :  { %v5993_v61 = vpop.f32.mrf.mxu1 }
 0x394   :  { %v5446_v61 = vld [vmem:[%s8948_s2 + $0x6] ss:$0 sm:$0xff] }
 0x395   :  { %v6573_v62 = vpop.f32.mrf.mxu0 }
 0x397   :  { %v5988_v63 = vpop.f32.mrf.mxu0 }
 0x399   :  { %v6015_v0 = vpop.f32.mrf.mxu1 }
 0x39a   :  { %v811_v11 = vadd.f32 %v6015_v0, %v5411_v1 }
 0x39b   :  { %v805_v2 = vpop.f32.mrf.mxu1 }
 0x39c   :  { %v806_v3 = vadd.f32 %v5411_v1, %v805_v2 }
 0x39d   :  { %v6004_v4 = vpop.f32.mrf.mxu0 }
 0x39e   :  { %6028 = vmatpush3.xpose.msk.msra.mxu1 %vm316_vm2, %v806_v3  ;;  %v723_v12 = vadd.f32 %v6004_v4, %v5403_v5  ;;  %v5438_v4 = vld [vmem:[%s8948_s2 + $0x2] ss:$0 sm:$0xff] }
 0x39f   :  { %v717_v6 = vpop.f32.mrf.mxu0  ;;  %6032 = vmatprep.subr.mxu1 %v6369_v10 }
 0x3a0   :  { %v718_v7 = vadd.f32 %v5403_v5, %v717_v6 }
 0x3a2   :  { %6030 = vmatmul.mubr.msk.f32.vlgmr.msra.gmra.mxu1 %vm316_vm2, %v718_v7 }
 0x3a3   :  { %6033 = vmatpush3.xpose.msk.msra.mxu1 %vm316_vm2, %v811_v11  ;;  %6034 = vmatprep.mubr.msk.f32.mxu1 %vm6370_vm1, %v6369_v10  ;;  %v5452_v11 = vld [vmem:[%s8947_s1 + $0x158] sm:$0xff] }
 0x3a4   :  { %6042 = vmatprep.subr.mxu1 %v6369_v10 }
 0x3a5   :  { %v6026_v33 = vpop.f32.mrf.mxu0 }
 0x3a6   :  { %6035 = vmatmul.mubr.msk.f32.vlgmr.msra.gmra.mxu1 %vm316_vm2, %v723_v12  ;;  %v899_v35 = vadd.f32 %v6026_v33, %v5419_v34  ;;  %v5451_v12 = vld [vmem:[%s8947_s1 + $0x150] sm:$0xff] }
 0x3a7   :  { %6044 = vmatprep.mubr.msk.f32.mxu1 %vm6370_vm1, %v6369_v10  ;;  %v893_v36 = vpop.f32.mrf.mxu0 }
 0x3a8   :  { %v894_v37 = vadd.f32 %v5419_v34, %v893_v36  ;;  %6043 = vmatpush3.msra.mxu1 %v899_v35 }
 0x3a9   :  { %6052 = vmatprep.subr.mxu1 %v637_v38 }
 0x3aa   :  { %6038 = vmatpush3.msra.mxu0 %v894_v37 }
 0x3ab   :  { %6047 = vmatprep.subr.mxu0 %v5428_v46 }
 0x462   :  { %v974_v17 = vpop.f32.mrf.mxu1 }
 0x463   :  { %v1054_v18 = vsel %vm316_vm2, %v974_v17, -inf }
 0x464   :  { %1055 = vmax.xlane.f32.xlu0 %v1054_v18  ;;  %v6031_v19 = vpop.f32.mrf.mxu1 }
 0x466   :  { %v1050_v20 = vpop.f32.mrf.mxu1 }
 0x467   :  { %v1057_v21 = vsel %vm316_vm2, %v1050_v20, -inf }
 0x468   :  { %1058 = vmax.xlane.f32.xlu1 %v1057_v21  ;;  %v6036_v22 = vpop.f32.mrf.mxu1 }
 0x4ed   :  { %v1056_v23 = vpop.xlane.xlu0 %1055 }
 0x4ee   :  { %v1060_v24 = vsub.f32 %v974_v17, %v1056_v23 }
 0x4f0   :  { %v1062_v25 = vmul.f32 1.442695, %v1060_v24 }
 0x4f1   :  { %v1059_v26 = vpop.xlane.xlu1 %1058 }
 0x4f2   :  { %6187 = vpow2.f32 %v1062_v25  ;;  %v1061_v27 = vsub.f32 %v1050_v20, %v1059_v26 }
 0x4f4   :  { %v1064_v28 = vmul.f32 1.442695, %v1061_v27 }
 0x4f6   :  { %6189 = vpow2.f32 %v1064_v28 }
 0x4ff   :  { %v6188_v29 = vpop.eup %6187 }
 0x500   :  { %v1066_v30 = vsel %vm316_vm2, %v6188_v29, 0.0 }
 0x501   :  { %1067 = vadd.xlane.f32.xlu0 %v1066_v30 }
 0x503   :  { %v6190_v31 = vpop.eup %6189 }
 0x504   :  { %v1069_v32 = vsel %vm316_vm2, %v6190_v31, 0.0 }
 0x505   :  { %1070 = vadd.xlane.f32.xlu1 %v1069_v32  ;;  %v5454_v32 = vld [vmem:[%s8948_s2 + $0xa] ss:$0 sm:$0xff] }
 0x58a   :  { %v1068_v39 = vpop.xlane.xlu0 %1067 }
 0x58b   :  { %6191 = vrcp.f32 %v1068_v39 }
 0x58e   :  { %v1071_v40 = vpop.xlane.xlu1 %1070 }
 0x58f   :  { %6193 = vrcp.f32 %v1071_v40 }
 0x598   :  { %v6192_v41 = vpop.eup %6191 }
 0x599   :  { %v1073_v42 = vmul.f32 %v6192_v41, %v6188_v29 }
 0x59b   :  { %6040 = vmatmul.mubr.msk.f32.vlgmr.msra.gmra.mxu0 %vm316_vm2, %v1073_v42  ;;  %v5463_v42 = vld [vmem:[%s8949_s3 + $0x10] sm:$0xff] }
 0x59c   :  { %v6194_v43 = vpop.eup %6193  ;;  %6048 = vmatpush3.msra.mxu0 %v5428_v46  ;;  %v5467_v46 = vld [vmem:[%s8947_s1 + $0x68] sm:$0xff] }
 0x59d   :  { %v1075_v44 = vmul.f32 %v6194_v43, %v6190_v31  ;;  %6057 = vmatprep.subr.mxu0 %v5436_v49  ;;  %v5477_v43 = vld [vmem:[%s8947_s1 + $0xf8] sm:$0xff] }
 0x59f   :  { %6045 = vmatmul.mubr.msk.f32.vlgmr.msra.gmra.mxu1 %vm316_vm2, %v1075_v44  ;;  %v5469_v44 = vld [vmem:[%s8947_s1 + $0x78] sm:$0xff] }
 0x5a0   :  { %6054 = vmatprep.mubr.msk.f32.mxu1 %vm316_vm2, %v6573_v62  ;;  %6053 = vmatpush3.msra.mxu1 %v637_v38 }
 0x5a1   :  { %6068 = vmatprep.subr.mxu1 %v5444_v45 }
 0x5a3   :  { %6055 = vmatmul.mubr.msk.f32.vlgmr.msra.gmra.mxu1 %vm316_vm2, %v6571_v60 }
 0x5a4   :  { %6069 = vmatpush3.msra.mxu1 %v5444_v45  ;;  %6076 = vmatprep.mubr.msk.f32.mxu1 %vm8974_vm0, %v6472_v8  ;;  %v5468_v45 = vld [vmem:[%s8947_s1 + $0x70] sm:$0xff] }
 0x5a5   :  { %6070 = vmatprep.subr.mxu1 %v5443_v47 }
 0x5a6   :  { %6071 = vmatpush3.msra.mxu1 %v5443_v47  ;;  %v5466_v47 = vld [vmem:[%s8947_s1 + $0x60] sm:$0xff] }
 0x5a7   :  { %6072 = vmatprep.subr.mxu1 %v5442_v48 }
 0x5a8   :  { %6073 = vmatpush3.msra.mxu1 %v5442_v48 }
 0x5a9   :  { %6074 = vmatprep.subr.mxu1 %v5441_v50 }
 0x5aa   :  { %6075 = vmatpush3.msra.mxu1 %v5441_v50 }
 0x5ab   :  { %6077 = vmatmul.mubr.msk.f32.vlgmr.msra.gmra.mxu1 %vm8974_vm0, %v6477_v9  ;;  %6090 = vmatprep.subr.mxu1 %v6369_v10 }
 0x5ac   :  { %6092 = vmatprep.mubr.msk.f32.mxu1 %vm6370_vm1, %v6369_v10 }
 0x65b   :  { %v1145_v51 = vpop.f32.mrf.mxu0 }
 0x65c   :  { %6049 = vmatprep.mubr.msk.f32.mxu0 %vm316_vm2, %v1145_v51  ;;  %v5476_v51 = vld [vmem:[%s8947_s1 + $0xf0] sm:$0xff] }
 0x65d   :  { %v6041_v52 = vpop.f32.mrf.mxu0 }
 0x65f   :  { %v1218_v53 = vpop.f32.mrf.mxu1 }
 0x660   :  { %6050 = vmatmul.mubr.msk.f32.vlgmr.msra.gmra.mxu0 %vm316_vm2, %v1218_v53  ;;  %v5475_v53 = vld [vmem:[%s8947_s1 + $0xe8] sm:$0xff] }
 0x661   :  { %6058 = vmatpush3.msra.mxu0 %v5436_v49  ;;  %v6046_v55 = vpop.f32.mrf.mxu1  ;;  %6065 = vmatprep.mubr.msk.f32.mxu0 %vm8974_vm0, %v6472_v8 }
 0x662   :  { %6059 = vmatprep.subr.mxu0 %v5435_v54 }
 0x663   :  { %6060 = vmatpush3.msra.mxu0 %v5435_v54  ;;  %v6666_v58 = vpop.f32.mrf.mxu1  ;;  %v5474_v54 = vld [vmem:[%s8947_s1 + $0xe0] sm:$0xff] }
 0x664   :  { %6061 = vmatprep.subr.mxu0 %v5434_v56 }
 0x665   :  { %6062 = vmatpush3.msra.mxu0 %v5434_v56  ;;  %v6668_v59 = vpop.f32.mrf.mxu1 }
 0x666   :  { %6063 = vmatprep.subr.mxu0 %v5433_v57 }
 0x667   :  { %6064 = vmatpush3.msra.mxu0 %v5433_v57 }
 0x668   :  { %6066 = vmatmul.mubr.msk.f32.vlgmr.msra.gmra.mxu0 %vm8974_vm0, %v6477_v9  ;;  %6079 = vmatprep.subr.mxu0 %v5452_v11 }
 0x669   :  { %6087 = vmatprep.mubr.msk.f32.mxu0 %vm8974_vm0, %v6472_v8  ;;  %6080 = vmatpush3.msra.mxu0 %v5452_v11  ;;  %v5484_v11 = vld [vmem:[%s8947_s1 + $0x170] sm:$0xff] }
 0x66a   :  { %6081 = vmatprep.subr.mxu0 %v5451_v12 }
 0x66b   :  { %v6078_v60 = vpop.f32.mrf.mxu1  ;;  %6082 = vmatpush3.msra.mxu0 %v5451_v12  ;;  %v5483_v12 = vld [vmem:[%s8947_s1 + $0x168] sm:$0xff] }
 0x66c   :  { %v1559_v62 = vadd.f32 %v6078_v60, %v5446_v61  ;;  %6083 = vmatprep.subr.mxu0 %v5450_v13 }
 0x66d   :  { %v1553_v63 = vpop.f32.mrf.mxu1  ;;  %6084 = vmatpush3.msra.mxu0 %v5450_v13  ;;  %v5482_v13 = vld [vmem:[%s8947_s1 + $0x160] sm:$0xff] }
 0x66e   :  { %v1554_v0 = vadd.f32 %v5446_v61, %v1553_v63  ;;  %6085 = vmatprep.subr.mxu0 %v5449_v14 }
 0x66f   :  { %6086 = vmatpush3.msra.mxu0 %v5449_v14 }
 0x670   :  { %6091 = vmatpush3.xpose.msk.msra.mxu1 %vm316_vm2, %v1554_v0  ;;  %6088 = vmatmul.mubr.msk.f32.vlgmr.msra.gmra.mxu0 %vm8974_vm0, %v6477_v9 }
 0x671   :  { %6095 = vmatprep.subr.mxu1 %v6369_v10  ;;  %6100 = vmatprep.subr.mxu0 %v6369_v10 }
 0x672   :  { %6102 = vmatprep.mubr.msk.f32.mxu0 %vm6370_vm1, %v6369_v10 }
 0x720   :  { %v6675_v1 = vpop.f32.mrf.mxu0 }
 0x721   :  { %v1383_v55 = vadd.f32 %v6666_v58, %v6675_v1  ;;  %v5471_v58 = vld [vmem:[%s8948_s2 + $0x3] ss:$0 sm:$0xff] }
 0x722   :  { %v6677_v2 = vpop.f32.mrf.mxu0 }
 0x723   :  { %v1378_v57 = vadd.f32 %v6668_v59, %v6677_v2 }
 0x728   :  { %v6067_v3 = vpop.f32.mrf.mxu0 }
 0x729   :  { %v1471_v7 = vadd.f32 %v6067_v3, %v5438_v4  ;;  %v5479_v3 = vld [vmem:[%s8948_s2 + $0x7] ss:$0 sm:$0xff] }
 0x72a   :  { %v1465_v5 = vpop.f32.mrf.mxu0 }
 0x72b   :  { %v1466_v6 = vadd.f32 %v5438_v4, %v1465_v5 }
 0x72d   :  { %6093 = vmatmul.mubr.msk.f32.vlgmr.msra.gmra.mxu1 %vm316_vm2, %v1466_v6 }
 0x72e   :  { %6096 = vmatpush3.xpose.msk.msra.mxu1 %vm316_vm2, %v1559_v62  ;;  %6097 = vmatprep.mubr.msk.f32.mxu1 %vm6370_vm1, %v6369_v10 }
 0x72f   :  { %6105 = vmatprep.subr.mxu1 %v6369_v10 }
 0x730   :  { %v6089_v31 = vpop.f32.mrf.mxu0 }
 0x731   :  { %6098 = vmatmul.mubr.msk.f32.vlgmr.msra.gmra.mxu1 %vm316_vm2, %v1471_v7  ;;  %v1647_v33 = vadd.f32 %v6089_v31, %v5454_v32  ;;  %v5485_v7 = vld [vmem:[%s8947_s1 + $0x178] sm:$0xff]  ;;  %v5487_v31 = vld [vmem:[%s8948_s2 + $0xb] ss:$0 sm:$0xff]  ;;  %s6372_s2 = smov [#allocation2]  }
 0x732   :  { %6107 = vmatprep.mubr.msk.f32.mxu1 %vm6370_vm1, %v6369_v10  ;;  %v1641_v34 = vpop.f32.mrf.mxu0  ;;  %s5362_s28 = sshll.u32 %s6372_s2, 4  ;;  %s5363_s28 = int_to_ptr.vmem [resolvable:$true] %s5362_s28 }
 0x733   :  { %v1642_v35 = vadd.f32 %v5454_v32, %v1641_v34  ;;  %6106 = vmatpush3.msra.mxu1 %v1647_v33  ;;  %p6352_p1 = scmp.lt.s32.totalorder %s5363_s28, %s5363_s28 }
 0x734   :  { %6115 = vmatprep.subr.mxu1 %v5469_v44 }
 0x735   :  { %6101 = vmatpush3.msra.mxu0 %v1642_v35 }
 0x736   :  { %6110 = vmatprep.subr.mxu0 %v5463_v42 }
 0x7ed   :  { %v1722_v15 = vpop.f32.mrf.mxu1 }
 0x7ee   :  { %v1802_v16 = vsel %vm316_vm2, %v1722_v15, -inf }
 0x7ef   :  { %1803 = vmax.xlane.f32.xlu0 %v1802_v16  ;;  %v6094_v17 = vpop.f32.mrf.mxu1 }
 0x7f1   :  { %v1798_v18 = vpop.f32.mrf.mxu1 }
 0x7f2   :  { %v1805_v19 = vsel %vm316_vm2, %v1798_v18, -inf }
 0x7f3   :  { %1806 = vmax.xlane.f32.xlu1 %v1805_v19  ;;  %v6099_v20 = vpop.f32.mrf.mxu1 }
 0x878   :  { %v1804_v21 = vpop.xlane.xlu0 %1803 }
 0x879   :  { %v1808_v22 = vsub.f32 %v1722_v15, %v1804_v21 }
 0x87b   :  { %v1810_v23 = vmul.f32 1.442695, %v1808_v22 }
 0x87c   :  { %v1807_v24 = vpop.xlane.xlu1 %1806 }
 0x87d   :  { %6195 = vpow2.f32 %v1810_v23  ;;  %v1809_v25 = vsub.f32 %v1798_v18, %v1807_v24 }
 0x87f   :  { %v1812_v26 = vmul.f32 1.442695, %v1809_v25 }
 0x881   :  { %6197 = vpow2.f32 %v1812_v26 }
 0x88a   :  { %v6196_v27 = vpop.eup %6195 }
 0x88b   :  { %v1814_v28 = vsel %vm316_vm2, %v6196_v27, 0.0 }
 0x88c   :  { %1815 = vadd.xlane.f32.xlu0 %v1814_v28 }
 0x88e   :  { %v6198_v29 = vpop.eup %6197 }
 0x88f   :  { %v1817_v30 = vsel %vm316_vm2, %v6198_v29, 0.0 }
 0x890   :  { %1818 = vadd.xlane.f32.xlu1 %v1817_v30 }
 0x915   :  { %v1816_v36 = vpop.xlane.xlu0 %1815 }
 0x916   :  { %6199 = vrcp.f32 %v1816_v36 }
 0x919   :  { %v1819_v37 = vpop.xlane.xlu1 %1818 }
 0x91a   :  { %6201 = vrcp.f32 %v1819_v37 }
 0x923   :  { %v6200_v38 = vpop.eup %6199 }
 0x924   :  { %v1821_v39 = vmul.f32 %v6200_v38, %v6196_v27 }
 0x926   :  { %6103 = vmatmul.mubr.msk.f32.vlgmr.msra.gmra.mxu0 %vm316_vm2, %v1821_v39 }
 0x927   :  { %v6202_v40 = vpop.eup %6201  ;;  %6111 = vmatpush3.msra.mxu0 %v5463_v42 }
 0x928   :  { %v1823_v41 = vmul.f32 %v6202_v40, %v6198_v29  ;;  %6126 = vmatprep.subr.mxu0 %v5477_v43 }
 0x92a   :  { %6108 = vmatmul.mubr.msk.f32.vlgmr.msra.gmra.mxu1 %vm316_vm2, %v1823_v41  ;;  %v5496_v41 = vld [vmem:[%s8949_s3 + $0x18] sm:$0xff] }
 0x92b   :  { %6123 = vmatprep.mubr.msk.f32.mxu1 %vm8974_vm0, %v6472_v8  ;;  %6116 = vmatpush3.msra.mxu1 %v5469_v44 }
 0x92c   :  { %6117 = vmatprep.subr.mxu1 %v5468_v45 }
 0x92d   :  { %6118 = vmatpush3.msra.mxu1 %v5468_v45 }
 0x92e   :  { %6119 = vmatprep.subr.mxu1 %v5467_v46 }
 0x92f   :  { %6120 = vmatpush3.msra.mxu1 %v5467_v46 }
 0x930   :  { %6121 = vmatprep.subr.mxu1 %v5466_v47 }
 0x931   :  { %6122 = vmatpush3.msra.mxu1 %v5466_v47  ;;  %v5499_v47 = vld [vmem:[%s8950_s4] ss:$0 sm:$0xff] }
 0x932   :  { %6124 = vmatmul.mubr.msk.f32.vlgmr.msra.gmra.mxu1 %vm8974_vm0, %v6477_v9  ;;  %6137 = vmatprep.subr.mxu1 %v5485_v7 }
 0x933   :  { %6145 = vmatprep.mubr.msk.f32.mxu1 %vm8974_vm0, %v6472_v8  ;;  %6138 = vmatpush3.msra.mxu1 %v5485_v7  ;;  %v2812_v7 = vld [vmem:[%s8953_s7 + $0x100] sm:$0xff] }
 0x934   :  { %6139 = vmatprep.subr.mxu1 %v5484_v11 }
 0x935   :  { %6140 = vmatpush3.msra.mxu1 %v5484_v11  ;;  %v2814_v11 = vld [vmem:[%s8953_s7 + $0x110] sm:$0xff] }
 0x936   :  { %6141 = vmatprep.subr.mxu1 %v5483_v12 }
 0x937   :  { %6142 = vmatpush3.msra.mxu1 %v5483_v12  ;;  %v2797_v12 = vld [vmem:[%s8953_s7 + $0x88] sm:$0xff] }
 0x938   :  { %6143 = vmatprep.subr.mxu1 %v5482_v13 }
 0x939   :  { %6144 = vmatpush3.msra.mxu1 %v5482_v13  ;;  %v2799_v13 = vld [vmem:[%s8953_s7 + $0x98] sm:$0xff] }
 0x93a   :  { %6146 = vmatmul.mubr.msk.f32.vlgmr.msra.gmra.mxu1 %vm8974_vm0, %v6477_v9  ;;  %6158 = vmatprep.subr.mxu1 %v6369_v10 }
 0x93b   :  { %6160 = vmatprep.mubr.msk.f32.mxu1 %vm6370_vm1, %v6369_v10 }
 0x9e6   :  { %v1893_v48 = vpop.f32.mrf.mxu0 }
 0x9e7   :  { %6112 = vmatprep.mubr.msk.f32.mxu0 %vm316_vm2, %v1893_v48 }
 0x9e8   :  { %v6104_v49 = vpop.f32.mrf.mxu0 }
 0x9ea   :  { %v1966_v50 = vpop.f32.mrf.mxu1 }
 0x9eb   :  { %6113 = vmatmul.mubr.msk.f32.vlgmr.msra.gmra.mxu0 %vm316_vm2, %v1966_v50 }
 0x9ec   :  { %6127 = vmatpush3.msra.mxu0 %v5477_v43  ;;  %v6109_v52 = vpop.f32.mrf.mxu1  ;;  %6134 = vmatprep.mubr.msk.f32.mxu0 %vm8974_vm0, %v6472_v8 }
 0x9ed   :  { %6128 = vmatprep.subr.mxu0 %v5476_v51 }
 0x9ee   :  { %6129 = vmatpush3.msra.mxu0 %v5476_v51 }
 0x9ef   :  { %6130 = vmatprep.subr.mxu0 %v5475_v53 }
 0x9f0   :  { %6131 = vmatpush3.msra.mxu0 %v5475_v53 }
 0x9f1   :  { %6132 = vmatprep.subr.mxu0 %v5474_v54 }
 0x9f2   :  { %6133 = vmatpush3.msra.mxu0 %v5474_v54  ;;  %v6125_v63 = vpop.f32.mrf.mxu1 }
 0x9f3   :  { %6135 = vmatmul.mubr.msk.f32.vlgmr.msra.gmra.mxu0 %vm8974_vm0, %v6477_v9  ;;  %6148 = vmatprep.subr.mxu0 %v6369_v10  ;;  %v2140_v6 = vadd.f32 %v6125_v63, %v5471_v58 }
 0x9f4   :  { %6150 = vmatprep.mubr.msk.f32.mxu0 %vm6370_vm1, %v6369_v10  ;;  %v2134_v5 = vpop.f32.mrf.mxu1 }
 0x9f5   :  { %v2135_v59 = vadd.f32 %v5471_v58, %v2134_v5  ;;  %v2828_v5 = vld [vmem:[%s8953_s7 + $0x180] sm:$0xff] }
 0x9fa   :  { %v6147_v30 = vpop.f32.mrf.mxu1 }
 0x9fb   :  { %v2316_v32 = vadd.f32 %v6147_v30, %v5487_v31 }
 0x9fc   :  { %v2310_v33 = vpop.f32.mrf.mxu1 }
 0x9fd   :  { %v2311_v34 = vadd.f32 %v5487_v31, %v2310_v33  ;;  %v5500_v31 = vld [vmem:[%s8951_s5] ss:$0 sm:$0xff] }
 0x9ff   :  { %6159 = vmatpush3.msra.mxu1 %v2311_v34  ;;  %v5501_v34 = vld [vmem:[%s8952_s6] ss:$0 sm:$0xff] }
 0xa00   :  { %6168 = vmatprep.subr.mxu1 %v5496_v41 }
 0xaab   :  { %v6114_v56 = vpop.f32.mrf.mxu0 }
 0xaac   :  { %v6762_v60 = vadd.f32 %v6114_v56, %v1383_v55 }
 0xaad   :  { %v2044_v61 = vpop.f32.mrf.mxu0 }
 0xaae   :  { %v6764_v62 = vadd.f32 %v2044_v61, %v1378_v57 }
 0xab3   :  { %v6136_v0 = vpop.f32.mrf.mxu0 }
 0xab4   :  { %v2228_v2 = vadd.f32 %v6136_v0, %v5479_v3 }
 0xab5   :  { %v2222_v4 = vpop.f32.mrf.mxu0 }
 0xab6   :  { %v2223_v1 = vadd.f32 %v5479_v3, %v2222_v4 }
 0xab8   :  { %6149 = vmatpush3.xpose.msk.msra.mxu0 %vm316_vm2, %v2223_v1  ;;  %v2831_v1 = vld [vmem:[%s8953_s7 + $0x198] sm:$0xff] }
 0xab9   :  { %6153 = vmatprep.subr.mxu0 %v6369_v10 }
 0xabb   :  { %6151 = vmatmul.mubr.msk.f32.vlgmr.msra.gmra.mxu0 %vm316_vm2, %v2135_v59  ;;  %v2830_v59 = vld [vmem:[%s8953_s7 + $0x190] sm:$0xff] }
 0xabc   :  { %6154 = vmatpush3.xpose.msk.msra.mxu0 %vm316_vm2, %v2228_v2  ;;  %6155 = vmatprep.mubr.msk.f32.mxu0 %vm6370_vm1, %v6369_v10  ;;  %v2813_v2 = vld [vmem:[%s8953_s7 + $0x108] sm:$0xff] }
 0xabd   :  { %6163 = vmatprep.subr.mxu0 %v6369_v10 }
 0xabf   :  { %6156 = vmatmul.mubr.msk.f32.vlgmr.msra.gmra.mxu0 %vm316_vm2, %v2140_v6  ;;  %v2815_v6 = vld [vmem:[%s8953_s7 + $0x118] sm:$0xff] }
 0xac0   :  { %6165 = vmatprep.mubr.msk.f32.mxu0 %vm6370_vm1, %v6369_v10  ;;  %6164 = vmatpush3.msra.mxu0 %v2316_v32 }
 0xb7b   :  { %v2391_v14 = vpop.f32.mrf.mxu0 }
 0xb7c   :  { %v2471_v15 = vsel %vm316_vm2, %v2391_v14, -inf }
 0xb7d   :  { %2472 = vmax.xlane.f32.xlu0 %v2471_v15  ;;  %v6152_v16 = vpop.f32.mrf.mxu0  ;;  %v2798_v15 = vld [vmem:[%s8953_s7 + $0x90] sm:$0xff] }
 0xb7e   :  { %v2781_v16 = vld [vmem:[%s8953_s7 + $0x8] sm:$0xff] }
 0xb7f   :  { %v2467_v17 = vpop.f32.mrf.mxu0 }
 0xb80   :  { %v2474_v18 = vsel %vm316_vm2, %v2467_v17, -inf }
 0xb81   :  { %2475 = vmax.xlane.f32.xlu1 %v2474_v18  ;;  %v6157_v19 = vpop.f32.mrf.mxu0  ;;  %v2780_v18 = vld [vmem:[%s8953_s7] sm:$0xff] }
 0xb82   :  { %v2782_v19 = vld [vmem:[%s8953_s7 + $0x10] sm:$0xff] }
 0xc06   :  { %v2473_v20 = vpop.xlane.xlu0 %2472 }
 0xc07   :  { %v2477_v21 = vsub.f32 %v2391_v14, %v2473_v20  ;;  %v2796_v14 = vld [vmem:[%s8953_s7 + $0x80] sm:$0xff]  ;;  %v2833_v20 = vld [vmem:[%s8953_s7 + $0x1a8] sm:$0xff] }
 0xc09   :  { %v2479_v22 = vmul.f32 1.442695, %v2477_v21  ;;  %v2835_v21 = vld [vmem:[%s8953_s7 + $0x1b8] sm:$0xff] }
 0xc0a   :  { %v2476_v23 = vpop.xlane.xlu1 %2475 }
 0xc0b   :  { %6203 = vpow2.f32 %v2479_v22  ;;  %v2478_v24 = vsub.f32 %v2467_v17, %v2476_v23  ;;  %v2783_v17 = vld [vmem:[%s8953_s7 + $0x18] sm:$0xff] }
 0xc0d   :  { %v2481_v25 = vmul.f32 1.442695, %v2478_v24 }
 0xc0f   :  { %6205 = vpow2.f32 %v2481_v25 }
 0xc18   :  { %v6204_v26 = vpop.eup %6203 }
 0xc19   :  { %v2483_v27 = vsel %vm316_vm2, %v6204_v26, 0.0 }
 0xc1a   :  { %2484 = vadd.xlane.f32.xlu0 %v2483_v27 }
 0xc1c   :  { %v6206_v28 = vpop.eup %6205 }
 0xc1d   :  { %v2486_v29 = vsel %vm316_vm2, %v6206_v28, 0.0 }
 0xc1e   :  { %2487 = vadd.xlane.f32.xlu1 %v2486_v29 }
 0xca3   :  { %v2485_v35 = vpop.xlane.xlu0 %2484 }
 0xca4   :  { %6207 = vrcp.f32 %v2485_v35 }
 0xca7   :  { %v2488_v36 = vpop.xlane.xlu1 %2487 }
 0xca8   :  { %6209 = vrcp.f32 %v2488_v36  ;;  %v2832_v36 = vld [vmem:[%s8953_s7 + $0x1a0] sm:$0xff] }
 0xcb1   :  { %v6208_v37 = vpop.eup %6207 }
 0xcb2   :  { %v2490_v38 = vmul.f32 %v6208_v37, %v6204_v26  ;;  %v2834_v37 = vld [vmem:[%s8953_s7 + $0x1b0] sm:$0xff] }
 0xcb4   :  { %6161 = vmatmul.mubr.msk.f32.vlgmr.msra.gmra.mxu1 %vm316_vm2, %v2490_v38 }
 0xcb5   :  { %v6210_v39 = vpop.eup %6209  ;;  %6169 = vmatpush3.msra.mxu1 %v5496_v41  ;;  %v2816_v41 = vld [vmem:[%s8953_s7 + $0x120] sm:$0xff] }
 0xcb6   :  { %v2492_v40 = vmul.f32 %v6210_v39, %v6206_v28  ;;  %3035 = vmatprep.subr.mxu1 %v2831_v1  ;;  %v2817_v39 = vld [vmem:[%s8953_s7 + $0x128] sm:$0xff] }
 0xcb7   :  { %v2841_v1 = vld [vmem:[%s8953_s7 + $0x1e8] sm:$0xff] }
 0xcb8   :  { %6166 = vmatmul.mubr.msk.f32.vlgmr.msra.gmra.mxu0 %vm316_vm2, %v2492_v40  ;;  %v2819_v40 = vld [vmem:[%s8953_s7 + $0x138] sm:$0xff] }
 0xcb9   :  { %2998 = vmatprep.mubr.f32.mxu0 %v6369_v10 }
 0xd74   :  { %v2562_v42 = vpop.f32.mrf.mxu1 }
 0xd75   :  { %6170 = vmatprep.mubr.msk.f32.mxu1 %vm316_vm2, %v2562_v42  ;;  %v2818_v42 = vld [vmem:[%s8953_s7 + $0x130] sm:$0xff] }
 0xd76   :  { %v6162_v43 = vpop.f32.mrf.mxu1 }
 0xd78   :  { %v2635_v44 = vpop.f32.mrf.mxu0 }
 0xd79   :  { %6171 = vmatmul.mubr.msk.f32.vlgmr.msra.gmra.mxu1 %vm316_vm2, %v2635_v44  ;;  %v2801_v44 = vld [vmem:[%s8953_s7 + $0xa8] sm:$0xff] }
 0xd7a   :  { %v6167_v45 = vpop.f32.mrf.mxu0  ;;  %3075 = vmatprep.mubr.f32.mxu1 %v6369_v10  ;;  %3036 = vmatpush1.msra.mxu1 %v2830_v59  ;;  %v2840_v59 = vld [vmem:[%s8953_s7 + $0x1e0] sm:$0xff] }
 0xd7b   :  { %3037 = vmatprep.subr.mxu1 %v2815_v6  ;;  %v2803_v45 = vld [vmem:[%s8953_s7 + $0xb8] sm:$0xff]  ;;  %v2825_v6 = vld [vmem:[%s8953_s7 + $0x168] sm:$0xff] }
 0xd7c   :  { %3038 = vmatpush1.msra.mxu1 %v2814_v11  ;;  %v2824_v11 = vld [vmem:[%s8953_s7 + $0x160] sm:$0xff] }
 0xd7d   :  { %3039 = vmatprep.subr.mxu1 %v2799_v13  ;;  %v2809_v13 = vld [vmem:[%s8953_s7 + $0xe8] sm:$0xff] }
 0xd7e   :  { %3040 = vmatpush1.msra.mxu1 %v2798_v15  ;;  %v2808_v15 = vld [vmem:[%s8953_s7 + $0xe0] sm:$0xff] }
 0xd7f   :  { %3041 = vmatprep.subr.mxu1 %v2783_v17  ;;  %v2793_v17 = vld [vmem:[%s8953_s7 + $0x68] sm:$0xff] }
 0xd80   :  { %3042 = vmatpush1.msra.mxu1 %v2782_v19  ;;  %v2792_v19 = vld [vmem:[%s8953_s7 + $0x60] sm:$0xff] }
 0xd81   :  { %3189 = vmatprep.subr.mxu1 %v2835_v21  ;;  %v4477_v21 = vld [vmem:[%s8955_s9 + $0xf8] sm:$0xff] }
 0xe39   :  { %v6172_v46 = vpop.f32.mrf.mxu1 }
 0xe3a   :  { %v2723_v48 = vadd.f32 %v6172_v46, %v6762_v60  ;;  %v2800_v46 = vld [vmem:[%s8953_s7 + $0xa0] sm:$0xff] }
 0xe3b   :  { %v2713_v49 = vpop.f32.mrf.mxu1 }
 0xe3c   :  { %v2732_v50 = vadd.f32 %v5499_v47, %v2723_v48  ;;  %v2722_v51 = vadd.f32 %v2713_v49, %v6764_v62  ;;  %v2785_v48 = vld [vmem:[%s8953_s7 + $0x28] sm:$0xff]  ;;  %v2787_v49 = vld [vmem:[%s8953_s7 + $0x38] sm:$0xff] }
 0xe3e   :  { %v2731_v52 = vadd.f32 %v5499_v47, %v2722_v51  ;;  %v2734_v53 = vadd.f32 %v2732_v50, %v6477_v9  ;;  %v2802_v47 = vld [vmem:[%s8953_s7 + $0xb0] sm:$0xff]  ;;  %v2784_v50 = vld [vmem:[%s8953_s7 + $0x20] sm:$0xff] }
 0xe3f   :  { %v2786_v51 = vld [vmem:[%s8953_s7 + $0x30] sm:$0xff] }
 0xe40   :  { %v2740_v54 = vsel %vm8974_vm0, %v2734_v53, 0.0  ;;  %v2733_v55 = vadd.f32 %v2731_v52, %v6472_v8  ;;  %v2829_v8 = vld [vmem:[%s8953_s7 + $0x188] sm:$0xff] }
 0xe41   :  { %2741 = vadd.xlane.f32.xlu1 %v2740_v54  ;;  %2958 = vmatprep.subr.mxu0 %v2829_v8  ;;  %v2837_v52 = vld [vmem:[%s8953_s7 + $0x1c8] sm:$0xff]  ;;  %v2836_v54 = vld [vmem:[%s8953_s7 + $0x1c0] sm:$0xff]  ;;  %v2790_v8 = vld [vmem:[%s8953_s7 + $0x50] sm:$0xff] }
 0xe42   :  { %v2737_v56 = vsel %vm8974_vm0, %v2733_v55, 0.0  ;;  %2959 = vmatpush1.msra.mxu0 %v2828_v5  ;;  %v2843_v5 = vld [vmem:[%s8953_s7 + $0x1f8] sm:$0xff] }
 0xe43   :  { %2738 = vadd.xlane.f32.xlu0 %v2737_v56  ;;  %2960 = vmatprep.subr.mxu0 %v2813_v2  ;;  %v2821_v56 = vld [vmem:[%s8953_s7 + $0x148] sm:$0xff]  ;;  %v2842_v2 = vld [vmem:[%s8953_s7 + $0x1f0] sm:$0xff] }
 0xe44   :  { %2961 = vmatpush1.msra.mxu0 %v2812_v7  ;;  %v2827_v7 = vld [vmem:[%s8953_s7 + $0x178] sm:$0xff] }
 0xe45   :  { %2962 = vmatprep.subr.mxu0 %v2797_v12  ;;  %v2826_v12 = vld [vmem:[%s8953_s7 + $0x170] sm:$0xff] }
 0xe46   :  { %2963 = vmatpush1.msra.mxu0 %v2796_v14  ;;  %v2811_v14 = vld [vmem:[%s8953_s7 + $0xf8] sm:$0xff] }
 0xe47   :  { %2964 = vmatprep.subr.mxu0 %v2781_v16  ;;  %v2810_v16 = vld [vmem:[%s8953_s7 + $0xf0] sm:$0xff] }
 0xe48   :  { %2965 = vmatpush1.msra.mxu0 %v2780_v18  ;;  %v2795_v18 = vld [vmem:[%s8953_s7 + $0x78] sm:$0xff] }
 0xe49   :  { %3112 = vmatprep.subr.mxu0 %v2833_v20  ;;  %v2794_v20 = vld [vmem:[%s8953_s7 + $0x70] sm:$0xff] }
 0xeca   :  { %v2742_v57 = vpop.xlane.xlu1 %2741 }
 0xecb   :  { %v2745_v61 = vmul.f32 0.03125, %v2742_v57  ;;  %v2823_v57 = vld [vmem:[%s8953_s7 + $0x158] sm:$0xff] }
 0xecc   :  { %v2739_v63 = vpop.xlane.xlu0 %2738 }
 0xecd   :  { %v2747_v0 = vsub.f32 %v2734_v53, %v2745_v61  ;;  %v2744_v60 = vmul.f32 0.03125, %v2739_v63  ;;  %v2839_v53 = vld [vmem:[%s8953_s7 + $0x1d8] sm:$0xff]  ;;  %v2820_v61 = vld [vmem:[%s8953_s7 + $0x140] sm:$0xff]  ;;  %v2822_v63 = vld [vmem:[%s8953_s7 + $0x150] sm:$0xff] }
 0xecf   :  { %v2746_v3 = vsub.f32 %v2733_v55, %v2744_v60  ;;  %v2749_v4 = vmul.f32 %v2747_v0, %v2747_v0  ;;  %v2838_v55 = vld [vmem:[%s8953_s7 + $0x1d0] sm:$0xff]  ;;  %v2807_v60 = vld [vmem:[%s8953_s7 + $0xd8] sm:$0xff] }
 0xed1   :  { %v2753_v62 = vsel %vm8974_vm0, %v2749_v4, 0.0  ;;  %v2748_v58 = vmul.f32 %v2746_v3, %v2746_v3  ;;  %v2806_v4 = vld [vmem:[%s8953_s7 + $0xd0] sm:$0xff] }
 0xed2   :  { %2754 = vadd.xlane.f32.xlu1 %v2753_v62  ;;  %v2789_v62 = vld [vmem:[%s8953_s7 + $0x48] sm:$0xff] }
 0xed3   :  { %v2750_v9 = vsel %vm8974_vm0, %v2748_v58, 0.0  ;;  %v2791_v58 = vld [vmem:[%s8953_s7 + $0x58] sm:$0xff] }
 0xed4   :  { %2751 = vadd.xlane.f32.xlu0 %v2750_v9  ;;  %v2788_v9 = vld [vmem:[%s8953_s7 + $0x40] sm:$0xff] }
 0xf5b   :  { %v2755_v22 = vpop.xlane.xlu1 %2754 }
 0xf5c   :  { %v2757_v23 = vmul.f32 0.03125, %v2755_v22  ;;  %v4509_v22 = vld [vmem:[%s8955_s9 + $0x1f8] sm:$0xff] }
 0xf5d   :  { %v2752_v24 = vpop.xlane.xlu0 %2751 }
 0xf5e   :  { %v2759_v25 = vadd.f32 1e-05, %v2757_v23  ;;  %v2756_v26 = vmul.f32 0.03125, %v2752_v24  ;;  %v4493_v23 = vld [vmem:[%s8955_s9 + $0x178] sm:$0xff]  ;;  %v4476_v24 = vld [vmem:[%s8955_s9 + $0xf0] sm:$0xff] }
 0xf60   :  { %v2758_v27 = vadd.f32 1e-05, %v2756_v26  ;;  %6211 = vrsqrt.f32 %v2759_v25  ;;  %v4508_v25 = vld [vmem:[%s8955_s9 + $0x1f0] sm:$0xff] }
 0xf61   :  { %v4460_v26 = vld [vmem:[%s8955_s9 + $0x70] sm:$0xff] }
 0xf62   :  { %6213 = vrsqrt.f32 %v2758_v27  ;;  %v4492_v27 = vld [vmem:[%s8955_s9 + $0x170] sm:$0xff] }
 0xf6d   :  { %v6212_v28 = vpop.eup %6211 }
 0xf6e   :  { %v2763_v32 = vmul.f32 %v6212_v28, %v2747_v0  ;;  %v2805_v0 = vld [vmem:[%s8953_s7 + $0xc8] sm:$0xff]  ;;  %v2848_v28 = vlaneseq }
 0xf6f   :  { %v6214_v29 = vpop.eup %6213 }
 0xf70   :  { %v2762_v30 = vmul.f32 %v6214_v29, %v2746_v3  ;;  %v2771_v38 = vmul.f32 %v5500_v31, %v2763_v32  ;;  %v2804_v3 = vld [vmem:[%s8953_s7 + $0xc0] sm:$0xff]  ;;  %v4475_v29 = vld [vmem:[%s8955_s9 + $0xe8] sm:$0xff] }
 0xf71   :  { %v4491_v32 = vld [vmem:[%s8955_s9 + $0x168] sm:$0xff] }
 0xf72   :  { %v2770_v33 = vmul.f32 %v5500_v31, %v2762_v30  ;;  %v6910_v43 = vadd.f32 %v5501_v34, %v2771_v38  ;;  %v4507_v30 = vld [vmem:[%s8955_s9 + $0x1e8] sm:$0xff]  ;;  %v4474_v38 = vld [vmem:[%s8955_s9 + $0xe0] sm:$0xff] }
 0xf73   :  { %v4459_v31 = vld [vmem:[%s8955_s9 + $0x68] sm:$0xff] }
 0xf74   :  { %v6886_v35 = vadd.f32 %v5501_v34, %v2770_v33  ;;  %9016 = vst [vmem:[#allocation6_spill] sm:$0xff] %v6910_v43  ;;  %v7110_v33 = vshrl.u32 %v2848_v28, 7  ;;  %v4497_v28 = vld [vmem:[%s8955_s9 + $0x198] sm:$0xff] }
 0xf76   :  { %9015 = vst [vmem:[#allocation5_spill] sm:$0xff] %v6886_v35  ;;  %5502 = vmatmul.mubr.msk.f32.vlgmr.msra.gmra.mxu0 %vm8974_vm0, %v6886_v35  ;;  %5504 = vmatmul.mubr.msk.f32.vlgmr.msra.gmra.mxu1 %vm8974_vm0, %v6886_v35  ;;  %v2850_v34 = vsub.s32 0, %v7110_v33 }
 0xf77   :  { %3113 = vmatpush1.msra.mxu0 %v2832_v36  ;;  %3190 = vmatpush1.msra.mxu1 %v2834_v37  ;;  %v2858_v36 = vsub.s32 2, %v7110_v33  ;;  %v7117_v37 = vld [vmem:[%s8954_s8] sm:$0xff] }
 0xf78   :  { %3114 = vmatprep.subr.mxu0 %v2817_v39  ;;  %3191 = vmatprep.subr.mxu1 %v2819_v40  ;;  %v4506_v39 = vld [vmem:[%s8955_s9 + $0x1e0] sm:$0xff] }
 0xf79   :  { %3004 = vmatprep.mubr.f32.mxu0 %v6369_v10  ;;  %3081 = vmatprep.mubr.f32.mxu1 %v6369_v10  ;;  %v4458_v40 = vld [vmem:[%s8955_s9 + $0x60] sm:$0xff] }
 0xf7a   :  { %3115 = vmatpush1.msra.mxu0 %v2816_v41  ;;  %3192 = vmatpush1.msra.mxu1 %v2818_v42  ;;  %v4490_v41 = vld [vmem:[%s8955_s9 + $0x160] sm:$0xff]  ;;  %v4473_v42 = vld [vmem:[%s8955_s9 + $0xd8] sm:$0xff] }
 0xf7b   :  { %5503 = vmatmul.mubr.msk.f32.gmra.mxu0 %vm8974_vm0, %v6910_v43  ;;  %5505 = vmatmul.mubr.msk.f32.gmra.mxu1 %vm8974_vm0, %v6910_v43 }
 0xf7c   :  { %3116 = vmatprep.subr.mxu0 %v2801_v44  ;;  %3193 = vmatprep.subr.mxu1 %v2803_v45  ;;  %v4505_v44 = vld [vmem:[%s8955_s9 + $0x1d8] sm:$0xff]  ;;  %v7140_v45 = vrot.slane %v7117_v37, %v2850_v34 }
 0xf7d   :  { %3117 = vmatpush1.msra.mxu0 %v2800_v46  ;;  %3194 = vmatpush1.msra.mxu1 %v2802_v47  ;;  %v7145_v46 = vrot.slane %v7117_v37, %v2858_v36  ;;  %v4457_v47 = vld [vmem:[%s8955_s9 + $0x58] sm:$0xff] }
 0xf7e   :  { %3118 = vmatprep.subr.mxu0 %v2785_v48  ;;  %3195 = vmatprep.subr.mxu1 %v2787_v49  ;;  %v4489_v48 = vld [vmem:[%s8955_s9 + $0x158] sm:$0xff]  ;;  %v4472_v49 = vld [vmem:[%s8955_s9 + $0xd0] sm:$0xff] }
 0xf7f   :  { %3119 = vmatpush1.msra.mxu0 %v2784_v50  ;;  %3152 = vmatprep.mubr.f32.mxu0 %v6369_v10  ;;  %v4504_v50 = vld [vmem:[%s8955_s9 + $0x1d0] sm:$0xff] }
 0xf80   :  { %3196 = vmatpush1.msra.mxu1 %v2786_v51  ;;  %3229 = vmatprep.mubr.f32.mxu1 %v6369_v10  ;;  %v4456_v51 = vld [vmem:[%s8955_s9 + $0x50] sm:$0xff] }
 0xf81   :  { %5506 = vmatmul.mubr.msk.f32.vlgmr.msra.gmra.mxu0 %vm8974_vm0, %v6886_v35  ;;  %5508 = vmatmul.mubr.msk.f32.vlgmr.msra.gmra.mxu1 %vm8974_vm0, %v6886_v35 }
 0xf82   :  { %3266 = vmatprep.subr.mxu0 %v2837_v52  ;;  %3343 = vmatprep.subr.mxu1 %v2839_v53  ;;  %v4488_v52 = vld [vmem:[%s8955_s9 + $0x150] sm:$0xff] }
 0xf83   :  { %3267 = vmatpush1.msra.mxu0 %v2836_v54  ;;  %3344 = vmatpush1.msra.mxu1 %v2838_v55  ;;  %v4471_v55 = vld [vmem:[%s8955_s9 + $0xc8] sm:$0xff] }
 0xf84   :  { %3268 = vmatprep.subr.mxu0 %v2821_v56  ;;  %3345 = vmatprep.subr.mxu1 %v2823_v57  ;;  %v4503_v56 = vld [vmem:[%s8955_s9 + $0x1c8] sm:$0xff] }
 0xf85   :  { %3158 = vmatprep.mubr.f32.mxu0 %v6369_v10  ;;  %3235 = vmatprep.mubr.f32.mxu1 %v6369_v10 }
 0xf86   :  { %3269 = vmatpush1.msra.mxu0 %v2820_v61  ;;  %3346 = vmatpush1.msra.mxu1 %v2822_v63  ;;  %v4455_v63 = vld [vmem:[%s8955_s9 + $0x48] sm:$0xff] }
 0xf87   :  { %5507 = vmatmul.mubr.msk.f32.gmra.mxu0 %vm8974_vm0, %v6910_v43  ;;  %5509 = vmatmul.mubr.msk.f32.gmra.mxu1 %vm8974_vm0, %v6910_v43 }
 0xf88   :  { %3270 = vmatprep.subr.mxu0 %v2805_v0  ;;  %3347 = vmatprep.subr.mxu1 %v2807_v60  ;;  %v4487_v0 = vld [vmem:[%s8955_s9 + $0x148] sm:$0xff]  ;;  %v4470_v60 = vld [vmem:[%s8955_s9 + $0xc0] sm:$0xff] }
 0xf89   :  { %3271 = vmatpush1.msra.mxu0 %v2804_v3  ;;  %3348 = vmatpush1.msra.mxu1 %v2806_v4  ;;  %v4502_v3 = vld [vmem:[%s8955_s9 + $0x1c0] sm:$0xff] }
 0xf8a   :  { %3272 = vmatprep.subr.mxu0 %v2789_v62  ;;  %3349 = vmatprep.subr.mxu1 %v2791_v58  ;;  %v4454_v62 = vld [vmem:[%s8955_s9 + $0x40] sm:$0xff] }
 0xf8b   :  { %3273 = vmatpush1.msra.mxu0 %v2788_v9  ;;  %3306 = vmatprep.mubr.f32.mxu0 %v6369_v10  ;;  %v4486_v58 = vld [vmem:[%s8955_s9 + $0x140] sm:$0xff]  ;;  %v4469_v9 = vld [vmem:[%s8955_s9 + $0xb8] sm:$0xff] }
 0xf8c   :  { %3350 = vmatpush1.msra.mxu1 %v2790_v8  ;;  %3383 = vmatprep.mubr.f32.mxu1 %v6369_v10 }
 0xf8d   :  { %5510 = vmatmul.mubr.msk.f32.vlgmr.msra.gmra.mxu0 %vm8974_vm0, %v6886_v35  ;;  %5512 = vmatmul.mubr.msk.f32.vlgmr.msra.gmra.mxu1 %vm8974_vm0, %v6886_v35 }
 0xf8e   :  { %3420 = vmatprep.subr.mxu0 %v2841_v1  ;;  %3497 = vmatprep.subr.mxu1 %v2843_v5  ;;  %v4501_v1 = vld [vmem:[%s8955_s9 + $0x1b8] sm:$0xff] }
 0xf8f   :  { %3421 = vmatpush1.msra.mxu0 %v2840_v59  ;;  %3498 = vmatpush1.msra.mxu1 %v2842_v2  ;;  %v4453_v5 = vld [vmem:[%s8955_s9 + $0x38] sm:$0xff] }
 0xf90   :  { %3422 = vmatprep.subr.mxu0 %v2825_v6  ;;  %3499 = vmatprep.subr.mxu1 %v2827_v7  ;;  %v4485_v2 = vld [vmem:[%s8955_s9 + $0x138] sm:$0xff]  ;;  %v4468_v7 = vld [vmem:[%s8955_s9 + $0xb0] sm:$0xff] }
 0xf91   :  { %3312 = vmatprep.mubr.f32.mxu0 %v6369_v10  ;;  %3389 = vmatprep.mubr.f32.mxu1 %v6369_v10 }
 0xf92   :  { %3423 = vmatpush1.msra.mxu0 %v2824_v11  ;;  %3500 = vmatpush1.msra.mxu1 %v2826_v12  ;;  %v4500_v11 = vld [vmem:[%s8955_s9 + $0x1b0] sm:$0xff] }
 0xf93   :  { %5511 = vmatmul.mubr.msk.f32.gmra.mxu0 %vm8974_vm0, %v6910_v43  ;;  %5513 = vmatmul.mubr.msk.f32.gmra.mxu1 %vm8974_vm0, %v6910_v43  ;;  %v4452_v12 = vld [vmem:[%s8955_s9 + $0x30] sm:$0xff] }
 0xf94   :  { %3424 = vmatprep.subr.mxu0 %v2809_v13  ;;  %3501 = vmatprep.subr.mxu1 %v2811_v14  ;;  %v4484_v14 = vld [vmem:[%s8955_s9 + $0x130] sm:$0xff] }
 0xf95   :  { %3425 = vmatpush1.msra.mxu0 %v2808_v15  ;;  %3502 = vmatpush1.msra.mxu1 %v2810_v16  ;;  %v4467_v15 = vld [vmem:[%s8955_s9 + $0xa8] sm:$0xff] }
 0xf96   :  { %3426 = vmatprep.subr.mxu0 %v2793_v17  ;;  %3503 = vmatprep.subr.mxu1 %v2795_v18  ;;  %v4499_v17 = vld [vmem:[%s8955_s9 + $0x1a8] sm:$0xff] }
 0xf97   :  { %3427 = vmatpush1.msra.mxu0 %v2792_v19  ;;  %3460 = vmatprep.mubr.f32.mxu0 %v6369_v10  ;;  %v4451_v18 = vld [vmem:[%s8955_s9 + $0x28] sm:$0xff] }
 0xf98   :  { %3504 = vmatpush1.msra.mxu1 %v2794_v20  ;;  %3537 = vmatprep.mubr.f32.mxu1 %v6369_v10  ;;  %v4483_v19 = vld [vmem:[%s8955_s9 + $0x128] sm:$0xff] }
 0xf99   :  { %5514 = vmatmul.mubr.msk.f32.vlgmr.msra.gmra.mxu0 %vm8974_vm0, %v6886_v35  ;;  %5516 = vmatmul.mubr.msk.f32.vlgmr.msra.gmra.mxu1 %vm8974_vm0, %v6886_v35 }
 0xf9a   :  { %3466 = vmatprep.mubr.f32.mxu0 %v6369_v10  ;;  %3543 = vmatprep.mubr.f32.mxu1 %v6369_v10  ;;  %v4461_v10 = vld [vmem:[%s8955_s9 + $0x78] sm:$0xff] }
 0xf9b   :  { %5637 = vmatprep.subr.mxu0 %v4477_v21  ;;  %5675 = vmatprep.subr.mxu1 %v4509_v22  ;;  %v4466_v21 = vld [vmem:[%s8955_s9 + $0xa0] sm:$0xff] }
 0xf9c   :  { %5638 = vmatpush3.msra.mxu0 %v4461_v10  ;;  %5676 = vmatpush3.msra.mxu1 %v4493_v23  ;;  %v4498_v22 = vld [vmem:[%s8955_s9 + $0x1a0] sm:$0xff] }
 0xf9d   :  { %5515 = vmatmul.mubr.msk.f32.gmra.mxu0 %vm8974_vm0, %v6910_v43  ;;  %5517 = vmatmul.mubr.msk.f32.gmra.mxu1 %vm8974_vm0, %v6910_v43  ;;  %v4450_v10 = vld [vmem:[%s8955_s9 + $0x20] sm:$0xff] }
 0xf9e   :  { %5639 = vmatprep.subr.mxu0 %v4476_v24  ;;  %5677 = vmatprep.subr.mxu1 %v4508_v25  ;;  %v4482_v25 = vld [vmem:[%s8955_s9 + $0x120] sm:$0xff] }
 0xf9f   :  { %5640 = vmatpush3.msra.mxu0 %v4460_v26  ;;  %5678 = vmatpush3.msra.mxu1 %v4492_v27  ;;  %v4465_v26 = vld [vmem:[%s8955_s9 + $0x98] sm:$0xff]  ;;  %v2866_v27 = vsub.s32 4, %v7110_v33 }
 0xfa0   :  { %5641 = vmatprep.subr.mxu0 %v4475_v29  ;;  %5679 = vmatprep.subr.mxu1 %v4507_v30  ;;  %v4449_v29 = vld [vmem:[%s8955_s9 + $0x18] sm:$0xff] }
 0xfa1   :  { %5642 = vmatpush3.msra.mxu0 %v4459_v31  ;;  %5680 = vmatpush3.msra.mxu1 %v4491_v32  ;;  %v4481_v31 = vld [vmem:[%s8955_s9 + $0x118] sm:$0xff]  ;;  %v4464_v32 = vld [vmem:[%s8955_s9 + $0x90] sm:$0xff] }
 0xfa2   :  { %5643 = vmatprep.subr.mxu0 %v4474_v38  ;;  %5681 = vmatprep.subr.mxu1 %v4506_v39  ;;  %v4496_v38 = vld [vmem:[%s8955_s9 + $0x190] sm:$0xff] }
 0xfa3   :  { %5644 = vmatpush3.msra.mxu0 %v4458_v40  ;;  %5682 = vmatpush3.msra.mxu1 %v4490_v41  ;;  %v4448_v41 = vld [vmem:[%s8955_s9 + $0x10] sm:$0xff] }
 0xfa4   :  { %5645 = vmatprep.subr.mxu0 %v4473_v42  ;;  %5683 = vmatprep.subr.mxu1 %v4505_v44  ;;  %v4480_v42 = vld [vmem:[%s8955_s9 + $0x110] sm:$0xff]  ;;  %v4463_v44 = vld [vmem:[%s8955_s9 + $0x88] sm:$0xff] }
 0xfa5   :  { %5646 = vmatpush3.msra.mxu0 %v4457_v47  ;;  %5684 = vmatpush3.msra.mxu1 %v4489_v48  ;;  %v2854_v48 = vsub.s32 1, %v7110_v33 }
 0xfa6   :  { %5647 = vmatprep.subr.mxu0 %v4472_v49  ;;  %5685 = vmatprep.subr.mxu1 %v4504_v50  ;;  %v7303_v49 = vrot.slane %v7117_v37, %v2866_v27  ;;  %v4495_v50 = vld [vmem:[%s8955_s9 + $0x188] sm:$0xff] }
 0xfa7   :  { %5648 = vmatpush3.msra.mxu0 %v4456_v51  ;;  %5686 = vmatpush3.msra.mxu1 %v4488_v52  ;;  %v4447_v51 = vld [vmem:[%s8955_s9 + $0x8] sm:$0xff] }
 0xfa8   :  { %5649 = vmatprep.subr.mxu0 %v4471_v55  ;;  %5687 = vmatprep.subr.mxu1 %v4503_v56  ;;  %v4479_v52 = vld [vmem:[%s8955_s9 + $0x108] sm:$0xff]  ;;  %v4462_v55 = vld [vmem:[%s8955_s9 + $0x80] sm:$0xff] }
 0xfa9   :  { %5650 = vmatpush3.msra.mxu0 %v4455_v63  ;;  %5688 = vmatpush3.msra.mxu1 %v4487_v0  ;;  %v4494_v56 = vld [vmem:[%s8955_s9 + $0x180] sm:$0xff] }
 0xfaa   :  { %5651 = vmatprep.subr.mxu0 %v4470_v60  ;;  %5689 = vmatprep.subr.mxu1 %v4502_v3  ;;  %v4446_v60 = vld [vmem:[%s8955_s9] sm:$0xff] }
 0xfab   :  { %5652 = vmatpush3.msra.mxu0 %v4454_v62  ;;  %5690 = vmatpush3.msra.mxu1 %v4486_v58  ;;  %v4478_v3 = vld [vmem:[%s8955_s9 + $0x100] sm:$0xff]  ;;  %v2855_v62 = vrot.slane %v7117_v37, %v2854_v48 }
 0xfac   :  { %5653 = vmatprep.subr.mxu0 %v4469_v9  ;;  %5691 = vmatprep.subr.mxu1 %v4501_v1  ;;  %v2874_v1 = vsub.s32 6, %v7110_v33 }
 0xfad   :  { %5654 = vmatpush3.msra.mxu0 %v4453_v5  ;;  %5692 = vmatpush3.msra.mxu1 %v4485_v2 }
 0xfae   :  { %5655 = vmatprep.subr.mxu0 %v4468_v7  ;;  %5693 = vmatprep.subr.mxu1 %v4500_v11  ;;  %v7342_v11 = vrot.slane %v7117_v37, %v2874_v1 }
 0xfaf   :  { %5656 = vmatpush3.msra.mxu0 %v4452_v12  ;;  %5694 = vmatpush3.msra.mxu1 %v4484_v14  ;;  %v2878_v14 = vsub.s32 7, %v7110_v33 }
 0xfb0   :  { %5657 = vmatprep.subr.mxu0 %v4467_v15  ;;  %5695 = vmatprep.subr.mxu1 %v4499_v17  ;;  %v2845_v15 = vld [vmem:[%s8954_s8 + $0x8] sm:$0xff]  ;;  %s6347_s8 = scalar_lea.vmem %s5363_s28, 256 }
 0xfb1   :  { %5658 = vmatpush3.msra.mxu0 %v4451_v18  ;;  %5696 = vmatpush3.msra.mxu1 %v4483_v19  ;;  %p6348_p0 = scmp.ne.s32.totalorder %s5363_s28, %s6347_s8  ;;  %p6353_p2 = scmp.lt.s32.totalorder %s6347_s8, %s6347_s8 }
 0xfb2   :  { %5659 = vmatprep.subr.mxu0 %v4466_v21  ;;  %5697 = vmatprep.subr.mxu1 %v4498_v22 }
 0xfb3   :  { %5660 = vmatpush3.msra.mxu0 %v4450_v10  ;;  %5698 = vmatpush3.msra.mxu1 %v4482_v25  ;;  %p6354_p3 = por %p6353_p2, %p6352_p1 }
 0xfb4   :  { %5661 = vmatprep.subr.mxu0 %v4465_v26  ;;  %5699 = vmatprep.subr.mxu1 %v4497_v28  ;;  %v7385_v26 = vrot.slane %v2845_v15, %v2854_v48 }
 0xfb5   :  { %5662 = vmatpush3.msra.mxu0 %v4449_v29  ;;  %5700 = vmatpush3.msra.mxu1 %v4481_v31  ;;  %p6355_p4 = pnand %p6354_p3, %p6348_p0 }
 0xfb6   :  { %5663 = vmatprep.subr.mxu0 %v4464_v32  ;;  %5701 = vmatprep.subr.mxu1 %v4496_v38 }
 0xfb7   :  { %5664 = vmatpush3.msra.mxu0 %v4448_v41  ;;  %5702 = vmatpush3.msra.mxu1 %v4480_v42  ;;  %v7420_v42 = vrot.slane %v2845_v15, %v2874_v1 }
 0xfb8   :  { %5665 = vmatprep.subr.mxu0 %v4463_v44  ;;  %5703 = vmatprep.subr.mxu1 %v4495_v50 }
 0xfb9   :  { %5666 = vmatpush3.msra.mxu0 %v4447_v51  ;;  %5704 = vmatpush3.msra.mxu1 %v4479_v52 }
 0xfba   :  { %5667 = vmatprep.subr.mxu0 %v4462_v55  ;;  %5705 = vmatprep.subr.mxu1 %v4494_v56 }
 0xfbb   :  { %5668 = vmatpush3.msra.mxu0 %v4446_v60  ;;  %5706 = vmatpush3.msra.mxu1 %v4478_v3 }
0x1036   :  { %v3000_v53 = vpop.f32.mrf.mxu0  ;;  %v3077_v54 = vpop.f32.mrf.mxu1 }
0x1037   :  { %v7172_v57 = vadd.f32 %v3000_v53, %v7140_v45  ;;  %v7175_v61 = vadd.f32 %v3077_v54, %v7145_v46  ;;  %v2862_v53 = vsub.s32 3, %v7110_v33 }
0x1038   :  { %v7215_v6 = vpop.f32.mrf.mxu0  ;;  %v3079_v40 = vpop.f32.mrf.mxu1 }
0x1039   :  { %v7190_v4 = vmul.f32 0.70710677, %v7172_v57  ;;  %v7202_v8 = vmul.f32 0.70710677, %v7175_v61  ;;  %v2863_v9 = vrot.slane %v7117_v37, %v2862_v53  ;;  %v7387_v28 = vrot.slane %v2845_v15, %v2862_v53 }
0x103b   :  { %v3678_v59 = vsub.f32 0.0, %v7190_v4  ;;  %vm3614_vm3 = vcmp.lt.f32.partialorder %v7190_v4, 0.0  ;;  %v3680_v13 = vsub.f32 0.0, %v7202_v8  ;;  %vm3616_vm4 = vcmp.lt.f32.partialorder %v7202_v8, 0.0  ;;  %v7248_v20 = vpop.f32.mrf.mxu0  ;;  %v3083_v0 = vpop.f32.mrf.mxu1 }
0x103c   :  { %v7339_v7 = vadd.f32 %v3079_v40, %v2863_v9  ;;  %v7354_v17 = vadd.f32 %v7248_v20, %v7140_v45  ;;  %v7365_v22 = vadd.f32 %v3083_v0, %v7145_v46  ;;  %v7375_v45 = vrot.slane %v2845_v15, %v2850_v34  ;;  %v4541_v20 = vld [vmem:[%s8955_s9 + $0x2f8] sm:$0xff] }
0x103d   :  { %v7236_v16 = vsel %vm3614_vm3, %v3678_v59, %v7190_v4  ;;  %v7263_v24 = vsel %vm3616_vm4, %v3680_v13, %v7202_v8  ;;  %v7278_v30 = vpop.f32.mrf.mxu0  ;;  %v3085_v5 = vpop.f32.mrf.mxu1  ;;  %v7334_v59 = vadd.f32 %v7215_v6, %v2855_v62  ;;  %v2870_v13 = vsub.s32 5, %v7110_v33  ;;  %5713 = vmatprep.subr.mxu0 %v4541_v20  ;;  %v4573_v34 = vld [vmem:[%s8955_s9 + $0x3f8] sm:$0xff] }
0x103e   :  { %v3742_v23 = vmul.f32 0.3275911, %v7236_v16  ;;  %v3744_v39 = vmul.f32 0.3275911, %v7263_v24  ;;  %v7358_v19 = vmul.f32 0.70710677, %v7339_v7  ;;  %v7383_v46 = vrot.slane %v2845_v15, %v2858_v36  ;;  %5751 = vmatprep.subr.mxu1 %v4573_v34 }
0x103f   :  { %v7350_v6 = vmul.f32 0.70710677, %v7334_v59  ;;  %v7368_v10 = vrot.slane %v7117_v37, %v2870_v13  ;;  %v4158_v25 = vsub.f32 0.0, %v7236_v16  ;;  %v7396_v31 = vmul.f32 0.70710677, %v7354_v17 }
0x1040   :  { %v3774_v47 = vadd.f32 1.0, %v3742_v23  ;;  %v3776_v63 = vadd.f32 1.0, %v3744_v39  ;;  %9018 = vst [vmem:[#allocation8_spill] sm:$0xff] %v7358_v19  ;;  %v7371_v23 = vrot.slane %v7117_v37, %v2878_v14  ;;  %v3681_v38 = vsub.f32 0.0, %v7358_v19 }
0x1041   :  { %v3154_v54 = vpop.f32.mrf.mxu0  ;;  %v3231_v12 = vpop.f32.mrf.mxu1  ;;  %9017 = vst [vmem:[#allocation7_spill] sm:$0xff] %v7350_v6  ;;  %v3679_v29 = vsub.f32 0.0, %v7350_v6  ;;  %9019 = vst [vmem:[#allocation9_spill] sm:$0xff] %v7396_v31  ;;  %vm3615_vm6 = vcmp.lt.f32.partialorder %v7350_v6, 0.0  ;;  %v7409_v39 = vadd.f32 %v7278_v30, %v2855_v62  ;;  %v7413_v40 = vrot.slane %v2845_v15, %v2866_v27 }
0x1042   :  { %6215 = vrcp.f32 %v3774_v47  ;;  %v7329_v58 = vadd.f32 %v3154_v54, %v7303_v49  ;;  %v7362_v21 = vadd.f32 %v3231_v12, %v7342_v11  ;;  %vm3617_vm7 = vcmp.lt.f32.partialorder %v7358_v19, 0.0 }
0x1043   :  { %6217 = vrcp.f32 %v3776_v63  ;;  %v7417_v41 = vmul.f32 0.70710677, %v7365_v22  ;;  %v4160_v30 = vsub.f32 0.0, %v7263_v24  ;;  %v4190_v27 = vmul.f32 %v4158_v25, %v7236_v16 }
0x1044   :  { %v7337_v2 = vmul.f32 0.70710677, %v7329_v58  ;;  %v7404_v32 = vmul.f32 0.70710677, %v7362_v21  ;;  %v3711_v50 = vsel %vm3615_vm6, %v3679_v29, %v7350_v6  ;;  %v3694_v51 = vsub.f32 0.0, %v7396_v31 }
0x1045   :  { %9020 = vst [vmem:[#allocation10_spill] sm:$0xff] %v7417_v41  ;;  %v7433_v52 = vadd.f32 %v3085_v5, %v2863_v9  ;;  %v3713_v53 = vsel %vm3617_vm7, %v3681_v38, %v7358_v19  ;;  %vm3630_vm9 = vcmp.lt.f32.partialorder %v7396_v31, 0.0  ;;  %v7440_v54 = vmul.f32 0.70710677, %v7409_v39 }
0x1046   :  { %v3682_v18 = vsub.f32 0.0, %v7337_v2  ;;  %vm3618_vm5 = vcmp.lt.f32.partialorder %v7337_v2, 0.0  ;;  %vm3620_vm8 = vcmp.lt.f32.partialorder %v7404_v32, 0.0  ;;  %v3684_v33 = vsub.f32 0.0, %v7404_v32 }
0x1047   :  { %9021 = vst [vmem:[#allocation11_spill] sm:$0xff] %v7440_v54  ;;  %v3696_v56 = vsub.f32 0.0, %v7417_v41  ;;  %v7450_v0 = vrot.slane %v2845_v15, %v2870_v13  ;;  %v4192_v3 = vmul.f32 %v4160_v30, %v7263_v24  ;;  %vm3632_vm10 = vcmp.lt.f32.partialorder %v7417_v41, 0.0 }
0x1048   :  { %v7401_v36 = vsel %vm3618_vm5, %v3682_v18, %v7337_v2  ;;  %v7445_v16 = vsel %vm3620_vm8, %v3684_v33, %v7404_v32  ;;  %v4159_v9 = vsub.f32 0.0, %v3711_v50  ;;  %v4161_v1 = vsub.f32 0.0, %v3713_v53 }
0x1049   :  { %v3746_v48 = vmul.f32 0.3275911, %v7401_v36  ;;  %v3748_v63 = vmul.f32 0.3275911, %v7445_v16  ;;  %v3726_v5 = vsel %vm3630_vm9, %v3694_v51, %v7396_v31  ;;  %v7458_v12 = vmul.f32 0.70710677, %v7433_v52 }
0x104a   :  { %v4222_v18 = vmul.f32 1.442695, %v4190_v27  ;;  %v3695_v20 = vsub.f32 0.0, %v7440_v54  ;;  %v7461_v25 = vrot.slane %v2845_v15, %v2878_v14  ;;  %v3743_v24 = vmul.f32 0.3275911, %v3711_v50  ;;  %v7469_v14 = vpop.f32.mrf.mxu0 }
0x104b   :  { %v3778_v62 = vadd.f32 1.0, %v3746_v48  ;;  %9022 = vst [vmem:[#allocation12_spill] sm:$0xff] %v7458_v12  ;;  %v3780_v13 = vadd.f32 1.0, %v3748_v63  ;;  %v3728_v29 = vsel %vm3632_vm10, %v3696_v56, %v7417_v41  ;;  %vm3631_vm11 = vcmp.lt.f32.partialorder %v7440_v54, 0.0 }
0x104c   :  { %v4174_v30 = vsub.f32 0.0, %v3726_v5  ;;  %v4226_v48 = vmul.f32 1.442695, %v4192_v3  ;;  %v4191_v33 = vmul.f32 %v4159_v9, %v3711_v50  ;;  %v4193_v27 = vmul.f32 %v4161_v1, %v3713_v53  ;;  %v3233_v9 = vpop.f32.mrf.mxu1 }
0x104d   :  { %6219 = vrcp.f32 %v3778_v62  ;;  %v3697_v51 = vsub.f32 0.0, %v7458_v12  ;;  %v4176_v15 = vsub.f32 0.0, %v3728_v29  ;;  %vm3633_vm12 = vcmp.lt.f32.partialorder %v7458_v12, 0.0 }
0x104e   :  { %6221 = vrcp.f32 %v3780_v13  ;;  %v7476_v56 = vmul.f32 0.5, %v7172_v57  ;;  %v3758_v50 = vmul.f32 0.3275911, %v3726_v5  ;;  %v4206_v62 = vmul.f32 %v4174_v30, %v3726_v5  ;;  %v7482_v13 = vpop.f32.mrf.mxu0  ;;  %v7488_v41 = vpop.f32.mrf.mxu1 }
0x104f   :  { %v7392_v37 = vpop.eup %6215  ;;  %6223 = vpow2.f32 %v4222_v18  ;;  %v4224_v1 = vmul.f32 1.442695, %v4191_v33  ;;  %v3760_v43 = vmul.f32 0.3275911, %v3728_v29  ;;  %v7485_v57 = vmul.f32 0.5, %v7175_v61 }
0x1050   :  { %v7422_v44 = vpop.eup %6217  ;;  %v3870_v47 = vmul.f32 1.0614054, %v7392_v37  ;;  %6225 = vpow2.f32 %v4226_v48  ;;  %v3790_v18 = vadd.f32 1.0, %v3758_v50  ;;  %v4254_v30 = vmul.f32 1.442695, %v4206_v62 }
0x1051   :  { %v3872_v55 = vmul.f32 1.0614054, %v7422_v44  ;;  %v3792_v48 = vadd.f32 1.0, %v3760_v43  ;;  %v7514_v62 = vmul.f32 0.5, %v7354_v17  ;;  %v3157_v17 = vadd.f32 %v7469_v14, %v7368_v10 }
0x1052   :  { %v3902_v60 = vadd.f32 -1.4531521, %v3870_v47  ;;  %v3745_v47 = vmul.f32 0.3275911, %v3713_v53 }
0x1053   :  { %v3904_v34 = vadd.f32 -1.4531521, %v3872_v55  ;;  %v3727_v55 = vsel %vm3631_vm11, %v3695_v20, %v7440_v54  ;;  %v3729_v20 = vsel %vm3633_vm12, %v3697_v51, %v7458_v12  ;;  %v8963_v51 = vmov 1.0   ;;  %9025 = vst [vmem:[#allocation15_spill] sm:$0xff] %v7514_v62 }
0x1054   :  { %v3934_v38 = vmul.f32 %v7392_v37, %v3902_v60  ;;  %v3775_v60 = vadd.f32 1.0, %v3743_v24  ;;  %v3777_v3 = vadd.f32 1.0, %v3745_v47  ;;  %v4175_v35 = vsub.f32 0.0, %v3727_v55 }
0x1055   :  { %v3936_v63 = vmul.f32 %v7422_v44, %v3904_v34  ;;  %v4228_v34 = vmul.f32 1.442695, %v4193_v27  ;;  %v4208_v24 = vmul.f32 %v4176_v15, %v3728_v29  ;;  %v3759_v5 = vmul.f32 0.3275911, %v3727_v55  ;;  %v7495_v27 = vpop.f32.mrf.mxu0 }
0x1056   :  { %v3966_v53 = vadd.f32 1.4214138, %v3934_v38  ;;  %6227 = vrcp.f32 %v3775_v60  ;;  %v4177_v33 = vsub.f32 0.0, %v3729_v20  ;;  %v7493_v61 = vsel %vm3614_vm3, -1.0, %v8963_v51 }
0x1057   :  { %v3968_v38 = vadd.f32 1.4214138, %v3936_v63  ;;  %6229 = vrcp.f32 %v3777_v3  ;;  %v4207_v29 = vmul.f32 %v4175_v35, %v3727_v55  ;;  %v7500_v15 = vsel %vm3616_vm4, -1.0, %v8963_v51  ;;  %v7509_v55 = vpop.f32.mrf.mxu1 }
0x1058   :  { %v3998_v47 = vmul.f32 %v7392_v37, %v3966_v53  ;;  %6231 = vpow2.f32 %v4224_v1  ;;  %v4258_v63 = vmul.f32 1.442695, %v4208_v24  ;;  %v3761_v60 = vmul.f32 0.3275911, %v3729_v20 }
0x1059   :  { %6233 = vpow2.f32 %v4228_v34  ;;  %v4000_v50 = vmul.f32 %v7422_v44, %v3968_v38  ;;  %v7504_v53 = vmul.f32 0.5, %v7334_v59  ;;  %v3791_v4 = vadd.f32 1.0, %v3759_v5  ;;  %v3308_v34 = vpop.f32.mrf.mxu0 }
0x105a   :  { %6235 = vrcp.f32 %v3790_v18  ;;  %v4030_v3 = vadd.f32 -0.28449672, %v3998_v47  ;;  %v7507_v35 = vmul.f32 0.5, %v7339_v7  ;;  %v4209_v43 = vmul.f32 %v4177_v33, %v3729_v20  ;;  %v7511_v8 = vpop.eup %6219 }
0x105b   :  { %9023 = vst [vmem:[#allocation13_spill] sm:$0xff] %v7504_v53  ;;  %6237 = vpow2.f32 %v4254_v30  ;;  %v4256_v1 = vmul.f32 1.442695, %v4207_v29  ;;  %v4162_v59 = vsub.f32 0.0, %v7401_v36  ;;  %v7518_v24 = vmul.f32 0.5, %v7365_v22  ;;  %v7523_v38 = vpop.eup %6221 }
0x105c   :  { %9024 = vst [vmem:[#allocation14_spill] sm:$0xff] %v7507_v35  ;;  %6239 = vrcp.f32 %v3792_v48  ;;  %v7521_v7 = vmul.f32 0.5, %v7409_v39  ;;  %v3793_v20 = vadd.f32 1.0, %v3761_v60  ;;  %v4032_v18 = vadd.f32 -0.28449672, %v4000_v50  ;;  %v3385_v39 = vpop.f32.mrf.mxu1  ;;  %v6224_v48 = vpop.eup %6223 }
0x105d   :  { %9026 = vst [vmem:[#allocation16_spill] sm:$0xff] %v7518_v24  ;;  %6241 = vpow2.f32 %v4258_v63  ;;  %v3234_v5 = vadd.f32 %v3233_v9, %v7371_v23  ;;  %v4062_v47 = vmul.f32 %v7392_v37, %v4030_v3  ;;  %v4260_v30 = vmul.f32 1.442695, %v4209_v43 }
0x105e   :  { %9027 = vst [vmem:[#allocation17_spill] sm:$0xff] %v7521_v7  ;;  %6243 = vrcp.f32 %v3791_v4  ;;  %v3874_v22 = vmul.f32 1.0614054, %v7511_v8  ;;  %v7531_v33 = vadd.f32 %v3308_v34, %v7375_v45  ;;  %v7534_v29 = vmul.f32 0.5, %v7433_v52  ;;  %v6226_v4 = vpop.eup %6225 }
0x105f   :  { %6245 = vpow2.f32 %v4256_v1  ;;  %v7537_v63 = vmul.f32 0.5, %v7329_v58  ;;  %v4194_v14 = vmul.f32 %v4162_v59, %v7401_v36  ;;  %v7543_v9 = vsel %vm3618_vm5, -1.0, %v8963_v51 }
0x1060   :  { %9028 = vst [vmem:[#allocation18_spill] sm:$0xff] %v7534_v29  ;;  %6247 = vrcp.f32 %v3793_v20  ;;  %v7546_v60 = vmul.f32 0.5, %v7362_v21  ;;  %v3876_v50 = vmul.f32 1.0614054, %v7523_v38  ;;  %v4064_v52 = vmul.f32 %v7422_v44, %v4032_v18 }
0x1061   :  { %v7550_v3 = vmul.f32 0.70710677, %v3157_v17  ;;  %v7552_v58 = vmul.f32 0.70710677, %v3234_v5  ;;  %v7555_v36 = vadd.f32 %v3385_v39, %v7383_v46  ;;  %v4094_v2 = vadd.f32 0.2548296, %v4062_v47 }
0x1062   :  { %6249 = vpow2.f32 %v4260_v30  ;;  %v3906_v1 = vadd.f32 -1.4531521, %v3874_v22  ;;  %v7560_v21 = vmul.f32 0.70710677, %v7531_v33  ;;  %v4230_v34 = vmul.f32 1.442695, %v4194_v14 }
0x1063   :  { %9029 = vst [vmem:[#allocation19_spill] sm:$0xff] %v7550_v3  ;;  %9030 = vst [vmem:[#allocation20_spill] sm:$0xff] %v7552_v58  ;;  %v7557_v43 = vpop.eup %6227  ;;  %v7567_v20 = vsel %vm3620_vm8, -1.0, %v8963_v51  ;;  %v4164_v18 = vsub.f32 0.0, %v7445_v16  ;;  %v7572_v39 = vadd.f32 %v7482_v13, %v7303_v49  ;;  %v3908_v30 = vadd.f32 -1.4531521, %v3876_v50 }
0x1064   :  { %v7562_v59 = vpop.eup %6229  ;;  %v7576_v22 = vmul.f32 0.5, %v3157_v17  ;;  %v7580_v24 = vadd.f32 %v7488_v41, %v7342_v11  ;;  %v3686_v14 = vsub.f32 0.0, %v7560_v21  ;;  %v4096_v51 = vadd.f32 0.2548296, %v4064_v52 }
0x1065   :  { %v7574_v47 = vpop.eup %6231  ;;  %v3683_v62 = vsub.f32 0.0, %v7550_v3  ;;  %vm3622_vm13 = vcmp.lt.f32.partialorder %v7560_v21, 0.0  ;;  %v7588_v49 = vmul.f32 0.70710677, %v7555_v36  ;;  %v4126_v17 = vmul.f32 %v7392_v37, %v4094_v2 }
0x1066   :  { %9031 = vst [vmem:[#allocation21_spill] sm:$0xff] %v7574_v47  ;;  %9032 = vst [vmem:[#allocation22_spill] sm:$0xff] %v7576_v22  ;;  %v7583_v32 = vpop.eup %6233  ;;  %v3938_v50 = vmul.f32 %v7511_v8, %v3906_v1  ;;  %vm3619_vm14 = vcmp.lt.f32.partialorder %v7550_v3, 0.0  ;;  %v3685_v11 = vsub.f32 0.0, %v7552_v58  ;;  %6251 = vpow2.f32 %v4230_v34 }
0x1067   :  { %9033 = vst [vmem:[#allocation23_spill] sm:$0xff] %v7583_v32  ;;  %v7590_v13 = vpop.eup %6235  ;;  %v4196_v52 = vmul.f32 %v4164_v18, %v7445_v16  ;;  %vm3621_vm15 = vcmp.lt.f32.partialorder %v7552_v58, 0.0  ;;  %v7601_v22 = vmul.f32 0.70710677, %v7572_v39  ;;  %v3940_v37 = vmul.f32 %v7523_v38, %v3908_v30 }
0x1068   :  { %v7596_v41 = vpop.eup %6237  ;;  %v7607_v2 = vmul.f32 0.70710677, %v7580_v24  ;;  %v7611_v1 = vadd.f32 %v7495_v27, %v7368_v10  ;;  %v7616_v16 = vsel %vm3622_vm13, %v3686_v14, %v7560_v21  ;;  %v4128_v18 = vmul.f32 %v7422_v44, %v4096_v51 }
0x1069   :  { %9034 = vst [vmem:[#allocation24_spill] sm:$0xff] %v7596_v41  ;;  %9035 = vst [vmem:[#allocation25_spill] sm:$0xff] %v7601_v22  ;;  %v7603_v29 = vpop.eup %6239  ;;  %v3715_v30 = vsel %vm3619_vm14, %v3683_v62, %v7550_v3  ;;  %v7624_v7 = vmul.f32 0.5, %v3234_v5  ;;  %v3688_v35 = vsub.f32 0.0, %v7588_v49  ;;  %v4286_v10 = vmul.f32 %v6224_v48, %v4126_v17 }
0x106a   :  { %9036 = vst [vmem:[#allocation26_spill] sm:$0xff] %v7607_v2  ;;  %v7618_v34 = vpop.eup %6241  ;;  %v3970_v27 = vadd.f32 1.4214138, %v3938_v50  ;;  %v3717_v14 = vsel %vm3621_vm15, %v3685_v11, %v7552_v58  ;;  %vm3624_vm1 = vcmp.lt.f32.partialorder %v7588_v49, 0.0  ;;  %v3698_v44 = vsub.f32 0.0, %v7601_v22 }
0x106b   :  { %9037 = vst [vmem:[#allocation27_spill] sm:$0xff] %v7618_v34  ;;  %9038 = vst [vmem:[#allocation28_spill] sm:$0xff] %v7624_v7  ;;  %v7627_v41 = vpop.eup %6243  ;;  %v4234_v34 = vmul.f32 1.442695, %v4196_v52  ;;  %v7636_v51 = vadd.f32 %v7509_v55, %v7371_v23  ;;  %v3750_v62 = vmul.f32 0.3275911, %v7616_v16  ;;  %v4288_v11 = vmul.f32 %v6226_v4, %v4128_v18 }
0x106c   :  { %v7639_v5 = vpop.eup %6245  ;;  %v3972_v7 = vadd.f32 1.4214138, %v3940_v37  ;;  %vm3634_vm2 = vcmp.lt.f32.partialorder %v7601_v22, 0.0  ;;  %v3700_v48 = vsub.f32 0.0, %v7607_v2  ;;  %v7644_v17 = vmul.f32 0.70710677, %v7611_v1 }
0x106d   :  { %9039 = vst [vmem:[#allocation29_spill] sm:$0xff] %v7639_v5  ;;  %v7646_v50 = vpop.eup %6247  ;;  %v3747_v52 = vmul.f32 0.3275911, %v3715_v30  ;;  %vm3636_vm3 = vcmp.lt.f32.partialorder %v7607_v2, 0.0  ;;  %v7652_v23 = vsel %vm3624_vm1, %v3688_v35, %v7588_v49  ;;  %v4002_v55 = vmul.f32 %v7511_v8, %v3970_v27 }
0x106e   :  { %v4163_v37 = vsub.f32 0.0, %v3715_v30  ;;  %v3749_v58 = vmul.f32 0.3275911, %v3717_v14  ;;  %v4165_v3 = vsub.f32 0.0, %v3717_v14  ;;  %v4318_v12 = vsub.f32 1.0, %v4286_v10 }
0x106f   :  { %v7655_v31 = vpop.eup %6249  ;;  %v3730_v4 = vsel %vm3634_vm2, %v3698_v44, %v7601_v22  ;;  %v7661_v18 = vmul.f32 0.70710677, %v7636_v51  ;;  %v3782_v53 = vadd.f32 1.0, %v3750_v62  ;;  %v4004_v5 = vmul.f32 %v7523_v38, %v3972_v7 }
0x1070   :  { %9040 = vst [vmem:[#allocation30_spill] sm:$0xff] %v7655_v31  ;;  %v3732_v35 = vsel %vm3636_vm3, %v3700_v48, %v7607_v2  ;;  %v3699_v27 = vsub.f32 0.0, %v7644_v17  ;;  %v3752_v54 = vmul.f32 0.3275911, %v7652_v23  ;;  %v4320_v31 = vsub.f32 1.0, %v4288_v11 }
0x1071   :  { %6253 = vpow2.f32 %v4234_v34  ;;  %v3779_v10 = vadd.f32 1.0, %v3747_v52  ;;  %vm3635_vm4 = vcmp.lt.f32.partialorder %v7644_v17, 0.0  ;;  %v4034_v44 = vadd.f32 -0.28449672, %v4002_v55  ;;  %v3310_v55 = vpop.f32.mrf.mxu0 }
0x1072   :  { %v4195_v22 = vmul.f32 %v4163_v37, %v3715_v30  ;;  %v3781_v32 = vadd.f32 1.0, %v3749_v58  ;;  %v4178_v19 = vsub.f32 0.0, %v3730_v4  ;;  %v4197_v62 = vmul.f32 %v4165_v3, %v3717_v14 }
0x1073   :  { %v4180_v47 = vsub.f32 0.0, %v3732_v35  ;;  %v3701_v7 = vsub.f32 0.0, %v7661_v18  ;;  %6255 = vrcp.f32 %v3782_v53  ;;  %v7671_v6 = vpop.eup %6251  ;;  %v4036_v48 = vadd.f32 -0.28449672, %v4004_v5 }
0x1074   :  { %v3731_v11 = vsel %vm3635_vm4, %v3699_v27, %v7644_v17  ;;  %vm3637_vm5 = vcmp.lt.f32.partialorder %v7661_v18, 0.0  ;;  %v3784_v34 = vadd.f32 1.0, %v3752_v54  ;;  %v4350_v52 = vmul.f32 %v4318_v12, %v7493_v61 }
0x1075   :  { %6257 = vrcp.f32 %v3779_v10  ;;  %v7679_v58 = vmul.f32 0.5, %v7572_v39  ;;  %v3762_v3 = vmul.f32 0.3275911, %v3730_v4  ;;  %v4352_v30 = vmul.f32 %v4320_v31, %v7500_v15 }
0x1076   :  { %v4066_v53 = vmul.f32 %v7511_v8, %v4034_v44  ;;  %v4232_v14 = vmul.f32 1.442695, %v4195_v22  ;;  %v4210_v5 = vmul.f32 %v4178_v19, %v3730_v4  ;;  %6259 = vrcp.f32 %v3781_v32 }
0x1077   :  { %9041 = vst [vmem:[#allocation31_spill] sm:$0xff] %v7679_v58  ;;  %v3764_v37 = vmul.f32 0.3275911, %v3732_v35  ;;  %v4179_v27 = vsub.f32 0.0, %v3731_v11  ;;  %v3733_v54 = vsel %vm3637_vm5, %v3701_v7, %v7661_v18  ;;  %v4068_v12 = vmul.f32 %v7523_v38, %v4036_v48  ;;  %v3387_v48 = vpop.f32.mrf.mxu1 }
0x1078   :  { %v4236_v61 = vmul.f32 1.442695, %v4197_v62  ;;  %v4212_v39 = vmul.f32 %v4180_v47, %v3732_v35  ;;  %6261 = vrcp.f32 %v3784_v34  ;;  %v4382_v10 = vadd.f32 1.0, %v4350_v52 }
0x1079   :  { %v3794_v58 = vadd.f32 1.0, %v3762_v3  ;;  %v3763_v31 = vmul.f32 0.3275911, %v3731_v11  ;;  %v7688_v15 = vadd.f32 %v3310_v55, %v7385_v26  ;;  %v4098_v19 = vadd.f32 0.2548296, %v4066_v53 }
0x107a   :  { %v4262_v22 = vmul.f32 1.442695, %v4210_v5  ;;  %v7691_v32 = vmul.f32 0.5, %v7580_v24  ;;  %v4181_v4 = vsub.f32 0.0, %v3733_v54  ;;  %v4384_v44 = vadd.f32 1.0, %v4352_v30 }
0x107b   :  { %6263 = vpow2.f32 %v4232_v14  ;;  %v3796_v7 = vadd.f32 1.0, %v3764_v37  ;;  %v4211_v2 = vmul.f32 %v4179_v27, %v3731_v11  ;;  %v4100_v62 = vadd.f32 0.2548296, %v4068_v12  ;;  %v3314_v14 = vpop.f32.mrf.mxu0 }
0x107c   :  { %9042 = vst [vmem:[#allocation32_spill] sm:$0xff] %v7691_v32  ;;  %6265 = vpow2.f32 %v4236_v61  ;;  %v4266_v47 = vmul.f32 1.442695, %v4212_v39  ;;  %v3765_v35 = vmul.f32 0.3275911, %v3733_v54  ;;  %v7694_v34 = vmul.f32 %v4382_v10, %v7476_v56 }
0x107d   :  { %6267 = vrcp.f32 %v3794_v58  ;;  %v3795_v52 = vadd.f32 1.0, %v3763_v31  ;;  %v7697_v3 = vmul.f32 0.70710677, %v7688_v15  ;;  %v4130_v53 = vmul.f32 %v7511_v8, %v4098_v19 }
0x107e   :  { %v6254_v24 = vpop.eup %6253  ;;  %6269 = vpow2.f32 %v4262_v22  ;;  %v4213_v30 = vmul.f32 %v4181_v4, %v3733_v54  ;;  %v7701_v11 = vadd.f32 %v3387_v48, %v7387_v28  ;;  %v7704_v5 = vmul.f32 %v4384_v44, %v7485_v57 }
0x107f   :  { %6271 = vrcp.f32 %v3796_v7  ;;  %v4264_v56 = vmul.f32 1.442695, %v4211_v2  ;;  %v4166_v58 = vsub.f32 0.0, %v7616_v16  ;;  %v4132_v37 = vmul.f32 %v7523_v38, %v4100_v62 }
0x1080   :  { %v7707_v55 = vpop.eup %6255  ;;  %6273 = vpow2.f32 %v4266_v47  ;;  %v7711_v8 = vmul.f32 0.5, %v7611_v1  ;;  %v3797_v27 = vadd.f32 1.0, %v3765_v35  ;;  %v7714_v54 = vmul.f32 0.5, %v7636_v51  ;;  %v3391_v1 = vpop.f32.mrf.mxu1 }
0x1081   :  { %6275 = vrcp.f32 %v3795_v52  ;;  %v3687_v57 = vsub.f32 0.0, %v7697_v3  ;;  %v7718_v12 = vadd.f32 %v3314_v14, %v7375_v45  ;;  %v4290_v61 = vmul.f32 %v7671_v6, %v4130_v53  ;;  %v3316_v45 = vpop.f32.mrf.mxu0 }
0x1082   :  { %9043 = vst [vmem:[#allocation33_spill] sm:$0xff] %v7711_v8  ;;  %9044 = vst [vmem:[#allocation34_spill] sm:$0xff] %v7714_v54  ;;  %v7720_v2 = vpop.eup %6257  ;;  %v4268_v39 = vmul.f32 1.442695, %v4213_v30  ;;  %vm3623_vm8 = vcmp.lt.f32.partialorder %v7697_v3, 0.0  ;;  %6277 = vpow2.f32 %v4264_v56  ;;  %v4198_v10 = vmul.f32 %v4166_v58, %v7616_v16  ;;  %v3393_v53 = vpop.f32.mrf.mxu1 }
0x1083   :  { %9045 = vst [vmem:[#allocation35_spill] sm:$0xff] %v7718_v12  ;;  %v7725_v38 = vmul.f32 0.70710677, %v7701_v11  ;;  %v3878_v51 = vmul.f32 1.0614054, %v7707_v55  ;;  %v4168_v31 = vsub.f32 0.0, %v7652_v23  ;;  %v7730_v19 = vpop.eup %6259  ;;  %v4292_v22 = vmul.f32 %v6254_v24, %v4132_v37 }
0x1084   :  { %6279 = vrcp.f32 %v3797_v27  ;;  %v7733_v6 = vmul.f32 0.5, %v7531_v33  ;;  %v7736_v4 = vmul.f32 0.5, %v7555_v36  ;;  %v9049_v7 = vmov 1.0  }
0x1085   :  { %9046 = vst [vmem:[#allocation36_spill] sm:$0xff] %v7725_v38  ;;  %v7738_v44 = vpop.eup %6261  ;;  %v7743_v48 = vsel %vm3622_vm13, -1.0, %v9049_v7  ;;  %v3719_v16 = vsel %vm3623_vm8, %v3687_v57, %v7697_v3  ;;  %v7749_v62 = vmul.f32 0.70710677, %v7718_v12  ;;  %v7752_v33 = vadd.f32 %v3391_v1, %v7383_v46 }
0x1086   :  { %9047 = vst [vmem:[#allocation37_spill] sm:$0xff] %v7733_v6  ;;  %9048 = vst [vmem:[#allocation38_spill] sm:$0xff] %v7736_v4  ;;  %v4322_v47 = vsub.f32 1.0, %v4290_v61  ;;  %6281 = vpow2.f32 %v4268_v39  ;;  %v3689_v36 = vsub.f32 0.0, %v7725_v38  ;;  %v7756_v35 = vadd.f32 %v3316_v45, %v7385_v26 }
0x1087   :  { %9050 = vst [vmem:[#allocation39_spill] sm:$0xff] %v7743_v48  ;;  %9051 = vst [vmem:[#allocation40_spill] sm:$0xff] %v7749_v62  ;;  %v3910_v21 = vadd.f32 -1.4531521, %v3878_v51  ;;  %v4238_v52 = vmul.f32 1.442695, %v4198_v10  ;;  %v4200_v24 = vmul.f32 %v4168_v31, %v7652_v23  ;;  %v7787_v1 = vadd.f32 %v3393_v53, %v7387_v28 }
0x1088   :  { %9052 = vst [vmem:[#allocation41_spill] sm:$0xff] %v7752_v33  ;;  %9053 = vst [vmem:[#allocation42_spill] sm:$0xff] %v7756_v35  ;;  %vm8993_vm13 = vcmp.lt.f32.partialorder %v7725_v38, 0.0  ;;  %v7760_v30 = vpop.eup %6263  ;;  %v4324_v14 = vsub.f32 1.0, %v4292_v22  ;;  %v3880_v46 = vmul.f32 1.0614054, %v7738_v44  ;;  %v4354_v10 = vmul.f32 %v4322_v47, %v7543_v9 }
0x1089   :  { %v3751_v56 = vmul.f32 0.3275911, %v3719_v16  ;;  %v4167_v58 = vsub.f32 0.0, %v3719_v16  ;;  %v7763_v37 = vpop.eup %6265  ;;  %v7768_v26 = vsel %vm3624_vm1, -1.0, %v9049_v7  ;;  %v7771_v27 = vmul.f32 0.5, %v7688_v15  ;;  %9058 = vst [vmem:[#allocation47_spill] sm:$0xff] %v7787_v1  ;;  %v3462_v15 = vpop.f32.mrf.mxu0 }
0x108a   :  { %9054 = vst [vmem:[#allocation43_spill] sm:$0xff] %v7768_v26  ;;  %v3702_v23 = vsub.f32 0.0, %v7749_v62  ;;  %v7775_v57 = vmul.f32 0.70710677, %v7752_v33  ;;  %v7777_v61 = vpop.eup %6267  ;;  %v3721_v39 = vsel %vm8993_vm13, %v3689_v36, %v7725_v38  ;;  %vm8977_vm0 = vcmp.lt.f32.partialorder %v7749_v62, 0.0  ;;  %v9113_v3 = vld [vmem:[#allocation33_spill] sm:$0xff] }
0x108b   :  { %9055 = vst [vmem:[#allocation44_spill] sm:$0xff] %v7771_v27  ;;  %v7784_v49 = vmul.f32 0.70710677, %v7756_v35  ;;  %v7789_v51 = vpop.eup %6269  ;;  %v3942_v31 = vmul.f32 %v7707_v55, %v3910_v21  ;;  %6283 = vpow2.f32 %v4238_v52  ;;  %v4242_v45 = vmul.f32 1.442695, %v4200_v24  ;;  %v3539_v24 = vpop.f32.mrf.mxu1 }
0x108c   :  { %9056 = vst [vmem:[#allocation45_spill] sm:$0xff] %v7775_v57  ;;  %v7793_v22 = vpop.eup %6271  ;;  %v4356_v36 = vmul.f32 %v4324_v14, %v7567_v20  ;;  %v3912_v4 = vadd.f32 -1.4531521, %v3880_v46  ;;  %v3783_v6 = vadd.f32 1.0, %v3751_v56  ;;  %v4199_v35 = vmul.f32 %v4167_v58, %v3719_v16  ;;  %v3464_v26 = vpop.f32.mrf.mxu0 }
0x108d   :  { %9057 = vst [vmem:[#allocation46_spill] sm:$0xff] %v7784_v49  ;;  %v7796_v33 = vpop.eup %6273  ;;  %v3753_v28 = vmul.f32 0.3275911, %v3721_v39  ;;  %v3734_v53 = vsel %vm8977_vm0, %v3702_v23, %v7749_v62  ;;  %v3704_v9 = vsub.f32 0.0, %v7775_v57  ;;  %v7803_v47 = vadd.f32 %v3462_v15, %v7413_v40 }
0x108e   :  { %v7805_v21 = vpop.eup %6275  ;;  %v4169_v52 = vsub.f32 0.0, %v3721_v39  ;;  %vm8981_vm1 = vcmp.lt.f32.partialorder %v7775_v57, 0.0  ;;  %v3703_v20 = vsub.f32 0.0, %v7784_v49  ;;  %v7810_v16 = vmul.f32 0.70710677, %v7787_v1 }
0x108f   :  { %9059 = vst [vmem:[#allocation48_spill] sm:$0xff] %v7803_v47  ;;  %v7812_v14 = vadd.f32 1.0, %v4354_v10  ;;  %v3974_v46 = vadd.f32 1.4214138, %v3942_v31  ;;  %6285 = vpow2.f32 %v4242_v45  ;;  %vm8985_vm0 = vcmp.lt.f32.partialorder %v7784_v49, 0.0  ;;  %v7815_v56 = vpop.eup %6277 }
0x1090   :  { %9060 = vst [vmem:[#allocation49_spill] sm:$0xff] %v7810_v16  ;;  %v7817_v58 = vadd.f32 1.0, %v4356_v36  ;;  %v3944_v23 = vmul.f32 %v7738_v44, %v3912_v4  ;;  %v4240_v15 = vmul.f32 1.442695, %v4199_v35  ;;  %v4182_v62 = vsub.f32 0.0, %v3734_v53 }
0x1091   :  { %v7820_v48 = vpop.eup %6279  ;;  %v3785_v1 = vadd.f32 1.0, %v3753_v28  ;;  %v3736_v10 = vsel %vm8981_vm1, %v3704_v9, %v7775_v57  ;;  %v7826_v31 = vmul.f32 0.70710677, %v7803_v47  ;;  %v7829_v45 = vadd.f32 %v3539_v24, %v7420_v42  ;;  %v3541_v24 = vpop.f32.mrf.mxu1 }
0x1092   :  { %6287 = vrcp.f32 %v3783_v6  ;;  %v4201_v36 = vmul.f32 %v4169_v52, %v3721_v39  ;;  %v3735_v4 = vsel %vm8985_vm0, %v3703_v20, %v7784_v49  ;;  %v3705_v35 = vsub.f32 0.0, %v7810_v16 }
0x1093   :  { %9061 = vst [vmem:[#allocation50_spill] sm:$0xff] %v7826_v31  ;;  %9062 = vst [vmem:[#allocation51_spill] sm:$0xff] %v7829_v45  ;;  %v7835_v12 = vpop.eup %6281  ;;  %v4006_v28 = vmul.f32 %v7707_v55, %v3974_v46  ;;  %v3766_v27 = vmul.f32 0.3275911, %v3734_v53  ;;  %vm8987_vm1 = vcmp.lt.f32.partialorder %v7810_v16, 0.0  ;;  %v7840_v9 = vadd.f32 %v3464_v26, %v7450_v0 }
0x1094   :  { %v3976_v47 = vadd.f32 1.4214138, %v3944_v23  ;;  %6289 = vpow2.f32 %v4240_v15  ;;  %v4214_v6 = vmul.f32 %v4182_v62, %v3734_v53  ;;  %v3768_v39 = vmul.f32 0.3275911, %v3736_v10 }
0x1095   :  { %9063 = vst [vmem:[#allocation52_spill] sm:$0xff] %v7840_v9  ;;  %6291 = vrcp.f32 %v3785_v1  ;;  %v4183_v52 = vsub.f32 0.0, %v3735_v4  ;;  %v3690_v20 = vsub.f32 0.0, %v7826_v31  ;;  %v7844_v57 = vmul.f32 0.70710677, %v7829_v45 }
0x1096   :  { %v4244_v49 = vmul.f32 1.442695, %v4201_v36  ;;  %v3737_v46 = vsel %vm8987_vm1, %v3705_v35, %v7810_v16  ;;  %vm8991_vm0 = vcmp.lt.f32.partialorder %v7826_v31, 0.0  ;;  %v7851_v26 = vadd.f32 %v3541_v24, %v7461_v25 }
0x1097   :  { %9064 = vst [vmem:[#allocation53_spill] sm:$0xff] %v7844_v57  ;;  %v4038_v23 = vadd.f32 -0.28449672, %v4006_v28  ;;  %v3798_v62 = vadd.f32 1.0, %v3766_v27  ;;  %v4184_v53 = vsub.f32 0.0, %v3736_v10  ;;  %v4008_v45 = vmul.f32 %v7738_v44, %v3976_v47 }
0x1098   :  { %9065 = vst [vmem:[#allocation54_spill] sm:$0xff] %v7851_v26  ;;  %v7854_v1 = vmul.f32 0.70710677, %v7840_v9  ;;  %v7856_v15 = vpop.eup %6283  ;;  %v4270_v36 = vmul.f32 1.442695, %v4214_v6  ;;  %v3800_v32 = vadd.f32 1.0, %v3768_v39  ;;  %v4215_v8 = vmul.f32 %v4183_v52, %v3735_v4  ;;  %v3468_v39 = vpop.f32.mrf.mxu0 }
0x1099   :  { %v3767_v54 = vmul.f32 0.3275911, %v3735_v4  ;;  %v4185_v35 = vsub.f32 0.0, %v3737_v46  ;;  %v7862_v24 = vsel %vm8991_vm0, %v3690_v20, %v7826_v31  ;;  %v3692_v27 = vsub.f32 0.0, %v7844_v57 }
0x109a   :  { %9066 = vst [vmem:[#allocation55_spill] sm:$0xff] %v7854_v1  ;;  %9067 = vst [vmem:[#allocation56_spill] sm:$0xff] %v7862_v24  ;;  %6293 = vpow2.f32 %v4244_v49  ;;  %v3769_v28 = vmul.f32 0.3275911, %v3737_v46  ;;  %vm8998_vm1 = vcmp.lt.f32.partialorder %v7844_v57, 0.0  ;;  %v4070_v47 = vmul.f32 %v7707_v55, %v4038_v23 }
0x109b   :  { %v7867_v16 = vmul.f32 0.70710677, %v7851_v26  ;;  %6295 = vrcp.f32 %v3798_v62  ;;  %v4216_v6 = vmul.f32 %v4184_v53, %v3736_v10  ;;  %v3691_v4 = vsub.f32 0.0, %v7854_v1 }
0x109c   :  { %v7871_v52 = vpop.eup %6285  ;;  %v4040_v20 = vadd.f32 -0.28449672, %v4008_v45  ;;  %v3799_v31 = vadd.f32 1.0, %v3767_v54  ;;  %v3754_v9 = vmul.f32 0.3275911, %v7862_v24  ;;  %vm3627_vm0 = vcmp.lt.f32.partialorder %v7854_v1, 0.0 }
0x109d   :  { %9068 = vst [vmem:[#allocation57_spill] sm:$0xff] %v7867_v16  ;;  %6297 = vrcp.f32 %v3800_v32  ;;  %v4272_v49 = vmul.f32 1.442695, %v4215_v8  ;;  %v4217_v38 = vmul.f32 %v4185_v35, %v3737_v46  ;;  %v7878_v23 = vsel %vm8998_vm1, %v3692_v27, %v7844_v57  ;;  %v3545_v27 = vpop.f32.mrf.mxu1 }
0x109e   :  { %9069 = vst [vmem:[#allocation58_spill] sm:$0xff] %v7878_v23  ;;  %6299 = vpow2.f32 %v4270_v36  ;;  %v3801_v10 = vadd.f32 1.0, %v3769_v28  ;;  %v3693_v62 = vsub.f32 0.0, %v7867_v16  ;;  %v7882_v53 = vadd.f32 %v3468_v39, %v7413_v40 }
0x109f   :  { %v7884_v54 = vpop.eup %6287  ;;  %v4102_v45 = vadd.f32 0.2548296, %v4070_v47  ;;  %v3723_v32 = vsel %vm3627_vm0, %v3691_v4, %v7854_v1  ;;  %vm8999_vm13 = vcmp.lt.f32.partialorder %v7867_v16, 0.0  ;;  %v3871_v8 = vmul.f32 1.0614054, %v7557_v43 }
0x10a0   :  { %9070 = vst [vmem:[#allocation59_spill] sm:$0xff] %v7882_v53  ;;  %v4072_v46 = vmul.f32 %v7738_v44, %v4040_v20  ;;  %6301 = vrcp.f32 %v3799_v31  ;;  %v3786_v36 = vadd.f32 1.0, %v3754_v9  ;;  %v3756_v35 = vmul.f32 0.3275911, %v7878_v23 }
0x10a1   :  { %v7893_v40 = vpop.eup %6289  ;;  %v7897_v28 = vmul.f32 %v7812_v14, %v7537_v63  ;;  %v7900_v47 = vmul.f32 0.5, %v7701_v11  ;;  %6303 = vpow2.f32 %v4272_v49  ;;  %v4276_v4 = vmul.f32 1.442695, %v4217_v38 }
0x10a2   :  { %v7902_v39 = vpop.eup %6291  ;;  %v3755_v57 = vmul.f32 0.3275911, %v3723_v32  ;;  %v3725_v31 = vsel %vm8999_vm13, %v3693_v62, %v7867_v16  ;;  %v7908_v9 = vmul.f32 0.70710677, %v7882_v53  ;;  %v3903_v20 = vadd.f32 -1.4531521, %v3871_v8 }
0x10a3   :  { %v7912_v63 = vmul.f32 %v7817_v58, %v7546_v60  ;;  %v4134_v11 = vmul.f32 %v7707_v55, %v4102_v45  ;;  %6305 = vrcp.f32 %v3801_v10  ;;  %v7916_v38 = vadd.f32 %v3545_v27, %v7420_v42 }
0x10a4   :  { %9071 = vst [vmem:[#allocation60_spill] sm:$0xff] %v7908_v9  ;;  %v4104_v14 = vadd.f32 0.2548296, %v4072_v46  ;;  %v7918_v49 = vmul.f32 1.442695, %v4216_v6  ;;  %6307 = vrcp.f32 %v3786_v36  ;;  %v3788_v26 = vadd.f32 1.0, %v3756_v35 }
0x10a5   :  { %9072 = vst [vmem:[#allocation61_spill] sm:$0xff] %v7916_v38  ;;  %v4171_v62 = vsub.f32 0.0, %v3723_v32  ;;  %v3757_v16 = vmul.f32 0.3275911, %v3725_v31  ;;  %v3935_v53 = vmul.f32 %v7557_v43, %v3903_v20  ;;  %v3873_v8 = vmul.f32 1.0614054, %v7562_v59 }
0x10a6   :  { %9073 = vst [vmem:[#allocation62_spill] sm:$0xff] %v7918_v49  ;;  %6309 = vpow2.f32 %v4276_v4  ;;  %v3787_v60 = vadd.f32 1.0, %v3755_v57  ;;  %v4173_v58 = vsub.f32 0.0, %v3725_v31  ;;  %v3706_v55 = vsub.f32 0.0, %v7908_v9 }
0x10a7   :  { %v7923_v10 = vpop.eup %6293  ;;  %v7926_v42 = vmul.f32 %v7856_v15, %v4134_v11  ;;  %v7929_v6 = vmul.f32 0.70710677, %v7916_v38  ;;  %v3967_v45 = vadd.f32 1.4214138, %v3935_v53  ;;  %v3905_v46 = vadd.f32 -1.4531521, %v3873_v8  ;;  %v3470_v8 = vpop.f32.mrf.mxu0 }
0x10a8   :  { %v7931_v36 = vpop.eup %6295  ;;  %v7934_v35 = vmul.f32 %v7738_v44, %v4104_v14  ;;  %6311 = vrcp.f32 %v3788_v26  ;;  %vm3642_vm1 = vcmp.lt.f32.partialorder %v7908_v9, 0.0  ;;  %v3887_v57 = vmul.f32 1.0614054, %v7627_v41 }
0x10a9   :  { %9074 = vst [vmem:[#allocation63_spill] sm:$0xff] %v7926_v42  ;;  %9075 = vst [vmem:[#allocation64_spill] sm:$0xff] %v7929_v6  ;;  %v7938_v27 = vmul.f32 %v4171_v62, %v3723_v32  ;;  %v3789_v4 = vadd.f32 1.0, %v3757_v16  ;;  %v3999_v15 = vmul.f32 %v7557_v43, %v3967_v45  ;;  %v3937_v20 = vmul.f32 %v7562_v59, %v3905_v46 }
0x10aa   :  { %v7942_v11 = vpop.eup %6297  ;;  %6313 = vrcp.f32 %v3787_v60  ;;  %v7944_v53 = vmul.f32 %v4173_v58, %v3725_v31  ;;  %v3919_v44 = vadd.f32 -1.4531521, %v3887_v57  ;;  %v3889_v26 = vmul.f32 1.0614054, %v7646_v50 }
0x10ab   :  { %9076 = vst [vmem:[#allocation65_spill] sm:$0xff] %v7938_v27  ;;  %v7947_v14 = vpop.eup %6299  ;;  %v7952_v32 = vsel %vm3642_vm1, %v3706_v55, %v7908_v9  ;;  %v3708_v16 = vsub.f32 0.0, %v7929_v6  ;;  %v4031_v62 = vadd.f32 -0.28449672, %v3999_v15  ;;  %v3969_v45 = vadd.f32 1.4214138, %v3937_v20  ;;  %v3547_v15 = vpop.f32.mrf.mxu1 }
0x10ac   :  { %9077 = vst [vmem:[#allocation66_spill] sm:$0xff] %v7944_v53  ;;  %9078 = vst [vmem:[#allocation67_spill] sm:$0xff] %v7947_v14  ;;  %vm3644_vm13 = vcmp.lt.f32.partialorder %v7929_v6, 0.0  ;;  %v3951_v31 = vmul.f32 %v7627_v41, %v3919_v44  ;;  %v3921_v60 = vadd.f32 -1.4531521, %v3889_v26  ;;  %6315 = vrcp.f32 %v3789_v4  ;;  %v9094_v27 = vld [vmem:[#allocation30_spill] sm:$0xff] }
0x10ad   :  { %9079 = vst [vmem:[#allocation68_spill] sm:$0xff] %v7952_v32  ;;  %v3886_v58 = vmul.f32 1.0614054, %v7590_v13  ;;  %v7958_v46 = vpop.eup %6301  ;;  %v7961_v57 = vadd.f32 %v3470_v8, %v7450_v0  ;;  %v4063_v55 = vmul.f32 %v7557_v43, %v4031_v62  ;;  %v4001_v38 = vmul.f32 %v7562_v59, %v3969_v45 }
0x10ae   :  { %v7965_v9 = vpop.eup %6303  ;;  %v3983_v20 = vadd.f32 1.4214138, %v3951_v31  ;;  %v3953_v1 = vmul.f32 %v7646_v50, %v3921_v60  ;;  %v3888_v26 = vmul.f32 1.0614054, %v7603_v29  ;;  %v7970_v14 = vmul.f32 0.3275911, %v7952_v32 }
0x10af   :  { %9080 = vst [vmem:[#allocation69_spill] sm:$0xff] %v7961_v57  ;;  %9081 = vst [vmem:[#allocation70_spill] sm:$0xff] %v7965_v9  ;;  %v3918_v44 = vadd.f32 -1.4531521, %v3886_v58  ;;  %v7975_v0 = vsel %vm3644_vm13, %v3708_v16, %v7929_v6  ;;  %v4095_v4 = vadd.f32 0.2548296, %v4063_v55  ;;  %v7987_v23 = vadd.f32 %v3547_v15, %v7461_v25 }
0x10b0   :  { %9082 = vst [vmem:[#allocation71_spill] sm:$0xff] %v7975_v0  ;;  %v4033_v8 = vadd.f32 -0.28449672, %v4001_v38  ;;  %v7977_v62 = vpop.eup %6305  ;;  %v4015_v45 = vmul.f32 %v7627_v41, %v3983_v20  ;;  %v3985_v31 = vadd.f32 1.4214138, %v3953_v1  ;;  %v3647_v25 = vsel %vm3615_vm6, -1.0, %v9049_v7 }
0x10b1   :  { %v3950_v60 = vmul.f32 %v7590_v13, %v3918_v44  ;;  %v3920_v58 = vadd.f32 -1.4531521, %v3888_v26  ;;  %v7981_v9 = vpop.eup %6307  ;;  %v7984_v32 = vmul.f32 0.70710677, %v7961_v57  ;;  %v4127_v16 = vmul.f32 %v7557_v43, %v4095_v4  ;;  %v9086_v15 = vld [vmem:[#allocation21_spill] sm:$0xff] }
0x10b2   :  { %9083 = vst [vmem:[#allocation72_spill] sm:$0xff] %v7981_v9  ;;  %v4065_v38 = vmul.f32 %v7562_v59, %v4033_v8  ;;  %v4047_v55 = vadd.f32 -0.28449672, %v4015_v45  ;;  %v4017_v6 = vmul.f32 %v7646_v50, %v3985_v31  ;;  %v7996_v26 = vmul.f32 0.3275911, %v7975_v0 }
0x10b3   :  { %v3982_v20 = vadd.f32 1.4214138, %v3950_v60  ;;  %v3952_v1 = vmul.f32 %v7603_v29, %v3920_v58  ;;  %v7993_v44 = vpop.eup %6309  ;;  %v4287_v9 = vmul.f32 %v9086_v15, %v4127_v16  ;;  %v3875_v24 = vmul.f32 1.0614054, %v7720_v2  ;;  %v9089_v15 = vld [vmem:[#allocation23_spill] sm:$0xff] }
0x10b4   :  { %9084 = vst [vmem:[#allocation73_spill] sm:$0xff] %v7993_v44  ;;  %v4097_v43 = vadd.f32 0.2548296, %v4065_v38  ;;  %v4079_v4 = vmul.f32 %v7627_v41, %v4047_v55  ;;  %v4049_v8 = vadd.f32 -0.28449672, %v4017_v6  ;;  %vm3643_vm6 = vcmp.lt.f32.partialorder %v7984_v32, 0.0 }
0x10b5   :  { %v4014_v45 = vmul.f32 %v7590_v13, %v3982_v20  ;;  %v3984_v31 = vadd.f32 1.4214138, %v3952_v1  ;;  %v8004_v60 = vpop.eup %6311  ;;  %v4319_v44 = vsub.f32 1.0, %v4287_v9  ;;  %v3649_v1 = vsel %vm3617_vm7, -1.0, %v9049_v7 }
0x10b6   :  { %9087 = vst [vmem:[#allocation7_spill] sm:$0xff] %v8004_v60  ;;  %v4129_v0 = vmul.f32 %v7562_v59, %v4097_v43  ;;  %v4111_v57 = vadd.f32 0.2548296, %v4079_v4  ;;  %v4081_v49 = vmul.f32 %v7646_v50, %v4049_v8  ;;  %v3907_v9 = vadd.f32 -1.4531521, %v3875_v24 }
0x10b7   :  { %v4046_v16 = vadd.f32 -0.28449672, %v4014_v45  ;;  %v4016_v38 = vmul.f32 %v7603_v29, %v3984_v31  ;;  %v8011_v55 = vpop.eup %6313  ;;  %v4351_v6 = vmul.f32 %v4319_v44, %v3647_v25  ;;  %v3663_v44 = vsel %vm3631_vm11, -1.0, %v9049_v7 }
0x10b8   :  { %v4289_v58 = vmul.f32 %v9089_v15, %v4129_v0  ;;  %v4143_v59 = vmul.f32 %v7627_v41, %v4111_v57  ;;  %v4113_v43 = vadd.f32 0.2548296, %v4081_v49  ;;  %v3939_v25 = vmul.f32 %v7720_v2, %v3907_v9  ;;  %v9091_v0 = vld [vmem:[#allocation29_spill] sm:$0xff]  ;;  %v4525_v9 = vld [vmem:[%s8955_s9 + $0x278] sm:$0xff] }
0x10b9   :  { %v4078_v4 = vmul.f32 %v7590_v13, %v4046_v16  ;;  %v4048_v60 = vadd.f32 -0.28449672, %v4016_v38  ;;  %v4383_v8 = vadd.f32 1.0, %v4351_v6  ;;  %v8024_v20 = vpop.eup %6315  ;;  %v9092_v16 = vld [vmem:[#allocation13_spill] sm:$0xff]  ;;  %v3665_v6 = vsel %vm3633_vm12, -1.0, %v9049_v7 }
0x10ba   :  { %v4321_v45 = vsub.f32 1.0, %v4289_v58  ;;  %v4303_v24 = vmul.f32 %v9091_v0, %v4143_v59  ;;  %v4145_v41 = vmul.f32 %v7646_v50, %v4113_v43  ;;  %v3971_v31 = vadd.f32 1.4214138, %v3939_v25 }
0x10bb   :  { %v4110_v49 = vadd.f32 0.2548296, %v4078_v4  ;;  %v4080_v57 = vmul.f32 %v7603_v29, %v4048_v60  ;;  %v4415_v38 = vmul.f32 %v4383_v8, %v9092_v16  ;;  %v3662_v8 = vsel %vm3630_vm9, -1.0, %v9049_v7  ;;  %v9097_v16 = vld [vmem:[#allocation14_spill] sm:$0xff]  ;;  %v9098_v4 = vld [vmem:[#allocation27_spill] sm:$0xff] }
0x10bc   :  { %v4353_v15 = vmul.f32 %v4321_v45, %v3649_v1  ;;  %v4335_v53 = vsub.f32 1.0, %v4303_v24  ;;  %v4305_v59 = vmul.f32 %v9094_v27, %v4145_v41  ;;  %v4540_v1 = vld [vmem:[%s8955_s9 + $0x2f0] sm:$0xff]  ;;  %v4003_v45 = vmul.f32 %v7720_v2, %v3971_v31  ;;  %v4539_v24 = vld [vmem:[%s8955_s9 + $0x2e8] sm:$0xff] }
0x10bd   :  { %v4142_v50 = vmul.f32 %v7590_v13, %v4110_v49  ;;  %v4112_v43 = vadd.f32 0.2548296, %v4080_v57  ;;  %4773 = vmatprep.mubr.f32.mxu0 %v4415_v38  ;;  %v3877_v25 = vmul.f32 1.0614054, %v7730_v19  ;;  %v4524_v13 = vld [vmem:[%s8955_s9 + $0x270] sm:$0xff]  ;;  %v9096_v41 = vld [vmem:[#allocation24_spill] sm:$0xff] }
0x10be   :  { %v4385_v60 = vadd.f32 1.0, %v4353_v15  ;;  %4774 = vmatmul.mubr.f32.vlgmr.msra.gmra.mxu0 %v7694_v34  ;;  %v4367_v27 = vmul.f32 %v4335_v53, %v3663_v44  ;;  %v4337_v0 = vsub.f32 1.0, %v4305_v59  ;;  %v4035_v15 = vadd.f32 -0.28449672, %v4003_v45  ;;  %v4557_v53 = vld [vmem:[%s8955_s9 + $0x378] sm:$0xff] }
0x10bf   :  { %v4302_v49 = vmul.f32 %v9096_v41, %v4142_v50  ;;  %v4144_v57 = vmul.f32 %v7603_v29, %v4112_v43  ;;  %5714 = vmatpush3.msra.mxu0 %v4525_v9  ;;  %v3909_v58 = vadd.f32 -1.4531521, %v3877_v25  ;;  %v3891_v34 = vmul.f32 1.0614054, %v7805_v21  ;;  %v4523_v29 = vld [vmem:[%s8955_s9 + $0x268] sm:$0xff]  ;;  %v4572_v9 = vld [vmem:[%s8955_s9 + $0x3f0] sm:$0xff] }
0x10c0   :  { %v4417_v38 = vmul.f32 %v4385_v60, %v9097_v16  ;;  %5715 = vmatprep.subr.mxu0 %v4540_v1  ;;  %v4399_v44 = vadd.f32 1.0, %v4367_v27  ;;  %v4369_v31 = vmul.f32 %v4337_v0, %v3665_v6  ;;  %v4556_v50 = vld [vmem:[%s8955_s9 + $0x370] sm:$0xff]  ;;  %v3664_v6 = vsel %vm3632_vm10, -1.0, %v9049_v7  ;;  %v4538_v16 = vld [vmem:[%s8955_s9 + $0x2e0] sm:$0xff]  ;;  %v4569_v43 = vld [vmem:[%s8955_s9 + $0x3d8] sm:$0xff] }
0x10c1   :  { %v4334_v59 = vsub.f32 1.0, %v4302_v49  ;;  %v4304_v42 = vmul.f32 %v9098_v4, %v4144_v57  ;;  %5716 = vmatpush3.msra.mxu0 %v4524_v13  ;;  %v4067_v60 = vmul.f32 %v7720_v2, %v4035_v15  ;;  %v3941_v1 = vmul.f32 %v7730_v19, %v3909_v58  ;;  %v9100_v25 = vld [vmem:[#allocation17_spill] sm:$0xff]  ;;  %v4571_v13 = vld [vmem:[%s8955_s9 + $0x3e8] sm:$0xff]  ;;  %v9102_v58 = vld [vmem:[#allocation18_spill] sm:$0xff] }
0x10c2   :  { %4848 = vmatprep.mubr.f32.mxu1 %v4417_v38  ;;  %v3923_v45 = vadd.f32 -1.4531521, %v3891_v34  ;;  %v4431_v27 = vmul.f32 %v4399_v44, %v9100_v25  ;;  %v4401_v0 = vadd.f32 1.0, %v4369_v31  ;;  %5717 = vmatprep.subr.mxu0 %v4539_v24  ;;  %v4555_v57 = vld [vmem:[%s8955_s9 + $0x368] sm:$0xff]  ;;  %v3893_v15 = vmul.f32 1.0614054, %v7820_v48 }
0x10c3   :  { %4849 = vmatmul.mubr.f32.vlgmr.msra.gmra.mxu1 %v7704_v5  ;;  %v4366_v41 = vmul.f32 %v4334_v59, %v3662_v8  ;;  %v4336_v49 = vsub.f32 1.0, %v4304_v42  ;;  %5718 = vmatpush3.msra.mxu0 %v4523_v29  ;;  %v4099_v5 = vadd.f32 0.2548296, %v4067_v60  ;;  %v3973_v38 = vadd.f32 1.4214138, %v3941_v1  ;;  %v4570_v31 = vld [vmem:[%s8955_s9 + $0x3e0] sm:$0xff] }
0x10c4   :  { %5752 = vmatpush3.msra.mxu1 %v4557_v53  ;;  %v3955_v24 = vmul.f32 %v7805_v21, %v3923_v45  ;;  %v9101_v8 = vsub.f32 0.0, %v7984_v32  ;;  %4778 = vmatprep.mubr.f32.mxu0 %v4431_v27  ;;  %v4433_v34 = vmul.f32 %v4401_v0, %v9102_v58  ;;  %v4522_v59 = vld [vmem:[%s8955_s9 + $0x260] sm:$0xff]  ;;  %v4537_v29 = vld [vmem:[%s8955_s9 + $0x2d8] sm:$0xff]  ;;  %v3925_v1 = vadd.f32 -1.4531521, %v3893_v15  ;;  %v4552_v58 = vld [vmem:[%s8955_s9 + $0x350] sm:$0xff] }
0x10c5   :  { %5753 = vmatprep.subr.mxu1 %v4572_v9  ;;  %v4398_v44 = vadd.f32 1.0, %v4366_v41  ;;  %v4368_v53 = vmul.f32 %v4336_v49, %v3664_v6  ;;  %v4554_v4 = vld [vmem:[%s8955_s9 + $0x360] sm:$0xff]  ;;  %5719 = vmatprep.subr.mxu0 %v4538_v16  ;;  %v4131_v9 = vmul.f32 %v7720_v2, %v4099_v5  ;;  %v4005_v6 = vmul.f32 %v7730_v19, %v3973_v38  ;;  %v4521_v2 = vld [vmem:[%s8955_s9 + $0x258] sm:$0xff]  ;;  %v4568_v5 = vld [vmem:[%s8955_s9 + $0x3d0] sm:$0xff] }
0x10c6   :  { %v8093_v42 = vsel %vm3643_vm6, %v9101_v8, %v7984_v32  ;;  %5754 = vmatpush3.msra.mxu1 %v4556_v50  ;;  %v3987_v60 = vadd.f32 1.4214138, %v3955_v24  ;;  %v8114_v45 = vmul.f32 0.70710677, %v7987_v23  ;;  %4853 = vmatprep.mubr.f32.mxu1 %v4433_v34  ;;  %v9103_v50 = vld [vmem:[#allocation15_spill] sm:$0xff]  ;;  %v4553_v16 = vld [vmem:[%s8955_s9 + $0x358] sm:$0xff] }
0x10c7   :  { %5755 = vmatprep.subr.mxu1 %v4571_v13  ;;  %v4430_v25 = vmul.f32 %v4398_v44, %v9103_v50  ;;  %v4400_v27 = vadd.f32 1.0, %v4368_v53  ;;  %v3890_v0 = vmul.f32 1.0614054, %v7777_v61  ;;  %5720 = vmatpush3.msra.mxu0 %v4522_v59  ;;  %v4291_v41 = vmul.f32 %v7760_v30, %v4131_v9  ;;  %v4536_v13 = vld [vmem:[%s8955_s9 + $0x2d0] sm:$0xff]  ;;  %v9104_v30 = vld [vmem:[#allocation16_spill] sm:$0xff] }
0x10c8   :  { %5756 = vmatpush3.msra.mxu1 %v4555_v57  ;;  %v4037_v49 = vadd.f32 -0.28449672, %v4005_v6  ;;  %v4019_v38 = vmul.f32 %v7805_v21, %v3987_v60  ;;  %v3957_v57 = vmul.f32 %v7820_v48, %v3925_v1  ;;  %v8134_v24 = vmul.f32 0.3275911, %v8093_v42  ;;  %v4520_v8 = vld [vmem:[%s8955_s9 + $0x250] sm:$0xff]  ;;  %5721 = vmatprep.subr.mxu0 %v4537_v29 }
0x10c9   :  { %4779 = vmatmul.mubr.f32.gmra.mxu0 %v4430_v25  ;;  %v4432_v15 = vmul.f32 %v4400_v27, %v9104_v30  ;;  %5757 = vmatprep.subr.mxu1 %v4570_v31  ;;  %v3922_v34 = vadd.f32 -1.4531521, %v3890_v0  ;;  %v3892_v44 = vmul.f32 1.0614054, %v7793_v22  ;;  %v4323_v53 = vsub.f32 1.0, %v4291_v41  ;;  %v4535_v31 = vld [vmem:[%s8955_s9 + $0x2c8] sm:$0xff] }
0x10ca   :  { %5758 = vmatpush3.msra.mxu1 %v4554_v4  ;;  %v4069_v59 = vmul.f32 %v7730_v19, %v4037_v49  ;;  %v4051_v9 = vadd.f32 -0.28449672, %v4019_v38  ;;  %v3989_v6 = vadd.f32 1.4214138, %v3957_v57  ;;  %v3651_v1 = vsel %vm3619_vm14, -1.0, %v9049_v7  ;;  %v4567_v4 = vld [vmem:[%s8955_s9 + $0x3c8] sm:$0xff]  ;;  %5722 = vmatpush3.msra.mxu0 %v4521_v2 }
0x10cb   :  { %4854 = vmatmul.mubr.f32.gmra.mxu1 %v4432_v15  ;;  %5759 = vmatprep.subr.mxu1 %v4569_v43  ;;  %v3954_v29 = vmul.f32 %v7777_v61, %v3922_v34  ;;  %v3924_v50 = vadd.f32 -1.4531521, %v3892_v44  ;;  %v3879_v25 = vmul.f32 1.0614054, %v7884_v54  ;;  %v4355_v27 = vmul.f32 %v4323_v53, %v3651_v1  ;;  %v4519_v41 = vld [vmem:[%s8955_s9 + $0x248] sm:$0xff]  ;;  %v4534_v49 = vld [vmem:[%s8955_s9 + $0x2c0] sm:$0xff] }
0x10cc   :  { %v4101_v0 = vadd.f32 0.2548296, %v4069_v59  ;;  %5760 = vmatpush3.msra.mxu1 %v4553_v16  ;;  %v4551_v43 = vld [vmem:[%s8955_s9 + $0x348] sm:$0xff]  ;;  %v4083_v38 = vmul.f32 %v7805_v21, %v4051_v9  ;;  %v4021_v57 = vmul.f32 %v7820_v48, %v3989_v6  ;;  %5723 = vmatprep.subr.mxu0 %v4536_v13  ;;  %v3881_v15 = vmul.f32 1.0614054, %v7902_v39  ;;  %v4566_v53 = vld [vmem:[%s8955_s9 + $0x3c0] sm:$0xff] }
0x10cd   :  { %5761 = vmatprep.subr.mxu1 %v4568_v5  ;;  %v3986_v2 = vadd.f32 1.4214138, %v3954_v29  ;;  %v3956_v16 = vmul.f32 %v7793_v22, %v3924_v50  ;;  %v3911_v30 = vadd.f32 -1.4531521, %v3879_v25  ;;  %v4387_v34 = vadd.f32 1.0, %v4355_v27  ;;  %5724 = vmatpush3.msra.mxu0 %v4520_v8  ;;  %v4518_v13 = vld [vmem:[%s8955_s9 + $0x240] sm:$0xff] }
0x10ce   :  { %v4133_v44 = vmul.f32 %v7730_v19, %v4101_v0  ;;  %5762 = vmatpush3.msra.mxu1 %v4552_v58  ;;  %v4115_v59 = vadd.f32 0.2548296, %v4083_v38  ;;  %v4053_v9 = vadd.f32 -0.28449672, %v4021_v57  ;;  %5725 = vmatprep.subr.mxu0 %v4535_v31  ;;  %v3913_v19 = vadd.f32 -1.4531521, %v3881_v15 }
0x10cf   :  { %5763 = vmatprep.subr.mxu1 %v4567_v4  ;;  %v4018_v5 = vmul.f32 %v7777_v61, %v3986_v2  ;;  %v3988_v6 = vadd.f32 1.4214138, %v3956_v16  ;;  %v3943_v60 = vmul.f32 %v7884_v54, %v3911_v30  ;;  %v9106_v8 = vld [vmem:[#allocation22_spill] sm:$0xff]  ;;  %v3653_v29 = vsel %vm3621_vm15, -1.0, %v9049_v7  ;;  %5726 = vmatpush3.msra.mxu0 %v4519_v41  ;;  %v4550_v31 = vld [vmem:[%s8955_s9 + $0x340] sm:$0xff]  ;;  %v4564_v2 = vld [vmem:[%s8955_s9 + $0x3b0] sm:$0xff] }
0x10d0   :  { %v4419_v58 = vmul.f32 %v4387_v34, %v9106_v8  ;;  %v4293_v50 = vmul.f32 %v7763_v37, %v4133_v44  ;;  %5764 = vmatpush3.msra.mxu1 %v4551_v43  ;;  %v4533_v4 = vld [vmem:[%s8955_s9 + $0x2b8] sm:$0xff]  ;;  %v4147_v25 = vmul.f32 %v7805_v21, %v4115_v59  ;;  %5727 = vmatprep.subr.mxu0 %v4534_v49  ;;  %v4532_v49 = vld [vmem:[%s8955_s9 + $0x2b0] sm:$0xff]  ;;  %v3895_v15 = vmul.f32 1.0614054, %v7958_v46  ;;  %v4515_v8 = vld [vmem:[%s8955_s9 + $0x228] sm:$0xff] }
0x10d1   :  { %5765 = vmatprep.subr.mxu1 %v4566_v53  ;;  %v4565_v27 = vld [vmem:[%s8955_s9 + $0x3b8] sm:$0xff]  ;;  %v4085_v0 = vmul.f32 %v7820_v48, %v4053_v9  ;;  %v4050_v41 = vadd.f32 -0.28449672, %v4018_v5  ;;  %v4020_v43 = vmul.f32 %v7793_v22, %v3988_v6  ;;  %v3975_v38 = vadd.f32 1.4214138, %v3943_v60  ;;  %5728 = vmatpush3.msra.mxu0 %v4518_v13  ;;  %v4516_v34 = vld [vmem:[%s8955_s9 + $0x230] sm:$0xff] }
0x10d2   :  { %v4517_v37 = vld [vmem:[%s8955_s9 + $0x238] sm:$0xff]  ;;  %4923 = vmatprep.mubr.f32.mxu0 %v4419_v58  ;;  %v4325_v57 = vsub.f32 1.0, %v4293_v50  ;;  %v8208_v16 = vmul.f32 %v7815_v56, %v4147_v25  ;;  %v3945_v30 = vmul.f32 %v7902_v39, %v3913_v19  ;;  %5766 = vmatpush3.msra.mxu1 %v4550_v31  ;;  %v4548_v44 = vld [vmem:[%s8955_s9 + $0x330] sm:$0xff]  ;;  %vm3645_vm7 = vcmp.lt.f32.partialorder %v8114_v45, 0.0  ;;  %v4531_v5 = vld [vmem:[%s8955_s9 + $0x2a8] sm:$0xff] }
0x10d3   :  { %v4549_v21 = vld [vmem:[%s8955_s9 + $0x338] sm:$0xff]  ;;  %5729 = vmatprep.subr.mxu0 %v4533_v4  ;;  %v4117_v53 = vadd.f32 0.2548296, %v4085_v0  ;;  %v4082_v59 = vmul.f32 %v7777_v61, %v4050_v41  ;;  %v4052_v9 = vadd.f32 -0.28449672, %v4020_v43  ;;  %v4007_v56 = vmul.f32 %v7884_v54, %v3975_v38  ;;  %5767 = vmatprep.subr.mxu1 %v4565_v27  ;;  %v4563_v19 = vld [vmem:[%s8955_s9 + $0x3a8] sm:$0xff] }
0x10d4   :  { %v4357_v13 = vmul.f32 %v4325_v57, %v3653_v29  ;;  %5730 = vmatpush3.msra.mxu0 %v4517_v37  ;;  %v3977_v6 = vadd.f32 1.4214138, %v3945_v30  ;;  %v3927_v60 = vadd.f32 -1.4531521, %v3895_v15  ;;  %5768 = vmatpush3.msra.mxu1 %v4549_v21  ;;  %v3709_v31 = vsub.f32 0.0, %v8114_v45  ;;  %v4547_v25 = vld [vmem:[%s8955_s9 + $0x328] sm:$0xff] }
0x10d5   :  { %5731 = vmatprep.subr.mxu0 %v4532_v49  ;;  %v4149_v58 = vmul.f32 %v7820_v48, %v4117_v53  ;;  %v4114_v1 = vadd.f32 0.2548296, %v4082_v59  ;;  %v4084_v29 = vmul.f32 %v7793_v22, %v4052_v9  ;;  %v4039_v50 = vadd.f32 -0.28449672, %v4007_v56  ;;  %5769 = vmatprep.subr.mxu1 %v4564_v2  ;;  %v4530_v27 = vld [vmem:[%s8955_s9 + $0x2a0] sm:$0xff]  ;;  %v9108_v21 = vld [vmem:[#allocation28_spill] sm:$0xff] }
0x10d6   :  { %v4389_v4 = vadd.f32 1.0, %v4357_v13  ;;  %5732 = vmatpush3.msra.mxu0 %v4516_v34  ;;  %v4339_v37 = vsub.f32 1.0, %v8208_v16  ;;  %v4009_v48 = vmul.f32 %v7902_v39, %v3977_v6  ;;  %5770 = vmatpush3.msra.mxu1 %v4548_v44  ;;  %v4562_v0 = vld [vmem:[%s8955_s9 + $0x3a0] sm:$0xff]  ;;  %v3959_v30 = vmul.f32 %v7958_v46, %v3927_v60  ;;  %v4529_v15 = vld [vmem:[%s8955_s9 + $0x298] sm:$0xff]  ;;  %v4640_v32 = vld [vmem:[%s8955_s9 + $0x610] sm:$0xff] }
0x10d7   :  { %5733 = vmatprep.subr.mxu0 %v4531_v5  ;;  %v4309_v41 = vmul.f32 %v7835_v12, %v4149_v58  ;;  %v4146_v43 = vmul.f32 %v7777_v61, %v4114_v1  ;;  %v4116_v38 = vadd.f32 0.2548296, %v4084_v29  ;;  %v4071_v57 = vmul.f32 %v7884_v54, %v4039_v50  ;;  %5771 = vmatprep.subr.mxu1 %v4563_v19  ;;  %v4514_v2 = vld [vmem:[%s8955_s9 + $0x220] sm:$0xff]  ;;  %v4561_v34 = vld [vmem:[%s8955_s9 + $0x398] sm:$0xff]  ;;  %v4528_v5 = vld [vmem:[%s8955_s9 + $0x290] sm:$0xff] }
0x10d8   :  { %v4421_v49 = vmul.f32 %v4389_v4, %v9108_v21  ;;  %5734 = vmatpush3.msra.mxu0 %v4515_v8  ;;  %v4546_v16 = vld [vmem:[%s8955_s9 + $0x320] sm:$0xff]  ;;  %v3667_v12 = vsel %vm3635_vm4, -1.0, %v9049_v7  ;;  %v4041_v61 = vadd.f32 -0.28449672, %v4009_v48  ;;  %5772 = vmatpush3.msra.mxu1 %v4547_v25  ;;  %v4513_v44 = vld [vmem:[%s8955_s9 + $0x218] sm:$0xff]  ;;  %v8272_v56 = vsel %vm3645_vm7, %v3709_v31, %v8114_v45  ;;  %v4512_v19 = vld [vmem:[%s8955_s9 + $0x210] sm:$0xff] }
0x10d9   :  { %5735 = vmatprep.subr.mxu0 %v4530_v27  ;;  %v4341_v53 = vsub.f32 1.0, %v4309_v41  ;;  %v4306_v17 = vmul.f32 %v7789_v51, %v4146_v43  ;;  %v4148_v59 = vmul.f32 %v7793_v22, %v4116_v38  ;;  %v4103_v9 = vadd.f32 0.2548296, %v4071_v57  ;;  %5773 = vmatprep.subr.mxu1 %v4562_v0  ;;  %v4545_v13 = vld [vmem:[%s8955_s9 + $0x318] sm:$0xff]  ;;  %v4560_v51 = vld [vmem:[%s8955_s9 + $0x390] sm:$0xff]  ;;  %v4527_v58 = vld [vmem:[%s8955_s9 + $0x288] sm:$0xff] }
0x10da   :  { %4998 = vmatprep.mubr.f32.mxu1 %v4421_v49  ;;  %v4371_v22 = vmul.f32 %v4339_v37, %v3667_v12  ;;  %v3669_v6 = vsel %vm3637_vm5, -1.0, %v9049_v7  ;;  %v4073_v60 = vmul.f32 %v7902_v39, %v4041_v61  ;;  %5736 = vmatpush3.msra.mxu0 %v4514_v2  ;;  %v4544_v8 = vld [vmem:[%s8955_s9 + $0x310] sm:$0xff]  ;;  %v8299_v31 = vadd.f32 1.0, %v7970_v14  ;;  %v4543_v0 = vld [vmem:[%s8955_s9 + $0x308] sm:$0xff]  ;;  %v4526_v49 = vld [vmem:[%s8955_s9 + $0x280] sm:$0xff] }
0x10db   :  { %5774 = vmatpush3.msra.mxu1 %v4546_v16  ;;  %v4373_v1 = vmul.f32 %v4341_v53, %v3669_v6  ;;  %v4338_v29 = vsub.f32 1.0, %v4306_v17  ;;  %v4308_v18 = vmul.f32 %v7796_v33, %v4148_v59  ;;  %v4135_v50 = vmul.f32 %v7884_v54, %v4103_v9  ;;  %5737 = vmatprep.subr.mxu0 %v4529_v15  ;;  %v4559_v33 = vld [vmem:[%s8955_s9 + $0x388] sm:$0xff]  ;;  %v4558_v2 = vld [vmem:[%s8955_s9 + $0x380] sm:$0xff]  ;;  %v4605_v9 = vld [vmem:[%s8955_s9 + $0x4f8] sm:$0xff] }
0x10dc   :  { %v8302_v4 = vadd.f32 1.0, %v8134_v24  ;;  %5775 = vmatprep.subr.mxu1 %v4561_v34  ;;  %v4105_v25 = vadd.f32 0.2548296, %v4073_v60  ;;  %v3897_v27 = vmul.f32 1.0614054, %v7977_v62  ;;  %5738 = vmatpush3.msra.mxu0 %v4513_v44  ;;  %v4511_v24 = vld [vmem:[%s8955_s9 + $0x208] sm:$0xff] }
0x10dd   :  { %v3773_v37 = vmul.f32 0.3275911, %v8272_v56  ;;  %5776 = vmatpush3.msra.mxu1 %v4545_v13  ;;  %v4340_v54 = vsub.f32 1.0, %v4308_v18  ;;  %v4295_v14 = vmul.f32 %v7893_v40, %v4135_v50  ;;  %v3991_v48 = vadd.f32 1.4214138, %v3959_v30  ;;  %5739 = vmatprep.subr.mxu0 %v4528_v5  ;;  %v4542_v15 = vld [vmem:[%s8955_s9 + $0x300] sm:$0xff] }
0x10de   :  { %5777 = vmatprep.subr.mxu1 %v4560_v51  ;;  %v3666_v43 = vsel %vm3634_vm2, -1.0, %v9049_v7  ;;  %v3668_v57 = vsel %vm3636_vm3, -1.0, %v9049_v7  ;;  %v4137_v40 = vmul.f32 %v7902_v39, %v4105_v25  ;;  %v3929_v21 = vadd.f32 -1.4531521, %v3897_v27  ;;  %5740 = vmatpush3.msra.mxu0 %v4512_v19  ;;  %v4510_v39 = vld [vmem:[%s8955_s9 + $0x200] sm:$0xff]  ;;  %v9111_v5 = vld [vmem:[#allocation36_spill] sm:$0xff] }
0x10df   :  { %5778 = vmatpush3.msra.mxu1 %v4544_v8  ;;  %v4403_v16 = vadd.f32 1.0, %v4371_v22  ;;  %v4405_v12 = vadd.f32 1.0, %v4373_v1  ;;  %v4370_v61 = vmul.f32 %v4338_v29, %v3666_v43  ;;  %v4327_v30 = vsub.f32 1.0, %v4295_v14  ;;  %5741 = vmatprep.subr.mxu0 %v4527_v58  ;;  %v4637_v22 = vld [vmem:[%s8955_s9 + $0x5f8] sm:$0xff]  ;;  %v4672_v45 = vld [vmem:[%s8955_s9 + $0x710] sm:$0xff] }
0x10e0   :  { %5779 = vmatprep.subr.mxu1 %v4559_v33  ;;  %v4372_v34 = vmul.f32 %v4340_v54, %v3668_v57  ;;  %v4297_v44 = vmul.f32 %v7923_v10, %v4137_v40  ;;  %v3961_v53 = vmul.f32 %v7977_v62, %v3929_v21  ;;  %v3894_v17 = vmul.f32 1.0614054, %v7931_v36  ;;  %5742 = vmatpush3.msra.mxu0 %v4511_v24  ;;  %v9114_v1 = vld [vmem:[#allocation34_spill] sm:$0xff]  ;;  %v4588_v24 = vld [vmem:[%s8955_s9 + $0x470] sm:$0xff] }
0x10e1   :  { %v3805_v59 = vadd.f32 1.0, %v3773_v37  ;;  %5780 = vmatpush3.msra.mxu1 %v4543_v0  ;;  %v3655_v13 = vsel %vm3623_vm8, -1.0, %v9049_v7  ;;  %vm9112_vm9 = vcmp.lt.f32.partialorder %v9111_v5, 0.0  ;;  %v4023_v10 = vmul.f32 %v7958_v46, %v3991_v48  ;;  %5743 = vmatprep.subr.mxu0 %v4526_v49  ;;  %v4589_v25 = vld [vmem:[%s8955_s9 + $0x478] sm:$0xff] }
0x10e2   :  { %v3657_v51 = vsel %vm9112_vm9, -1.0, %v9049_v7  ;;  %5781 = vmatprep.subr.mxu1 %v4558_v2  ;;  %v4359_v6 = vmul.f32 %v4327_v30, %v3655_v13  ;;  %v4329_v60 = vsub.f32 1.0, %v4297_v44  ;;  %v3993_v19 = vadd.f32 1.4214138, %v3961_v53  ;;  %5744 = vmatpush3.msra.mxu0 %v4510_v39  ;;  %v4621_v27 = vld [vmem:[%s8955_s9 + $0x578] sm:$0xff]  ;;  %v9115_v2 = vld [vmem:[#allocation31_spill] sm:$0xff] }
0x10e3   :  { %v3926_v8 = vadd.f32 -1.4531521, %v3894_v17  ;;  %5782 = vmatpush3.msra.mxu1 %v4542_v15  ;;  %v4435_v58 = vmul.f32 %v4403_v16, %v9113_v3  ;;  %v4437_v29 = vmul.f32 %v4405_v12, %v9114_v1  ;;  %v4402_v18 = vadd.f32 1.0, %v4370_v61  ;;  %4924 = vmatmul.mubr.f32.vlgmr.msra.gmra.mxu0 %v7897_v28  ;;  %v4604_v28 = vld [vmem:[%s8955_s9 + $0x4f0] sm:$0xff]  ;;  %v9116_v12 = vld [vmem:[#allocation32_spill] sm:$0xff]  ;;  %v9118_v1 = vld [vmem:[#allocation63_spill] sm:$0xff] }
0x10e4   :  { %v3896_v50 = vmul.f32 1.0614054, %v7942_v11  ;;  %4999 = vmatmul.mubr.f32.vlgmr.msra.gmra.mxu1 %v7912_v63  ;;  %v4404_v37 = vadd.f32 1.0, %v4372_v34  ;;  %v4361_v33 = vmul.f32 %v4329_v60, %v3657_v51  ;;  %v4025_v54 = vmul.f32 %v7977_v62, %v3993_v19  ;;  %5789 = vmatprep.subr.mxu0 %v4605_v9  ;;  %v4636_v63 = vld [vmem:[%s8955_s9 + $0x5f0] sm:$0xff]  ;;  %v4603_v30 = vld [vmem:[%s8955_s9 + $0x4e8] sm:$0xff]  ;;  %v4602_v51 = vld [vmem:[%s8955_s9 + $0x4e0] sm:$0xff] }
0x10e5   :  { %v3883_v14 = vmul.f32 1.0614054, %v8011_v55  ;;  %v3804_v48 = vadd.f32 1.0, %v7996_v26  ;;  %6317 = vrcp.f32 %v8302_v4  ;;  %5827 = vmatprep.subr.mxu1 %v4637_v22  ;;  %v3958_v0 = vmul.f32 %v7931_v36, %v3926_v8  ;;  %4928 = vmatprep.mubr.f32.mxu0 %v4435_v58  ;;  %v4620_v26 = vld [vmem:[%s8955_s9 + $0x570] sm:$0xff]  ;;  %v4635_v39 = vld [vmem:[%s8955_s9 + $0x5e8] sm:$0xff]  ;;  %v4586_v22 = vld [vmem:[%s8955_s9 + $0x460] sm:$0xff] }
0x10e6   :  { %v3928_v41 = vadd.f32 -1.4531521, %v3896_v50  ;;  %6319 = vrcp.f32 %v3805_v59  ;;  %5003 = vmatprep.mubr.f32.mxu1 %v4437_v29  ;;  %v4391_v4 = vadd.f32 1.0, %v4359_v6  ;;  %v4055_v43 = vadd.f32 -0.28449672, %v4023_v10  ;;  %5790 = vmatpush3.msra.mxu0 %v4589_v25  ;;  %v4619_v34 = vld [vmem:[%s8955_s9 + $0x568] sm:$0xff] }
0x10e7   :  { %v3915_v38 = vadd.f32 -1.4531521, %v3883_v14  ;;  %5828 = vmatpush3.msra.mxu1 %v4621_v27  ;;  %v4393_v57 = vadd.f32 1.0, %v4361_v33  ;;  %v3990_v40 = vadd.f32 1.4214138, %v3958_v0  ;;  %6321 = vrcp.f32 %v8299_v31  ;;  %5791 = vmatprep.subr.mxu0 %v4604_v28  ;;  %v4587_v31 = vld [vmem:[%s8955_s9 + $0x468] sm:$0xff] }
0x10e8   :  { %v3960_v21 = vmul.f32 %v7942_v11, %v3928_v41  ;;  %v3885_v49 = vmul.f32 1.0614054, %v8024_v20  ;;  %5829 = vmatprep.subr.mxu1 %v4636_v63  ;;  %v4434_v16 = vmul.f32 %v4402_v18, %v9115_v2  ;;  %v4436_v61 = vmul.f32 %v4404_v37, %v9116_v12  ;;  %5792 = vmatpush3.msra.mxu0 %v4588_v24  ;;  %v9117_v13 = vld [vmem:[#allocation44_spill] sm:$0xff]  ;;  %v4634_v10 = vld [vmem:[%s8955_s9 + $0x5e0] sm:$0xff]  ;;  %v4601_v60 = vld [vmem:[%s8955_s9 + $0x4d8] sm:$0xff] }
0x10e9   :  { %v4057_v15 = vadd.f32 -0.28449672, %v4025_v54  ;;  %5830 = vmatpush3.msra.mxu1 %v4620_v26  ;;  %v4022_v44 = vmul.f32 %v7931_v36, %v3990_v40  ;;  %v3947_v17 = vmul.f32 %v8011_v55, %v3915_v38  ;;  %v8400_v9 = vmul.f32 %v7871_v52, %v7934_v35  ;;  %5793 = vmatprep.subr.mxu0 %v4603_v30  ;;  %v4618_v6 = vld [vmem:[%s8955_s9 + $0x560] sm:$0xff]  ;;  %v4633_v19 = vld [vmem:[%s8955_s9 + $0x5d8] sm:$0xff]  ;;  %v9123_v41 = vld [vmem:[#allocation56_spill] sm:$0xff] }
0x10ea   :  { %v3992_v53 = vadd.f32 1.4214138, %v3960_v21  ;;  %v3917_v59 = vadd.f32 -1.4531521, %v3885_v49  ;;  %6323 = vrcp.f32 %v3804_v48  ;;  %4929 = vmatmul.mubr.f32.gmra.mxu0 %v4434_v16  ;;  %5004 = vmatmul.mubr.f32.gmra.mxu1 %v4436_v61  ;;  %v4423_v5 = vmul.f32 %v4391_v4, %v9117_v13  ;;  %v4585_v50 = vld [vmem:[%s8955_s9 + $0x458] sm:$0xff]  ;;  %v9121_v63 = vld [vmem:[#allocation35_spill] sm:$0xff] }
0x10eb   :  { %v4087_v52 = vmul.f32 %v7958_v46, %v4055_v43  ;;  %5831 = vmatprep.subr.mxu1 %v4635_v39  ;;  %v4425_v35 = vmul.f32 %v4393_v57, %v7900_v47  ;;  %v3979_v3 = vadd.f32 1.4214138, %v3947_v17  ;;  %v4326_v29 = vsub.f32 1.0, %v9118_v1  ;;  %v9119_v47 = vld [vmem:[#allocation65_spill] sm:$0xff]  ;;  %5794 = vmatpush3.msra.mxu0 %v4587_v31  ;;  %v9120_v37 = vld [vmem:[#allocation66_spill] sm:$0xff]  ;;  %v4599_v61 = vld [vmem:[%s8955_s9 + $0x4c8] sm:$0xff] }
0x10ec   :  { %v4024_v8 = vmul.f32 %v7942_v11, %v3992_v53  ;;  %v3949_v58 = vmul.f32 %v8024_v20, %v3917_v59  ;;  %v4248_v18 = vmul.f32 1.442695, %v9119_v47  ;;  %5073 = vmatprep.mubr.f32.mxu0 %v4423_v5  ;;  %v4089_v25 = vmul.f32 %v7977_v62, %v4057_v15  ;;  %5832 = vmatpush3.msra.mxu1 %v4619_v34  ;;  %v9122_v0 = vld [vmem:[#allocation62_spill] sm:$0xff]  ;;  %v4600_v43 = vld [vmem:[%s8955_s9 + $0x4d0] sm:$0xff]  ;;  %v4631_v30 = vld [vmem:[%s8955_s9 + $0x5c8] sm:$0xff] }
0x10ed   :  { %v4054_v27 = vadd.f32 -0.28449672, %v4022_v44  ;;  %v4252_v33 = vmul.f32 1.442695, %v9120_v37  ;;  %5148 = vmatprep.mubr.f32.mxu1 %v4425_v35  ;;  %v4011_v14 = vmul.f32 %v8011_v55, %v3979_v3  ;;  %v4328_v28 = vsub.f32 1.0, %v8400_v9  ;;  %5795 = vmatprep.subr.mxu0 %v4602_v51  ;;  %v4617_v4 = vld [vmem:[%s8955_s9 + $0x558] sm:$0xff] }
0x10ee   :  { %v4056_v54 = vadd.f32 -0.28449672, %v4024_v8  ;;  %v3981_v48 = vadd.f32 1.4214138, %v3949_v58  ;;  %v8435_v24 = vmul.f32 0.5, %v9121_v63  ;;  %6325 = vpow2.f32 %v9122_v0  ;;  %5833 = vmatprep.subr.mxu1 %v4634_v10  ;;  %v4632_v38 = vld [vmem:[%s8955_s9 + $0x5d0] sm:$0xff]  ;;  %5796 = vmatpush3.msra.mxu0 %v4586_v22 }
0x10ef   :  { %v4170_v26 = vsub.f32 0.0, %v9123_v41  ;;  %v9124_v57 = vld [vmem:[#allocation58_spill] sm:$0xff]  ;;  %5834 = vmatpush3.msra.mxu1 %v4618_v6  ;;  %v4584_v21 = vld [vmem:[%s8955_s9 + $0x450] sm:$0xff]  ;;  %v4119_v49 = vadd.f32 0.2548296, %v4087_v52  ;;  %6327 = vpow2.f32 %v4248_v18  ;;  %5797 = vmatprep.subr.mxu0 %v4601_v60  ;;  %v4086_v15 = vmul.f32 %v7931_v36, %v4054_v27  ;;  %v9125_v34 = vld [vmem:[#allocation39_spill] sm:$0xff] }
0x10f0   :  { %v4172_v40 = vsub.f32 0.0, %v9124_v57  ;;  %v4043_v2 = vadd.f32 -0.28449672, %v4011_v14  ;;  %v4013_v16 = vmul.f32 %v8024_v20, %v3981_v48  ;;  %5835 = vmatprep.subr.mxu1 %v4633_v19  ;;  %v4616_v12 = vld [vmem:[%s8955_s9 + $0x550] sm:$0xff]  ;;  %v4121_v39 = vadd.f32 0.2548296, %v4089_v25  ;;  %5798 = vmatpush3.msra.mxu0 %v4585_v50 }
0x10f1   :  { %v4088_v31 = vmul.f32 %v7942_v11, %v4056_v54  ;;  %v4358_v44 = vmul.f32 %v4326_v29, %v9125_v34  ;;  %v9126_v53 = vld [vmem:[#allocation72_spill] sm:$0xff]  ;;  %6329 = vpow2.f32 %v4252_v33  ;;  %5836 = vmatpush3.msra.mxu1 %v4617_v4  ;;  %v9127_v51 = vld [vmem:[#allocation43_spill] sm:$0xff]  ;;  %v9128_v22 = vld [vmem:[#allocation41_spill] sm:$0xff]  ;;  %v4202_v35 = vmul.f32 %v4170_v26, %v9123_v41  ;;  %5799 = vmatprep.subr.mxu0 %v4600_v43 }
0x10f2   :  { %v3882_v17 = vmul.f32 1.0614054, %v9126_v53  ;;  %v4583_v59 = vld [vmem:[%s8955_s9 + $0x448] sm:$0xff]  ;;  %v4045_v13 = vadd.f32 -0.28449672, %v4013_v16  ;;  %v8472_v5 = vpop.eup %6317  ;;  %v4360_v10 = vmul.f32 %v4328_v28, %v9127_v51  ;;  %v8476_v52 = vmul.f32 0.5, %v9128_v22  ;;  %5837 = vmatprep.subr.mxu1 %v4632_v38  ;;  %5800 = vmatpush3.msra.mxu0 %v4584_v21 }
0x10f3   :  { %v4615_v9 = vld [vmem:[%s8955_s9 + $0x548] sm:$0xff]  ;;  %v4598_v6 = vld [vmem:[%s8955_s9 + $0x4c0] sm:$0xff]  ;;  %v4075_v8 = vmul.f32 %v8011_v55, %v4043_v2  ;;  %v8489_v3 = vpop.eup %6319  ;;  %v9129_v58 = vld [vmem:[#allocation42_spill] sm:$0xff]  ;;  %5838 = vmatpush3.msra.mxu1 %v4616_v12  ;;  %v4151_v27 = vmul.f32 %v7958_v46, %v4119_v49  ;;  %5801 = vmatprep.subr.mxu0 %v4599_v61  ;;  %v4153_v14 = vmul.f32 %v7977_v62, %v4121_v39  ;;  %v4118_v48 = vadd.f32 0.2548296, %v4086_v15 }
0x10f4   :  { %v4630_v60 = vld [vmem:[%s8955_s9 + $0x5c0] sm:$0xff]  ;;  %v8492_v1 = vmul.f32 0.5, %v9129_v58  ;;  %v4597_v50 = vld [vmem:[%s8955_s9 + $0x4b8] sm:$0xff]  ;;  %v4077_v37 = vmul.f32 %v8024_v20, %v4045_v13  ;;  %5839 = vmatprep.subr.mxu1 %v4631_v30  ;;  %v4120_v28 = vadd.f32 0.2548296, %v4088_v31  ;;  %v8515_v63 = vpop.eup %6321  ;;  %v4390_v0 = vadd.f32 1.0, %v4358_v44  ;;  %5802 = vmatpush3.msra.mxu0 %v4583_v59 }
0x10f5   :  { %v4582_v19 = vld [vmem:[%s8955_s9 + $0x440] sm:$0xff]  ;;  %v4629_v25 = vld [vmem:[%s8955_s9 + $0x5b8] sm:$0xff]  ;;  %v3914_v46 = vadd.f32 -1.4531521, %v3882_v17  ;;  %v4204_v4 = vmul.f32 %v4172_v40, %v9124_v57  ;;  %5840 = vmatpush3.msra.mxu1 %v4615_v9  ;;  %v4596_v43 = vld [vmem:[%s8955_s9 + $0x4b0] sm:$0xff]  ;;  %v4392_v38 = vadd.f32 1.0, %v4360_v10  ;;  %5803 = vmatprep.subr.mxu0 %v4598_v6  ;;  %v4150_v9 = vmul.f32 %v7931_v36, %v4118_v48 }
0x10f6   :  { %v9130_v29 = vld [vmem:[#allocation47_spill] sm:$0xff]  ;;  %v4581_v33 = vld [vmem:[%s8955_s9 + $0x438] sm:$0xff]  ;;  %v4628_v62 = vld [vmem:[%s8955_s9 + $0x5b0] sm:$0xff]  ;;  %v8525_v21 = vmul.f32 1.442695, %v4202_v35  ;;  %5841 = vmatprep.subr.mxu1 %v4630_v60  ;;  %5804 = vmatpush3.msra.mxu0 %v4582_v19  ;;  %v4152_v13 = vmul.f32 %v7942_v11, %v4120_v28  ;;  %vm9164_vm3 = vcmask 261120  }
0x10f7   :  { %v8495_v47 = vmul.f32 0.5, %v9130_v29  ;;  %v4614_v18 = vld [vmem:[%s8955_s9 + $0x540] sm:$0xff]  ;;  %v4613_v54 = vld [vmem:[%s8955_s9 + $0x538] sm:$0xff]  ;;  %v9132_v49 = vld [vmem:[#allocation68_spill] sm:$0xff]  ;;  %v4107_v16 = vadd.f32 0.2548296, %v4075_v8  ;;  %v8528_v12 = vpop.eup %6323  ;;  %5805 = vmatprep.subr.mxu0 %v4597_v50  ;;  %v3946_v22 = vmul.f32 %v9126_v53, %v3914_v46 }
0x10f8   :  { %v9131_v41 = vld [vmem:[#allocation7_spill] sm:$0xff]  ;;  %v4186_v2 = vsub.f32 0.0, %v9132_v49  ;;  %5842 = vmatpush3.msra.mxu1 %v4614_v18  ;;  %v9133_v57 = vld [vmem:[#allocation70_spill] sm:$0xff]  ;;  %v4109_v61 = vadd.f32 0.2548296, %v4077_v37  ;;  %v9134_v15 = vld [vmem:[#allocation52_spill] sm:$0xff]  ;;  %5806 = vmatpush3.msra.mxu0 %v4581_v33  ;;  %6331 = vpow2.f32 %v8525_v21 }
0x10f9   :  { %v3884_v26 = vmul.f32 1.0614054, %v9131_v41  ;;  %v8531_v40 = vmul.f32 %v9133_v57, %v4151_v27  ;;  %v3899_v30 = vmul.f32 1.0614054, %v8472_v5  ;;  %v3901_v39 = vmul.f32 1.0614054, %v8489_v3  ;;  %5843 = vmatprep.subr.mxu1 %v4629_v25  ;;  %5807 = vmatprep.subr.mxu0 %v4596_v43  ;;  %vm9166_vm4 = vmmov %vm9164_vm3 }
0x10fa   :  { %v8536_v31 = vmul.f32 0.5, %v9134_v15  ;;  %v4580_v34 = vld [vmem:[%s8955_s9 + $0x430] sm:$0xff]  ;;  %v8553_v6 = vmul.f32 1.442695, %v4204_v4  ;;  %5844 = vmatpush3.msra.mxu1 %v4613_v54  ;;  %v4595_v60 = vld [vmem:[%s8955_s9 + $0x4a8] sm:$0xff]  ;;  %v9137_v19 = vld [vmem:[#allocation38_spill] sm:$0xff]  ;;  %v4139_v29 = vmul.f32 %v8011_v55, %v4107_v16  ;;  %v8574_v27 = vmul.f32 %v4186_v2, %v9132_v49 }
0x10fb   :  { %v4612_v44 = vld [vmem:[%s8955_s9 + $0x530] sm:$0xff]  ;;  %v3916_v35 = vadd.f32 -1.4531521, %v3884_v26  ;;  %v4627_v36 = vld [vmem:[%s8955_s9 + $0x5a8] sm:$0xff]  ;;  %v8562_v11 = vmul.f32 %v4392_v38, %v9137_v19  ;;  %5845 = vmatprep.subr.mxu1 %v4628_v62  ;;  %v3898_v18 = vmul.f32 1.0614054, %v8515_v63  ;;  %v6326_v25 = vpop.eup %6325  ;;  %5808 = vmatpush3.msra.mxu0 %v4580_v34  ;;  %v4141_v55 = vmul.f32 %v8024_v20, %v4109_v61  ;;  %vm9167_vm5 = vmmov %vm9164_vm3 }
0x10fc   :  { %v9135_v17 = vld [vmem:[#allocation73_spill] sm:$0xff]  ;;  %v4579_v8 = vld [vmem:[%s8955_s9 + $0x428] sm:$0xff]  ;;  %v3900_v50 = vmul.f32 1.0614054, %v8528_v12  ;;  %5846 = vmatpush3.msra.mxu1 %v4612_v44  ;;  %v4594_v37 = vld [vmem:[%s8955_s9 + $0x4a0] sm:$0xff]  ;;  %5809 = vmatprep.subr.mxu0 %v4595_v60  ;;  %v4343_v46 = vsub.f32 1.0, %v8531_v40  ;;  %v8597_v43 = vmul.f32 %v6326_v25, %v4152_v13  ;;  %v6328_v62 = vpop.eup %6327  ;;  %6333 = vpow2.f32 %v8553_v6 }
0x10fd   :  { %v8545_v59 = vmul.f32 %v9135_v17, %v4153_v14  ;;  %v9136_v51 = vld [vmem:[#allocation37_spill] sm:$0xff]  ;;  %v4611_v58 = vld [vmem:[%s8955_s9 + $0x528] sm:$0xff]  ;;  %v4626_v33 = vld [vmem:[%s8955_s9 + $0x5a0] sm:$0xff]  ;;  %v3931_v54 = vadd.f32 -1.4531521, %v3899_v30  ;;  %5847 = vmatprep.subr.mxu1 %v4627_v36  ;;  %v3948_v49 = vmul.f32 %v9131_v41, %v3916_v35  ;;  %v4187_v57 = vsub.f32 0.0, %v8093_v42  ;;  %5810 = vmatpush3.msra.mxu0 %v4579_v8 }
0x10fe   :  { %v8550_v10 = vmul.f32 %v4390_v0, %v9136_v51  ;;  %v3933_v14 = vadd.f32 -1.4531521, %v3901_v39  ;;  %v4578_v48 = vld [vmem:[%s8955_s9 + $0x420] sm:$0xff]  ;;  %v4593_v0 = vld [vmem:[%s8955_s9 + $0x498] sm:$0xff]  ;;  %v8599_v38 = vadd.f32 1.4214138, %v3946_v22  ;;  %5848 = vmatpush3.msra.mxu1 %v4611_v58  ;;  %v6330_v30 = vpop.eup %6329  ;;  %5811 = vmatprep.subr.mxu0 %v4594_v37  ;;  %v4299_v44 = vmul.f32 %v6328_v62, %v4139_v29  ;;  %vm9168_vm8 = vmmov %vm9164_vm3 }
0x10ff   :  { %v4610_v28 = vld [vmem:[%s8955_s9 + $0x520] sm:$0xff]  ;;  %v4345_v20 = vsub.f32 1.0, %v8545_v59  ;;  %v4625_v40 = vld [vmem:[%s8955_s9 + $0x598] sm:$0xff]  ;;  %5849 = vmatprep.subr.mxu1 %v4626_v33  ;;  %v3930_v17 = vadd.f32 -1.4531521, %v3898_v18  ;;  %5812 = vmatpush3.msra.mxu0 %v4578_v48  ;;  %v4624_v13 = vld [vmem:[%s8955_s9 + $0x590] sm:$0xff]  ;;  %v4301_v35 = vmul.f32 %v6330_v30, %v4141_v55  ;;  %v3963_v60 = vmul.f32 %v8472_v5, %v3931_v54 }
0x1100   :  { %v9138_v26 = vld [vmem:[#allocation67_spill] sm:$0xff]  ;;  %v4577_v61 = vld [vmem:[%s8955_s9 + $0x418] sm:$0xff]  ;;  %v3932_v59 = vadd.f32 -1.4531521, %v3900_v50  ;;  %5850 = vmatpush3.msra.mxu1 %v4610_v28  ;;  %v9142_v51 = vld [vmem:[#allocation49_spill] sm:$0xff]  ;;  %v3965_v36 = vmul.f32 %v8489_v3, %v3933_v14  ;;  %5813 = vmatprep.subr.mxu0 %v4593_v0  ;;  %v4344_v50 = vsub.f32 1.0, %v8597_v43  ;;  %v4219_v33 = vmul.f32 %v4187_v57, %v8093_v42 }
0x1101   :  { %v8595_v4 = vmul.f32 %v9138_v26, %v4150_v9  ;;  %v9139_v2 = vld [vmem:[#allocation71_spill] sm:$0xff]  ;;  %v4609_v39 = vld [vmem:[%s8955_s9 + $0x518] sm:$0xff]  ;;  %v4592_v9 = vld [vmem:[%s8955_s9 + $0x490] sm:$0xff]  ;;  %vm9143_vm11 = vcmp.lt.f32.partialorder %v9142_v51, 0.0  ;;  %5851 = vmatprep.subr.mxu1 %v4625_v40  ;;  %v3980_v25 = vadd.f32 1.4214138, %v3948_v49  ;;  %5814 = vmatpush3.msra.mxu0 %v4577_v61 }
0x1102   :  { %v4188_v16 = vsub.f32 0.0, %v9139_v2  ;;  %v9140_v15 = vld [vmem:[#allocation46_spill] sm:$0xff]  ;;  %v3673_v22 = vsel %vm9143_vm11, -1.0, %v9049_v7  ;;  %v4576_v19 = vld [vmem:[%s8955_s9 + $0x410] sm:$0xff]  ;;  %v4189_v55 = vsub.f32 0.0, %v8272_v56  ;;  %5852 = vmatpush3.msra.mxu1 %v4609_v39  ;;  %v4591_v54 = vld [vmem:[%s8955_s9 + $0x488] sm:$0xff]  ;;  %5815 = vmatprep.subr.mxu0 %v4592_v9  ;;  %v3964_v43 = vmul.f32 %v8528_v12, %v3932_v59 }
0x1103   :  { %vm9141_vm10 = vcmp.lt.f32.partialorder %v9140_v15, 0.0  ;;  %v4608_v8 = vld [vmem:[%s8955_s9 + $0x510] sm:$0xff]  ;;  %v4377_v29 = vmul.f32 %v4345_v20, %v3673_v22  ;;  %v4342_v18 = vsub.f32 1.0, %v8595_v4  ;;  %v4623_v14 = vld [vmem:[%s8955_s9 + $0x588] sm:$0xff]  ;;  %5853 = vmatprep.subr.mxu1 %v4624_v13  ;;  %v4590_v28 = vld [vmem:[%s8955_s9 + $0x480] sm:$0xff]  ;;  %v4331_v26 = vsub.f32 1.0, %v4299_v44  ;;  %5816 = vmatpush3.msra.mxu0 %v4576_v19 }
0x1104   :  { %v3671_v34 = vsel %vm9141_vm10, -1.0, %v9049_v7  ;;  %v8636_v37 = vmul.f32 %v4188_v16, %v9139_v2  ;;  %v4575_v48 = vld [vmem:[%s8955_s9 + $0x408] sm:$0xff]  ;;  %v4622_v0 = vld [vmem:[%s8955_s9 + $0x580] sm:$0xff]  ;;  %v3962_v4 = vmul.f32 %v8515_v63, %v3930_v17  ;;  %5854 = vmatpush3.msra.mxu1 %v4608_v8  ;;  %v9146_v62 = vld [vmem:[#allocation45_spill] sm:$0xff]  ;;  %v4333_v2 = vsub.f32 1.0, %v4301_v35  ;;  %5817 = vmatprep.subr.mxu0 %v4591_v54 }
0x1105   :  { %v4375_v58 = vmul.f32 %v4343_v46, %v3671_v34  ;;  %v4607_v42 = vld [vmem:[%s8955_s9 + $0x508] sm:$0xff]  ;;  %vm9147_vm14 = vcmp.lt.f32.partialorder %v9146_v62, 0.0  ;;  %v3995_v16 = vadd.f32 1.4214138, %v3963_v60  ;;  %v3997_v57 = vadd.f32 1.4214138, %v3965_v36  ;;  %5855 = vmatprep.subr.mxu1 %v4623_v14  ;;  %5818 = vmatpush3.msra.mxu0 %v4575_v48 }
0x1106   :  { %v9144_v46 = vld [vmem:[#allocation40_spill] sm:$0xff]  ;;  %v3672_v49 = vsel %vm9147_vm14, -1.0, %v9049_v7  ;;  %v4574_v40 = vld [vmem:[%s8955_s9 + $0x400] sm:$0xff]  ;;  %v4409_v39 = vadd.f32 1.0, %v4377_v29  ;;  %v4010_v44 = vmul.f32 %v9126_v53, %v8599_v38  ;;  %v4012_v17 = vmul.f32 %v9131_v41, %v3980_v25  ;;  %5856 = vmatpush3.msra.mxu1 %v4607_v42  ;;  %v4669_v9 = vld [vmem:[%s8955_s9 + $0x6f8] sm:$0xff]  ;;  %5819 = vmatprep.subr.mxu0 %v4590_v28 }
0x1107   :  { %vm9145_vm12 = vcmp.lt.f32.partialorder %v9144_v46, 0.0  ;;  %v4606_v61 = vld [vmem:[%s8955_s9 + $0x500] sm:$0xff]  ;;  %v4407_v30 = vadd.f32 1.0, %v4375_v58  ;;  %v4376_v34 = vmul.f32 %v4344_v50, %v3672_v49  ;;  %v4221_v59 = vmul.f32 %v4189_v55, %v8272_v56  ;;  %5857 = vmatprep.subr.mxu1 %v4622_v0  ;;  %v4701_v38 = vld [vmem:[%s8955_s9 + $0x7f8] sm:$0xff]  ;;  %v9149_v35 = vld [vmem:[#allocation57_spill] sm:$0xff]  ;;  %5820 = vmatpush3.msra.mxu0 %v4574_v40 }
0x1108   :  { %v3670_v20 = vsel %vm9145_vm12, -1.0, %v9049_v7  ;;  %v3659_v51 = vsel %vm3627_vm0, -1.0, %v9049_v7  ;;  %vm9150_vm15 = vcmp.lt.f32.partialorder %v9149_v35, 0.0  ;;  %v3994_v60 = vadd.f32 1.4214138, %v3962_v4  ;;  %5858 = vmatpush3.msra.mxu1 %v4606_v61  ;;  %v4653_v8 = vld [vmem:[%s8955_s9 + $0x678] sm:$0xff]  ;;  %5074 = vmatmul.mubr.f32.vlgmr.msra.gmra.mxu0 %v8550_v10 }
0x1109   :  { %v4374_v15 = vmul.f32 %v4342_v18, %v3670_v20  ;;  %v4363_v22 = vmul.f32 %v4331_v26, %v3659_v51  ;;  %v3661_v56 = vsel %vm9150_vm15, -1.0, %v9049_v7  ;;  %v3996_v36 = vadd.f32 1.4214138, %v3964_v43  ;;  %5149 = vmatmul.mubr.f32.vlgmr.msra.gmra.mxu1 %v8562_v11  ;;  %v4668_v55 = vld [vmem:[%s8955_s9 + $0x6f0] sm:$0xff]  ;;  %5865 = vmatprep.subr.mxu0 %v4669_v9  ;;  %v4667_v49 = vld [vmem:[%s8955_s9 + $0x6e8] sm:$0xff]  ;;  %v4665_v51 = vld [vmem:[%s8955_s9 + $0x6d8] sm:$0xff] }
0x110a   :  { %v4280_v19 = vmul.f32 1.442695, %v4219_v33  ;;  %v4365_v58 = vmul.f32 %v4333_v2, %v3661_v56  ;;  %v4027_v29 = vmul.f32 %v8472_v5, %v3995_v16  ;;  %v4029_v18 = vmul.f32 %v8489_v3, %v3997_v57  ;;  %v4685_v33 = vld [vmem:[%s8955_s9 + $0x778] sm:$0xff]  ;;  %v4700_v54 = vld [vmem:[%s8955_s9 + $0x7f0] sm:$0xff]  ;;  %5903 = vmatprep.subr.mxu1 %v4701_v38  ;;  %5866 = vmatpush3.msra.mxu0 %v4653_v8  ;;  %v4699_v6 = vld [vmem:[%s8955_s9 + $0x7e8] sm:$0xff] }
0x110b   :  { %v4439_v50 = vmul.f32 %v4407_v30, %v8492_v1  ;;  %v4441_v25 = vmul.f32 %v4409_v39, %v8495_v47  ;;  %v4406_v14 = vadd.f32 1.0, %v4374_v15  ;;  %v4408_v10 = vadd.f32 1.0, %v4376_v34  ;;  %v4652_v42 = vld [vmem:[%s8955_s9 + $0x670] sm:$0xff]  ;;  %5904 = vmatpush3.msra.mxu1 %v4685_v33  ;;  %5867 = vmatprep.subr.mxu0 %v4668_v55  ;;  %v4683_v40 = vld [vmem:[%s8955_s9 + $0x768] sm:$0xff]  ;;  %v4666_v15 = vld [vmem:[%s8955_s9 + $0x6e0] sm:$0xff] }
0x110c   :  { %v4042_v48 = vadd.f32 -0.28449672, %v4010_v44  ;;  %v4044_v1 = vadd.f32 -0.28449672, %v4012_v17  ;;  %v4284_v11 = vmul.f32 1.442695, %v4221_v59  ;;  %v4026_v46 = vmul.f32 %v8515_v63, %v3994_v60  ;;  %5905 = vmatprep.subr.mxu1 %v4700_v54  ;;  %5868 = vmatpush3.msra.mxu0 %v4652_v42  ;;  %v6332_v54 = vpop.eup %6331 }
0x110d   :  { %v4278_v47 = vmul.f32 1.442695, %v8574_v27  ;;  %5078 = vmatprep.mubr.f32.mxu0 %v4439_v50  ;;  %5153 = vmatprep.mubr.f32.mxu1 %v4441_v25  ;;  %v4684_v28 = vld [vmem:[%s8955_s9 + $0x770] sm:$0xff]  ;;  %v4395_v0 = vadd.f32 1.0, %v4363_v22  ;;  %v4028_v21 = vmul.f32 %v8528_v12, %v3996_v36  ;;  %v4397_v27 = vadd.f32 1.0, %v4365_v58  ;;  %v4698_v34 = vld [vmem:[%s8955_s9 + $0x7e0] sm:$0xff]  ;;  %v6334_v42 = vpop.eup %6333 }
0x110e   :  { %v4059_v20 = vadd.f32 -0.28449672, %v4027_v29  ;;  %v4061_v26 = vadd.f32 -0.28449672, %v4029_v18  ;;  %v4282_v4 = vmul.f32 1.442695, %v8636_v37  ;;  %6335 = vpow2.f32 %v4280_v19  ;;  %5906 = vmatpush3.msra.mxu1 %v4684_v28  ;;  %5869 = vmatprep.subr.mxu0 %v4667_v49 }
0x110f   :  { %v4438_v43 = vmul.f32 %v4406_v14, %v8435_v24  ;;  %v4440_v62 = vmul.f32 %v4408_v10, %v8476_v52  ;;  %v4074_v2 = vmul.f32 %v9126_v53, %v4042_v48  ;;  %v4076_v16 = vmul.f32 %v9131_v41, %v4044_v1  ;;  %v9151_v37 = vld [vmem:[#allocation54_spill] sm:$0xff]  ;;  %v4651_v24 = vld [vmem:[%s8955_s9 + $0x668] sm:$0xff]  ;;  %5907 = vmatprep.subr.mxu1 %v4699_v6  ;;  %v4650_v17 = vld [vmem:[%s8955_s9 + $0x660] sm:$0xff] }
0x1110   :  { %v3565_v57 = vmul.f32 0.5, %v9151_v37  ;;  %6337 = vpow2.f32 %v4284_v11  ;;  %v4427_v52 = vmul.f32 %v4395_v0, %v8536_v31  ;;  %v4058_v61 = vadd.f32 -0.28449672, %v4026_v46  ;;  %5870 = vmatpush3.msra.mxu0 %v4651_v24  ;;  %v4682_v59 = vld [vmem:[%s8955_s9 + $0x760] sm:$0xff]  ;;  %5908 = vmatpush3.msra.mxu1 %v4683_v40  ;;  %v4697_v38 = vld [vmem:[%s8955_s9 + $0x7d8] sm:$0xff]  ;;  %v4664_v36 = vld [vmem:[%s8955_s9 + $0x6d0] sm:$0xff] }
0x1111   :  { %5079 = vmatmul.mubr.f32.gmra.mxu0 %v4438_v43  ;;  %5154 = vmatmul.mubr.f32.gmra.mxu1 %v4440_v62  ;;  %v4060_v30 = vadd.f32 -0.28449672, %v4028_v21  ;;  %6339 = vpow2.f32 %v4278_v47  ;;  %v4091_v31 = vmul.f32 %v8472_v5, %v4059_v20  ;;  %v4093_v44 = vmul.f32 %v8489_v3, %v4061_v26  ;;  %v4649_v22 = vld [vmem:[%s8955_s9 + $0x658] sm:$0xff]  ;;  %v4696_v19 = vld [vmem:[%s8955_s9 + $0x7d0] sm:$0xff]  ;;  %v4663_v33 = vld [vmem:[%s8955_s9 + $0x6c8] sm:$0xff] }
0x1112   :  { %v4429_v39 = vmul.f32 %v4397_v27, %v3565_v57  ;;  %6341 = vpow2.f32 %v4282_v4  ;;  %5223 = vmatprep.mubr.f32.mxu0 %v4427_v52  ;;  %v4106_v9 = vadd.f32 0.2548296, %v4074_v2  ;;  %v4108_v13 = vadd.f32 0.2548296, %v4076_v16  ;;  %5871 = vmatprep.subr.mxu0 %v4666_v15  ;;  %v4681_v35 = vld [vmem:[%s8955_s9 + $0x758] sm:$0xff]  ;;  %v4648_v29 = vld [vmem:[%s8955_s9 + $0x650] sm:$0xff] }
0x1113   :  { %5909 = vmatprep.subr.mxu1 %v4698_v34  ;;  %v4090_v56 = vmul.f32 %v8515_v63, %v4058_v61  ;;  %v4092_v60 = vmul.f32 %v8528_v12, %v4060_v30  ;;  %5872 = vmatpush3.msra.mxu0 %v4650_v17  ;;  %v4123_v8 = vadd.f32 0.2548296, %v4091_v31  ;;  %v4125_v58 = vadd.f32 0.2548296, %v4093_v44  ;;  %v4680_v18 = vld [vmem:[%s8955_s9 + $0x750] sm:$0xff]  ;;  %v4695_v55 = vld [vmem:[%s8955_s9 + $0x7c8] sm:$0xff] }
0x1114   :  { %5298 = vmatprep.mubr.f32.mxu1 %v4429_v39  ;;  %5910 = vmatpush3.msra.mxu1 %v4682_v59  ;;  %v4138_v50 = vmul.f32 %v9126_v53, %v4106_v9  ;;  %v4140_v25 = vmul.f32 %v9131_v41, %v4108_v13  ;;  %v4647_v14 = vld [vmem:[%s8955_s9 + $0x648] sm:$0xff]  ;;  %v4662_v48 = vld [vmem:[%s8955_s9 + $0x6c0] sm:$0xff]  ;;  %v4645_v26 = vld [vmem:[%s8955_s9 + $0x638] sm:$0xff] }
0x1115   :  { %5873 = vmatprep.subr.mxu0 %v4665_v51  ;;  %5911 = vmatprep.subr.mxu1 %v4697_v38  ;;  %v4679_v53 = vld [vmem:[%s8955_s9 + $0x748] sm:$0xff]  ;;  %v4122_v41 = vadd.f32 0.2548296, %v4090_v56  ;;  %v4124_v10 = vadd.f32 0.2548296, %v4092_v60  ;;  %v4694_v1 = vld [vmem:[%s8955_s9 + $0x7c0] sm:$0xff]  ;;  %v4155_v11 = vmul.f32 %v8472_v5, %v4123_v8  ;;  %v4157_v47 = vmul.f32 %v8489_v3, %v4125_v58 }
0x1116   :  { %5874 = vmatpush3.msra.mxu0 %v4649_v22  ;;  %5912 = vmatpush3.msra.mxu1 %v4681_v35  ;;  %v4646_v28 = vld [vmem:[%s8955_s9 + $0x640] sm:$0xff]  ;;  %v4298_v21 = vmul.f32 %v6332_v54, %v4138_v50  ;;  %v4300_v27 = vmul.f32 %v6334_v42, %v4140_v25  ;;  %v4661_v5 = vld [vmem:[%s8955_s9 + $0x6b8] sm:$0xff]  ;;  %v4660_v49 = vld [vmem:[%s8955_s9 + $0x6b0] sm:$0xff] }
0x1117   :  { %5875 = vmatprep.subr.mxu0 %v4664_v36  ;;  %5913 = vmatprep.subr.mxu1 %v4696_v19  ;;  %v4678_v0 = vld [vmem:[%s8955_s9 + $0x740] sm:$0xff]  ;;  %v4693_v3 = vld [vmem:[%s8955_s9 + $0x7b8] sm:$0xff]  ;;  %v4154_v43 = vmul.f32 %v8515_v63, %v4122_v41  ;;  %v4156_v62 = vmul.f32 %v8528_v12, %v4124_v10  ;;  %v4692_v6 = vld [vmem:[%s8955_s9 + $0x7b0] sm:$0xff] }
0x1118   :  { %5876 = vmatpush3.msra.mxu0 %v4648_v29  ;;  %5914 = vmatpush3.msra.mxu1 %v4680_v18  ;;  %v4677_v4 = vld [vmem:[%s8955_s9 + $0x738] sm:$0xff]  ;;  %v4644_v63 = vld [vmem:[%s8955_s9 + $0x630] sm:$0xff]  ;;  %v4330_v24 = vsub.f32 1.0, %v4298_v21  ;;  %v4332_v52 = vsub.f32 1.0, %v4300_v27  ;;  %v4659_v40 = vld [vmem:[%s8955_s9 + $0x6a8] sm:$0xff]  ;;  %v3675_v29 = vsel %vm3643_vm6, -1.0, %v9049_v7 }
0x1119   :  { %5877 = vmatprep.subr.mxu0 %v4663_v33  ;;  %5915 = vmatprep.subr.mxu1 %v4695_v55  ;;  %v4676_v12 = vld [vmem:[%s8955_s9 + $0x730] sm:$0xff]  ;;  %v4691_v61 = vld [vmem:[%s8955_s9 + $0x7a8] sm:$0xff]  ;;  %v4658_v31 = vld [vmem:[%s8955_s9 + $0x6a0] sm:$0xff]  ;;  %v3677_v18 = vsel %vm3645_vm7, -1.0, %v9049_v7 }
0x111a   :  { %5878 = vmatpush3.msra.mxu0 %v4647_v14  ;;  %5916 = vmatpush3.msra.mxu1 %v4679_v53  ;;  %v4643_v30 = vld [vmem:[%s8955_s9 + $0x628] sm:$0xff]  ;;  %v4690_v44 = vld [vmem:[%s8955_s9 + $0x7a0] sm:$0xff]  ;;  %v9152_v9 = vld [vmem:[#allocation50_spill] sm:$0xff] }
0x111b   :  { %v6336_v46 = vpop.eup %6335  ;;  %5879 = vmatprep.subr.mxu0 %v4662_v48  ;;  %5917 = vmatprep.subr.mxu1 %v4694_v1  ;;  %v4675_v39 = vld [vmem:[%s8955_s9 + $0x728] sm:$0xff]  ;;  %vm9153_vm0 = vcmp.lt.f32.partialorder %v9152_v9, 0.0  ;;  %v9154_v51 = vld [vmem:[#allocation53_spill] sm:$0xff]  ;;  %v4642_v22 = vld [vmem:[%s8955_s9 + $0x620] sm:$0xff]  ;;  %v3674_v48 = vsel %vm3642_vm1, -1.0, %v9049_v7 }
0x111c   :  { %5880 = vmatpush3.msra.mxu0 %v4646_v28  ;;  %5918 = vmatpush3.msra.mxu1 %v4678_v0  ;;  %v4315_v2 = vmul.f32 %v6336_v46, %v4155_v11  ;;  %v3658_v13 = vsel %vm9153_vm0, -1.0, %v9049_v7  ;;  %vm9155_vm2 = vcmp.lt.f32.partialorder %v9154_v51, 0.0  ;;  %v4674_v35 = vld [vmem:[%s8955_s9 + $0x720] sm:$0xff]  ;;  %v4657_v36 = vld [vmem:[%s8955_s9 + $0x698] sm:$0xff]  ;;  %v4656_v33 = vld [vmem:[%s8955_s9 + $0x690] sm:$0xff]  ;;  %v3676_v11 = vsel %vm3644_vm13, -1.0, %v9049_v7 }
0x111d   :  { %v6338_v20 = vpop.eup %6337  ;;  %5881 = vmatprep.subr.mxu0 %v4661_v5  ;;  %5919 = vmatprep.subr.mxu1 %v4693_v3  ;;  %v3660_v38 = vsel %vm9155_vm2, -1.0, %v9049_v7  ;;  %v4362_v56 = vmul.f32 %v4330_v24, %v3658_v13  ;;  %v4689_v19 = vld [vmem:[%s8955_s9 + $0x798] sm:$0xff]  ;;  %v4688_v55 = vld [vmem:[%s8955_s9 + $0x790] sm:$0xff]  ;;  %v4655_v53 = vld [vmem:[%s8955_s9 + $0x688] sm:$0xff] }
0x111e   :  { %v4317_v16 = vmul.f32 %v6338_v20, %v4157_v47  ;;  %v6340_v37 = vpop.eup %6339  ;;  %5882 = vmatpush3.msra.mxu0 %v4645_v26  ;;  %5920 = vmatpush3.msra.mxu1 %v4677_v4  ;;  %v4347_v17 = vsub.f32 1.0, %v4315_v2  ;;  %v4364_v60 = vmul.f32 %v4332_v52, %v3660_v38  ;;  %v4641_v8 = vld [vmem:[%s8955_s9 + $0x618] sm:$0xff]  ;;  %v4687_v41 = vld [vmem:[%s8955_s9 + $0x788] sm:$0xff]  ;;  %v4654_v7 = vld [vmem:[%s8955_s9 + $0x680] sm:$0xff] }
0x111f   :  { %v6342_v57 = vpop.eup %6341  ;;  %5883 = vmatprep.subr.mxu0 %v4660_v49  ;;  %5921 = vmatprep.subr.mxu1 %v4692_v6  ;;  %v4314_v15 = vmul.f32 %v6340_v37, %v4154_v43  ;;  %v4673_v58 = vld [vmem:[%s8955_s9 + $0x718] sm:$0xff]  ;;  %v4394_v47 = vadd.f32 1.0, %v4362_v56  ;;  %v4639_v28 = vld [vmem:[%s8955_s9 + $0x608] sm:$0xff]  ;;  %v4686_v27 = vld [vmem:[%s8955_s9 + $0x780] sm:$0xff] }
0x1120   :  { %v4316_v34 = vmul.f32 %v6342_v57, %v4156_v62  ;;  %5884 = vmatpush3.msra.mxu0 %v4644_v63  ;;  %5922 = vmatpush3.msra.mxu1 %v4676_v12  ;;  %v4349_v59 = vsub.f32 1.0, %v4317_v16  ;;  %v4379_v54 = vmul.f32 %v4347_v17, %v3675_v29  ;;  %v4396_v42 = vadd.f32 1.0, %v4364_v60  ;;  %v4671_v0 = vld [vmem:[%s8955_s9 + $0x708] sm:$0xff]  ;;  %v9159_v4 = vld [vmem:[#allocation51_spill] sm:$0xff]  ;;  %v9160_v6 = vld [vmem:[#allocation69_spill] sm:$0xff] }
0x1121   :  { %5885 = vmatprep.subr.mxu0 %v4659_v40  ;;  %5923 = vmatprep.subr.mxu1 %v4691_v61  ;;  %v4346_v50 = vsub.f32 1.0, %v4314_v15  ;;  %v9158_v20 = vld [vmem:[#allocation48_spill] sm:$0xff]  ;;  %v3564_v43 = vmul.f32 0.5, %v9159_v4  ;;  %v4638_v62 = vld [vmem:[%s8955_s9 + $0x600] sm:$0xff]  ;;  %v3579_v2 = vmul.f32 0.5, %v9160_v6  ;;  %v3581_v16 = vmul.f32 0.5, %v7987_v23  ;;  %vm9169_vm13 = vmmov %vm9164_vm3 }
0x1122   :  { %5886 = vmatpush3.msra.mxu0 %v4643_v30  ;;  %5924 = vmatpush3.msra.mxu1 %v4675_v39  ;;  %v4348_v25 = vsub.f32 1.0, %v4316_v34  ;;  %v4381_v14 = vmul.f32 %v4349_v59, %v3677_v18  ;;  %v4411_v5 = vadd.f32 1.0, %v4379_v54  ;;  %v3562_v26 = vmul.f32 0.5, %v9158_v20  ;;  %v4670_v49 = vld [vmem:[%s8955_s9 + $0x700] sm:$0xff]  ;;  %v9162_v30 = vld [vmem:[#allocation61_spill] sm:$0xff]  ;;  %vm9170_vm1 = vmmov %vm9164_vm3 }
0x1123   :  { %5887 = vmatprep.subr.mxu0 %v4658_v31  ;;  %5925 = vmatprep.subr.mxu1 %v4690_v44  ;;  %v4378_v46 = vmul.f32 %v4346_v50, %v3674_v48  ;;  %v4428_v63 = vmul.f32 %v4396_v42, %v3564_v43  ;;  %v9161_v40 = vld [vmem:[#allocation59_spill] sm:$0xff]  ;;  %v3580_v39 = vmul.f32 0.5, %v9162_v30 }
0x1124   :  { %5888 = vmatpush3.msra.mxu0 %v4642_v22  ;;  %5926 = vmatpush3.msra.mxu1 %v4674_v35  ;;  %v4380_v21 = vmul.f32 %v4348_v25, %v3676_v11  ;;  %v4413_v3 = vadd.f32 1.0, %v4381_v14  ;;  %v4426_v37 = vmul.f32 %v4394_v47, %v3562_v26  ;;  %v4443_v24 = vmul.f32 %v4411_v5, %v3579_v2 }
0x1125   :  { %5889 = vmatprep.subr.mxu0 %v4657_v36  ;;  %5927 = vmatprep.subr.mxu1 %v4689_v19  ;;  %v4410_v12 = vadd.f32 1.0, %v4378_v46  ;;  %v3578_v61 = vmul.f32 0.5, %v9161_v40 }
0x1126   :  { %5890 = vmatpush3.msra.mxu0 %v4641_v8  ;;  %5928 = vmatpush3.msra.mxu1 %v4673_v58  ;;  %v4412_v57 = vadd.f32 1.0, %v4380_v21  ;;  %v4445_v52 = vmul.f32 %v4413_v3, %v3581_v16  ;;  %v5518_v58 = vld [vmem:[%s8956_s10] ss:$0 sm:$0xff] }
0x1127   :  { %5891 = vmatprep.subr.mxu0 %v4656_v33  ;;  %5929 = vmatprep.subr.mxu1 %v4688_v55  ;;  %v4442_v23 = vmul.f32 %v4410_v12, %v3578_v61 }
0x1128   :  { %5892 = vmatpush3.msra.mxu0 %v4640_v32  ;;  %5930 = vmatpush3.msra.mxu1 %v4672_v45  ;;  %v4444_v15 = vmul.f32 %v4412_v57, %v3580_v39 }
0x1129   :  { %5893 = vmatprep.subr.mxu0 %v4655_v53  ;;  %5931 = vmatprep.subr.mxu1 %v4687_v41 }
0x112a   :  { %5894 = vmatpush3.msra.mxu0 %v4639_v28  ;;  %5932 = vmatpush3.msra.mxu1 %v4671_v0 }
0x112b   :  { %5895 = vmatprep.subr.mxu0 %v4654_v7  ;;  %5933 = vmatprep.subr.mxu1 %v4686_v27 }
0x112c   :  { %5896 = vmatpush3.msra.mxu0 %v4638_v62  ;;  %5934 = vmatpush3.msra.mxu1 %v4670_v49 }
0x112d   :  { %5224 = vmatmul.mubr.f32.vlgmr.msra.gmra.mxu0 %v4426_v37  ;;  %5299 = vmatmul.mubr.f32.vlgmr.msra.gmra.mxu1 %v4428_v63 }
0x112e   :  { %5228 = vmatprep.mubr.f32.mxu0 %v4443_v24  ;;  %5303 = vmatprep.mubr.f32.mxu1 %v4445_v52 }
0x1131   :  { %5229 = vmatmul.mubr.f32.gmra.mxu0 %v4442_v23  ;;  %5304 = vmatmul.mubr.f32.gmra.mxu1 %v4444_v15 }
0x117e   :  { %v5669_v34 = vpop.f32.mrf.mxu0 }
0x1180   :  { %v5670_v44 = vpop.f32.mrf.mxu0 }
0x1181   :  { %v5671_v8 = vadd.f32 %v5670_v44, %v5669_v34  ;;  %v9163_v34 = vld [vmem:[#allocation5_spill] sm:$0xff] }
0x1183   :  { %v5707_v31 = vpop.f32.mrf.mxu1  ;;  %v4776_v25 = vadd.f32 %v5671_v8, %v5518_v58 }
0x1185   :  { %v5708_v17 = vpop.f32.mrf.mxu1 }
0x1186   :  { %v5709_v54 = vadd.f32 %v5708_v17, %v5707_v31 }
0x1188   :  { %v4851_v45 = vadd.f32 %v5709_v54, %v4776_v25 }
0x1189   :  { %v5672_v59 = vpop.f32.mrf.mxu0 }
0x118b   :  { %v5710_v9 = vpop.f32.mrf.mxu1  ;;  %v5673_v13 = vpop.f32.mrf.mxu0 }
0x118c   :  { %v5674_v33 = vadd.f32 %v5673_v13, %v5672_v59  ;;  %v9165_v59 = vld [vmem:[#allocation6_spill] sm:$0xff] }
0x118d   :  { %v5711_v51 = vpop.f32.mrf.mxu1 }
0x118e   :  { %v4781_v53 = vadd.f32 %v5674_v33, %v5518_v58  ;;  %v5712_v10 = vadd.f32 %v5711_v51, %v5710_v9 }
0x1190   :  { %v4856_v47 = vadd.f32 %v5712_v10, %v4781_v53 }
0x11a3   :  { %v5745_v38 = vpop.f32.mrf.mxu0 }
0x11a4   :  { %v5783_v22 = vpop.f32.mrf.mxu1 }
0x11a5   :  { %v5746_v35 = vpop.f32.mrf.mxu0 }
0x11a6   :  { %v5784_v56 = vpop.f32.mrf.mxu1  ;;  %v5747_v14 = vadd.f32 %v5746_v35, %v5745_v38 }
0x11a7   :  { %v5785_v42 = vadd.f32 %v5784_v56, %v5783_v22 }
0x11a8   :  { %v4926_v48 = vadd.f32 %v5747_v14, %v4851_v45  ;;  %v5519_v14 = vld [vmem:[%s8957_s11] ss:$0 sm:$0xff] }
0x11a9   :  { %v5520_v45 = vld [vmem:[%s8958_s12] ss:$0 sm:$0xff] }
0x11aa   :  { %v5748_v60 = vpop.f32.mrf.mxu0  ;;  %v5786_v36 = vpop.f32.mrf.mxu1  ;;  %v5001_v46 = vadd.f32 %v5785_v42, %v4926_v48 }
0x11ac   :  { %v5749_v19 = vpop.f32.mrf.mxu0  ;;  %v5787_v29 = vpop.f32.mrf.mxu1 }
0x11ad   :  { %v5750_v1 = vadd.f32 %v5749_v19, %v5748_v60  ;;  %v5788_v27 = vadd.f32 %v5787_v29, %v5786_v36 }
0x11af   :  { %v4931_v21 = vadd.f32 %v5750_v1, %v4856_v47 }
0x11b1   :  { %v5006_v4 = vadd.f32 %v5788_v27, %v4931_v21 }
0x11c8   :  { %v5821_v18 = vpop.f32.mrf.mxu0 }
0x11c9   :  { %v5859_v50 = vpop.f32.mrf.mxu1 }
0x11ca   :  { %v5822_v55 = vpop.f32.mrf.mxu0 }
0x11cb   :  { %v5860_v32 = vpop.f32.mrf.mxu1  ;;  %v5823_v28 = vadd.f32 %v5822_v55, %v5821_v18 }
0x11cc   :  { %v5861_v43 = vadd.f32 %v5860_v32, %v5859_v50 }
0x11cd   :  { %v5076_v5 = vadd.f32 %v5823_v28, %v5001_v46 }
0x11cf   :  { %v5151_v6 = vadd.f32 %v5861_v43, %v5076_v5 }
0x11d1   :  { %v5824_v41 = vpop.f32.mrf.mxu0  ;;  %v5862_v11 = vpop.f32.mrf.mxu1 }
0x11d3   :  { %v5825_v0 = vpop.f32.mrf.mxu0  ;;  %v5863_v7 = vpop.f32.mrf.mxu1 }
0x11d4   :  { %v5826_v3 = vadd.f32 %v5825_v0, %v5824_v41  ;;  %v5864_v12 = vadd.f32 %v5863_v7, %v5862_v11 }
0x11d6   :  { %v5081_v2 = vadd.f32 %v5826_v3, %v5006_v4 }
0x11d8   :  { %v5156_v61 = vadd.f32 %v5864_v12, %v5081_v2 }
0x11ed   :  { %v5897_v20 = vpop.f32.mrf.mxu0  ;;  %v5935_v26 = vpop.f32.mrf.mxu1 }
0x11ef   :  { %v5898_v62 = vpop.f32.mrf.mxu0  ;;  %v5936_v49 = vpop.f32.mrf.mxu1 }
0x11f0   :  { %v5899_v16 = vadd.f32 %v5898_v62, %v5897_v20  ;;  %v5937_v24 = vadd.f32 %v5936_v49, %v5935_v26 }
0x11f1   :  { %v5900_v37 = vpop.f32.mrf.mxu0  ;;  %v5938_v63 = vpop.f32.mrf.mxu1 }
0x11f2   :  { %v5226_v57 = vadd.f32 %v5899_v16, %v5151_v6 }
0x11f3   :  { %v5901_v52 = vpop.f32.mrf.mxu0  ;;  %v5939_v40 = vpop.f32.mrf.mxu1 }
0x11f4   :  { %v5301_v30 = vadd.f32 %v5937_v24, %v5226_v57  ;;  %v5902_v39 = vadd.f32 %v5901_v52, %v5900_v37  ;;  %v5940_v15 = vadd.f32 %v5939_v40, %v5938_v63 }
0x11f6   :  { %v5231_v23 = vadd.f32 %v5902_v39, %v5156_v61  ;;  %v5309_v31 = vadd.f32 %v5301_v30, %v9163_v34 }
0x11f8   :  { %v5306_v44 = vadd.f32 %v5940_v15, %v5231_v23  ;;  %v5313_v17 = vsel %vm9164_vm3, %v5309_v31, 0.0 }
0x11f9   :  { %5314 = vadd.xlane.f32.xlu0 %v5313_v17 }
0x11fa   :  { %v5310_v9 = vadd.f32 %v5306_v44, %v9165_v59 }
0x11fc   :  { %v5316_v13 = vsel %vm9166_vm4, %v5310_v9, 0.0 }
0x11fd   :  { %5317 = vadd.xlane.f32.xlu1 %v5316_v13 }
0x1282   :  { %v5315_v51 = vpop.xlane.xlu0 %5314 }
0x1283   :  { %v5319_v38 = vmul.f32 0.03125, %v5315_v51 }
0x1285   :  { %v5321_v22 = vsub.f32 %v5309_v31, %v5319_v38 }
0x1286   :  { %v5318_v35 = vpop.xlane.xlu1 %5317 }
0x1287   :  { %v5320_v56 = vmul.f32 0.03125, %v5318_v35  ;;  %v5323_v60 = vmul.f32 %v5321_v22, %v5321_v22 }
0x1289   :  { %v5322_v36 = vsub.f32 %v5310_v9, %v5320_v56  ;;  %v5325_v19 = vsel %vm9167_vm5, %v5323_v60, 0.0 }
0x128a   :  { %5326 = vadd.xlane.f32.xlu0 %v5325_v19 }
0x128b   :  { %v5324_v8 = vmul.f32 %v5322_v36, %v5322_v36 }
0x128d   :  { %v5328_v58 = vsel %vm9168_vm8, %v5324_v8, 0.0 }
0x128e   :  { %5329 = vadd.xlane.f32.xlu1 %v5328_v58 }
0x1313   :  { %v5327_v29 = vpop.xlane.xlu0 %5326 }
0x1314   :  { %v5331_v18 = vmul.f32 0.03125, %v5327_v29 }
0x1316   :  { %v5333_v50 = vadd.f32 1e-05, %v5331_v18 }
0x1317   :  { %v5330_v25 = vpop.xlane.xlu1 %5329 }
0x1318   :  { %6343 = vrsqrt.f32 %v5333_v50  ;;  %v5332_v33 = vmul.f32 0.03125, %v5330_v25 }
0x131a   :  { %v5334_v55 = vadd.f32 1e-05, %v5332_v33 }
0x131c   :  { %6345 = vrsqrt.f32 %v5334_v55 }
0x1325   :  { %v6344_v54 = vpop.eup %6343 }
0x1326   :  { %v5337_v32 = vmul.f32 %v6344_v54, %v5321_v22 }
0x1328   :  { %v5345_v53 = vmul.f32 %v5519_v14, %v5337_v32 }
0x1329   :  { %v6346_v41 = vpop.eup %6345 }
0x132a   :  { %v5338_v10 = vmul.f32 %v6346_v41, %v5322_v36  ;;  %v5353_v48 = vadd.f32 %v5520_v45, %v5345_v53 }
0x132c   :  { %v5346_v1 = vmul.f32 %v5519_v14, %v5338_v10  ;;  %5355 = vst.msk [vmem:[#allocation2] sm:$0xff] %vm9169_vm13, %v5353_v48 }
0x132e   :  { %v5354_v11 = vadd.f32 %v5520_v45, %v5346_v1 }
0x1330   :  { %5356 = vst.msk [vmem:[#allocation2 + $0x8] sm:$0xff] %vm9170_vm1, %v5354_v11 }
0x1331   :  { %6358 = shalt.err (!%p6355_p4)
}
0x1332   :  { %s6373_s11 = smov 128   ;;  %s6374_s12 = smov 8  }
0x1333   :  { %5368 = dma.vmem_to_hbm [thread:$0]  %s5363_s28, 256, %s8959_s13, [#allocation3], %s6373_s11, %s6373_s11, %s6374_s12  }
0x1334   :  { %6367 = dma.done.wait [#allocation3], 256  }
0x1335   :  { %6368 = vsyncadd [#allocation3], 4294967040 }
0x1336   :  { %5372 = vsyncpa [#allocation3], 1 }

</bundles_post_ra>
